<compile_context>
chip_gen: v7x
topology: tpu7x:2x2x1
jax: 0.10.0
libtpu: 0.0.40
codegen_flags: <defaults>
</compile_context>

<pallas_src>
import functools

import jax
import jax.numpy as jnp
from jax.experimental import pallas as pl
from jax.experimental.pallas import tpu as pltpu


def _round_up(n, m):
    return ((n + m - 1) // m) * m


def _layer_norm(x, w, b, eps):
    mu = jnp.mean(x, axis=-1, keepdims=True)
    var = jnp.mean((x - mu) ** 2, axis=-1, keepdims=True)
    return (x - mu) * jax.lax.rsqrt(var + eps) * w + b


def _gelu(x, approx):
    if approx:
        # tanh-approx GELU routes to the EUP (off the VALU critical path).
        return jax.nn.gelu(x, approximate=True)
    # nn.GELU() default: exact erf GELU (PyTorch parity).
    return 0.5 * x * (1.0 + jax.lax.erf(x * 0.7071067811865475))


def _vmem_budget():
    """Per-generation VMEM limit + weight-tile buffer depth."""
    try:
        cap = int(pltpu.get_tpu_info().vmem_capacity_bytes)
    except Exception:  # pragma: no cover - conservative fallback
        cap = 128 * 1024 * 1024
    limit = min((cap * 3) // 4, 100 * 1024 * 1024)   # ~48 MiB on v7x, 96-100 MiB on v5e/v6e
    wbuf = 3 if cap >= 128 * 1024 * 1024 else 2      # deeper weight pipelining where VMEM allows
    return limit, wbuf


def siglip_layer_kernel(x_ref, ln1w, ln1b, qkvw, qkvb, ln2w, ln2b,
                        w1, b1, w2, b2,
                        o_ref, xmid_sc, h2_sc, acc_sc,
                        *, num_heads, eps, q_tile, approx_gelu):
    i = pl.program_id(1)
    n_i = pl.num_programs(1)

    # ---- i == 0: LN1 + self-attention + residual + LN2 for all Bt batch elements ----
    @pl.when(i == 0)
    def _attn_and_ln2():
        Bt, S, D = x_ref.shape
        hd = D // num_heads
        scale = float(hd) ** -0.5

        def split_heads(t):                      # (S, D) f32 -> (H, S, hd) bf16
            return jnp.transpose(t.reshape(S, num_heads, hd), (1, 0, 2)).astype(jnp.bfloat16)

        for b in range(Bt):
            x = x_ref[b].astype(jnp.float32)     # (S, D) f32
            h = _layer_norm(x, ln1w[...], ln1b[...], eps)
            hb = h.astype(jnp.bfloat16)

            # Fused QKV projection: one N=3D MXU pass, f32 accumulation.
            qkv = jnp.dot(hb, qkvw[...], preferred_element_type=jnp.float32) + qkvb[...]
            q = qkv[:, :D] * scale               # softmax scale folded into q
            k = qkv[:, D:2 * D]
            v = qkv[:, 2 * D:]

            q3, k3, v3 = split_heads(q), split_heads(k), split_heads(v)

            # Query-tiled attention: temporaries bounded to (H, q_tile, S).
            for q0 in range(0, S, q_tile):
                qlen = min(q_tile, S - q0)
                qs = q3[:, q0:q0 + qlen, :]
                scores = jnp.einsum("hqd,hkd->hqk", qs, k3,
                                    preferred_element_type=jnp.float32)
                m = jnp.max(scores, axis=-1, keepdims=True)
                e = jnp.exp(scores - m)
                inv = pl.reciprocal(jnp.sum(e, axis=-1, keepdims=True), approx=True)
                probs = (e * inv).astype(jnp.bfloat16)
                ao = jnp.einsum("hqk,hkd->hqd", probs, v3,
                                preferred_element_type=jnp.float32)   # (H, qlen, hd)
                attn = jnp.transpose(ao, (1, 0, 2)).reshape(qlen, D)  # head-major merge
                xmid_sc[b, q0:q0 + qlen, :] = x[q0:q0 + qlen, :] + attn

            h2 = _layer_norm(xmid_sc[b], ln2w[...], ln2b[...], eps)
            h2_sc[b * S:(b + 1) * S, :] = h2.astype(jnp.bfloat16)

        acc_sc[...] = jnp.zeros_like(acc_sc)

    # ---- every i: one intermediate-dim tile of the MLP (fc1 -> GELU -> fc2 partial),
    #      batched over all Bt*S rows so the weight tile is amortized over Bt images ----
    mi = jnp.dot(h2_sc[...], w1[...], preferred_element_type=jnp.float32) + b1[...]
    mi = _gelu(mi, approx_gelu)
    acc_sc[...] += jnp.dot(mi.astype(jnp.bfloat16), w2[...],
                           preferred_element_type=jnp.float32)

    # ---- last i: add fc2 bias + residual, emit the layer output ----
    @pl.when(i == n_i - 1)
    def _finalize():
        Bt, S, D = o_ref.shape
        out = xmid_sc[...] + acc_sc[...].reshape(Bt, S, D) + b2[...]
        o_ref[...] = out.astype(o_ref.dtype)


# Cached capability flag for BlockSpec(pipeline_mode=...).
_PIPELINE_MODE_OK = [True]


def siglip_encoder_layer(x, p, *, num_heads, eps, tile_i=None, batch_block=None,
                         q_tile=256, approx_gelu=False):
    B, S, D = x.shape
    I = p["fc1_w"].shape[1]

    if tile_i is None:
        tile_i = 512 if I >= 512 else _round_up(I, 128)
    I_pad = _round_up(I, tile_i)
    fc1_w, fc1_b, fc2_w = p["fc1_w"], p["fc1_b"], p["fc2_w"]
    if I_pad != I:
        # Zero-pad so non-divisible I (e.g. so400m I=4304) keeps streaming tiles;
        # GELU(0)=0 and zero fc2 rows contribute nothing, so this is exact.
        fc1_w = jnp.pad(fc1_w, ((0, 0), (0, I_pad - I)))
        fc1_b = jnp.pad(fc1_b, ((0, 0), (0, I_pad - I)))
        fc2_w = jnp.pad(fc2_w, ((0, I_pad - I), (0, 0)))
    n_i = I_pad // tile_i

    if batch_block is None:
        batch_block = next(bt for bt in (4, 2, 1) if B % bt == 0)
    Bt = batch_block
    assert B % Bt == 0, "batch_block must divide batch"

    # Fused QKV weight/bias (single MXU pass, single weight DMA stream).
    qkv_w = jnp.concatenate([p["q_w"], p["k_w"], p["v_w"]], axis=1)   # (D, 3D) bf16
    qkv_b = jnp.concatenate([p["q_b"], p["k_b"], p["v_b"]], axis=1)   # (1, 3D) f32

    vmem_limit, wbuf = _vmem_budget()

    kernel = functools.partial(siglip_layer_kernel, num_heads=num_heads, eps=eps,
                               q_tile=min(q_tile, S), approx_gelu=approx_gelu)

    hd = D // num_heads
    flops = (2 * B * S * D * 3 * D + 4 * B * num_heads * S * S * hd
             + 4 * B * S * D * I_pad)
    bytes_accessed = (2 * B * S * D * x.dtype.itemsize
                      + (B // Bt) * 2 * (D * I_pad + I_pad * D)      # streamed MLP weights
                      + 2 * 3 * D * D + 8 * D * 10)
    cost = pl.CostEstimate(flops=int(flops),
                           transcendentals=int(B * S * (num_heads * S + I_pad)),
                           bytes_accessed=int(bytes_accessed))

    def build_and_call(use_pm):
        def spec(shape, index_map, bufs=None):
            if use_pm and bufs is not None:
                return pl.BlockSpec(shape, index_map, pipeline_mode=pl.Buffered(bufs))
            return pl.BlockSpec(shape, index_map)

        def const(shape, bufs=1):
            nd = len(shape)
            return spec(shape, lambda b, i, _nd=nd: (0,) * _nd, bufs)

        in_specs = [
            pl.BlockSpec((Bt, S, D), lambda b, i: (b, 0, 0)),       # hidden states
            const((1, D)), const((1, D)),                           # ln1 w/b (f32)
            const((D, 3 * D)), const((1, 3 * D)),                   # fused qkv (bf16 w, f32 b)
            const((1, D)), const((1, D)),                           # ln2 w/b (f32)
            spec((D, tile_i), lambda b, i: (0, i), wbuf),           # fc1_w tile (bf16)
            spec((1, tile_i), lambda b, i: (0, i), wbuf),           # fc1_b tile (f32)
            spec((tile_i, D), lambda b, i: (i, 0), wbuf),           # fc2_w tile (bf16)
            const((1, D)),                                          # fc2_b (f32)
        ]

        return pl.pallas_call(
            kernel,
            out_shape=jax.ShapeDtypeStruct((B, S, D), x.dtype),
            grid_spec=pltpu.PrefetchScalarGridSpec(
                num_scalar_prefetch=0,
                grid=(B // Bt, n_i),
                in_specs=in_specs,
                out_specs=pl.BlockSpec((Bt, S, D), lambda b, i: (b, 0, 0)),
                scratch_shapes=[
                    pltpu.VMEM((Bt, S, D), jnp.float32),      # x after attention residual
                    pltpu.VMEM((Bt * S, D), jnp.bfloat16),    # LN2 output (bf16 MXU operand)
                    pltpu.VMEM((Bt * S, D), jnp.float32),     # fc2 accumulator
                ],
            ),
            compiler_params=pltpu.CompilerParams(
                dimension_semantics=("parallel", "arbitrary"),
                vmem_limit_bytes=int(vmem_limit),
            ),
            cost_estimate=cost,
        )(x, p["ln1_w"], p["ln1_b"], qkv_w, qkv_b, p["ln2_w"], p["ln2_b"],
          fc1_w, fc1_b, fc2_w, p["fc2_b"])

    if _PIPELINE_MODE_OK[0]:
        try:
            return build_and_call(True)
        except Exception:
            _PIPELINE_MODE_OK[0] = False   # pipeline_mode unsupported -> default buffering
    return build_and_call(False)


def siglip_encoder(x, layer_params, *, num_heads, eps, tile_i=None, batch_block=None,
                   q_tile=256, approx_gelu=False):
    h = x
    for p in layer_params:
        h = siglip_encoder_layer(h, p, num_heads=num_heads, eps=eps, tile_i=tile_i,
                                 batch_block=batch_block, q_tile=q_tile,
                                 approx_gelu=approx_gelu)
    return h


def init_params(key, num_layers, D, I):
    # Matmul weights stored bf16 (halves HBM->VMEM DMA bytes); LayerNorm params and
    # biases stay f32 (added after f32 accumulation).
    layers = []
    for _ in range(num_layers):
        key, *ks = jax.random.split(key, 11)

        def nrm(k, shape, scale=0.05, dtype=jnp.float32):
            return (scale * jax.random.normal(k, shape)).astype(dtype)

        layers.append(dict(
            ln1_w=jnp.ones((1, D), jnp.float32), ln1_b=jnp.zeros((1, D), jnp.float32),
            q_w=nrm(ks[0], (D, D), dtype=jnp.bfloat16), q_b=nrm(ks[1], (1, D)),
            k_w=nrm(ks[2], (D, D), dtype=jnp.bfloat16), k_b=nrm(ks[3], (1, D)),
            v_w=nrm(ks[4], (D, D), dtype=jnp.bfloat16), v_b=nrm(ks[5], (1, D)),
            ln2_w=jnp.ones((1, D), jnp.float32), ln2_b=jnp.zeros((1, D), jnp.float32),
            fc1_w=nrm(ks[6], (D, I), dtype=jnp.bfloat16), fc1_b=nrm(ks[7], (1, I)),
            fc2_w=nrm(ks[8], (I, D), dtype=jnp.bfloat16), fc2_b=nrm(ks[9], (1, D)),
        ))
    return layers


# ---------------- pure-JAX f32 reference (mirrors the PyTorch forward) ----------------
def ref_layer(x, p, num_heads, eps):
    B, S, D = x.shape
    Hd = D // num_heads
    f32 = lambda a: a.astype(jnp.float32)

    def ln(v, w, b):
        mu = v.mean(-1, keepdims=True)
        var = ((v - mu) ** 2).mean(-1, keepdims=True)
        return (v - mu) / jnp.sqrt(var + eps) * w + b

    h = ln(x, p["ln1_w"][0], p["ln1_b"][0])
    q = h @ f32(p["q_w"]) + p["q_b"][0]
    k = h @ f32(p["k_w"]) + p["k_b"][0]
    v = h @ f32(p["v_w"]) + p["v_b"][0]
    qh = q.reshape(B, S, num_heads, Hd).transpose(0, 2, 1, 3)
    kh = k.reshape(B, S, num_heads, Hd).transpose(0, 2, 1, 3)
    vh = v.reshape(B, S, num_heads, Hd).transpose(0, 2, 1, 3)
    scores = jnp.einsum("bhqd,bhkd->bhqk", qh, kh) * (Hd ** -0.5)
    probs = jax.nn.softmax(scores, axis=-1)
    attn = jnp.einsum("bhqk,bhkd->bhqd", probs, vh).transpose(0, 2, 1, 3).reshape(B, S, D)
    x = x + attn
    h2 = ln(x, p["ln2_w"][0], p["ln2_b"][0])
    m = jax.nn.gelu(h2 @ f32(p["fc1_w"]) + p["fc1_b"][0], approximate=False)
    m = m @ f32(p["fc2_w"]) + p["fc2_b"][0]
    return x + m


if __name__ == "__main__":
    # Small config consistent with SiglipVisionConfig semantics:
    # hidden_size=64, intermediate_size=256, num_attention_heads=4, num_hidden_layers=2.
    # tile_i=128 exercises I-tile streaming/accumulation, q_tile=8 exercises the
    # query-tiled attention loop, and B=2 with batch blocking exercises Bt>1.
    B, S, D, I, H, L = 2, 16, 64, 256, 4, 2
    EPS = 1e-6

    key = jax.random.PRNGKey(0)
    kx, kp = jax.random.split(key)
    x = jax.random.normal(kx, (B, S, D), jnp.float32)
    params = init_params(kp, L, D, I)

    out = siglip_encoder(x, params, num_heads=H, eps=EPS, tile_i=128, q_tile=8)
    out = jax.block_until_ready(out)

    ref = x
    for p in params:
        ref = ref_layer(ref, p, H, EPS)
    ref = jax.block_until_ready(ref)

    assert out.shape == (B, S, D)
    # bf16 MXU operands + approx reciprocal -> slightly looser tolerance vs f32 ref.
    assert bool(jnp.allclose(out, ref, atol=2e-2, rtol=2e-2)), "mismatch vs reference"
    print("KERNEL_OK")
</pallas_src>

<mosaic_0001>
module attributes {stable_mosaic.version = 11 : i64} {
  func.func @siglip_layer_kernel(%arg0: i32, %arg1: i32, %arg2: memref<2x16x64xf32, #tpu.memory_space<vmem>>, %arg3: memref<1x64xf32, #tpu.memory_space<vmem>>, %arg4: memref<1x64xf32, #tpu.memory_space<vmem>>, %arg5: memref<64x192xbf16, #tpu.memory_space<vmem>>, %arg6: memref<1x192xf32, #tpu.memory_space<vmem>>, %arg7: memref<1x64xf32, #tpu.memory_space<vmem>>, %arg8: memref<1x64xf32, #tpu.memory_space<vmem>>, %arg9: memref<64x128xbf16, #tpu.memory_space<vmem>>, %arg10: memref<1x128xf32, #tpu.memory_space<vmem>>, %arg11: memref<128x64xbf16, #tpu.memory_space<vmem>>, %arg12: memref<1x64xf32, #tpu.memory_space<vmem>>, %arg13: memref<2x16x64xf32, #tpu.memory_space<vmem>>, %arg14: memref<2x16x64xf32, #tpu.memory_space<vmem>>, %arg15: memref<32x64xbf16, #tpu.memory_space<vmem>>, %arg16: memref<32x64xf32, #tpu.memory_space<vmem>>) attributes {dimension_semantics = [#tpu.dimension_semantics<parallel>, #tpu.dimension_semantics<arbitrary>], iteration_bounds = array<i64: 1, 2>, scalar_prefetch = 0 : i64, scratch_operands = 3 : i64, tpu.core_type = #tpu.core_type<tc>, window_params = [{transform_indices = @transform_0, window_bounds = array<i64: 2, 16, 64>}, {pipeline_mode = #tpu.pipeline_mode<synchronous>, transform_indices = @transform_1, window_bounds = array<i64: 1, 64>}, {pipeline_mode = #tpu.pipeline_mode<synchronous>, transform_indices = @transform_2, window_bounds = array<i64: 1, 64>}, {pipeline_mode = #tpu.pipeline_mode<synchronous>, transform_indices = @transform_3, window_bounds = array<i64: 64, 192>}, {pipeline_mode = #tpu.pipeline_mode<synchronous>, transform_indices = @transform_4, window_bounds = array<i64: 1, 192>}, {pipeline_mode = #tpu.pipeline_mode<synchronous>, transform_indices = @transform_5, window_bounds = array<i64: 1, 64>}, {pipeline_mode = #tpu.pipeline_mode<synchronous>, transform_indices = @transform_6, window_bounds = array<i64: 1, 64>}, {transform_indices = @transform_7, window_bounds = array<i64: 64, 128>}, {transform_indices = @transform_8, window_bounds = array<i64: 1, 128>}, {transform_indices = @transform_9, window_bounds = array<i64: 128, 64>}, {pipeline_mode = #tpu.pipeline_mode<synchronous>, transform_indices = @transform_10, window_bounds = array<i64: 1, 64>}, {transform_indices = @transform_11, window_bounds = array<i64: 2, 16, 64>}]} {
    %c0_i32 = arith.constant 0 : i32
    %0 = arith.cmpi eq, %arg1, %c0_i32 : i32
    %1 = arith.extui %0 : i1 to i32
    %c0_i32_0 = arith.constant 0 : i32
    %2 = arith.cmpi ne, %1, %c0_i32_0 : i32
    scf.if %2 {
      %c0_17 = arith.constant 0 : index
      %c0_18 = arith.constant 0 : index
      %c0_19 = arith.constant 0 : index
      %26 = vector.load %arg2[%c0_17, %c0_18, %c0_19] : memref<2x16x64xf32, #tpu.memory_space<vmem>>, vector<1x16x64xf32>
      %27 = vector.shape_cast %26 : vector<1x16x64xf32> to vector<16x64xf32>
      %c0_20 = arith.constant 0 : index
      %c0_21 = arith.constant 0 : index
      %28 = vector.load %arg3[%c0_20, %c0_21] : memref<1x64xf32, #tpu.memory_space<vmem>>, vector<1x64xf32>
      %c0_22 = arith.constant 0 : index
      %c0_23 = arith.constant 0 : index
      %29 = vector.load %arg4[%c0_22, %c0_23] : memref<1x64xf32, #tpu.memory_space<vmem>>, vector<1x64xf32>
      %cst_24 = arith.constant dense<0.000000e+00> : vector<16xf32>
      %30 = vector.multi_reduction <add>, %27, %cst_24 [1] : vector<16x64xf32> to vector<16xf32>
      %31 = vector.shape_cast %30 : vector<16xf32> to vector<16x1xf32>
      %cst_25 = arith.constant 6.400000e+01 : f32
      %32 = vector.broadcast %cst_25 : f32 to vector<16x1xf32>
      %33 = arith.divf %31, %32 : vector<16x1xf32>
      %34 = vector.broadcast %33 : vector<16x1xf32> to vector<16x64xf32>
      %35 = arith.subf %27, %34 : vector<16x64xf32>
      %36 = arith.mulf %35, %35 : vector<16x64xf32>
      %cst_26 = arith.constant dense<0.000000e+00> : vector<16xf32>
      %37 = vector.multi_reduction <add>, %36, %cst_26 [1] : vector<16x64xf32> to vector<16xf32>
      %38 = vector.shape_cast %37 : vector<16xf32> to vector<16x1xf32>
      %cst_27 = arith.constant 6.400000e+01 : f32
      %39 = vector.broadcast %cst_27 : f32 to vector<16x1xf32>
      %40 = arith.divf %38, %39 : vector<16x1xf32>
      %41 = vector.broadcast %33 : vector<16x1xf32> to vector<16x64xf32>
      %42 = arith.subf %27, %41 : vector<16x64xf32>
      %cst_28 = arith.constant 9.99999997E-7 : f32
      %43 = vector.broadcast %cst_28 : f32 to vector<16x1xf32>
      %44 = arith.addf %40, %43 : vector<16x1xf32>
      %45 = math.rsqrt %44 : vector<16x1xf32>
      %46 = vector.broadcast %45 : vector<16x1xf32> to vector<16x64xf32>
      %47 = arith.mulf %42, %46 : vector<16x64xf32>
      %48 = vector.broadcast %28 : vector<1x64xf32> to vector<16x64xf32>
      %49 = arith.mulf %47, %48 : vector<16x64xf32>
      %50 = vector.broadcast %29 : vector<1x64xf32> to vector<16x64xf32>
      %51 = arith.addf %49, %50 : vector<16x64xf32>
      %52 = arith.truncf %51 : vector<16x64xf32> to vector<16x64xbf16>
      %c0_29 = arith.constant 0 : index
      %c0_30 = arith.constant 0 : index
      %53 = vector.load %arg5[%c0_29, %c0_30] : memref<64x192xbf16, #tpu.memory_space<vmem>>, vector<64x192xbf16>
      %cst_31 = arith.constant dense<0.000000e+00> : vector<16x192xf32>
      %54 = tpu.matmul %52, %53, %cst_31 {dimension_numbers = #tpu.dot_dimension_numbers<[1], [0], [0], [1], [0, 0, 1, 1], [], []>} : vector<16x64xbf16>, vector<64x192xbf16>, vector<16x192xf32> -> vector<16x192xf32>
      %c0_32 = arith.constant 0 : index
      %c0_33 = arith.constant 0 : index
      %55 = vector.load %arg6[%c0_32, %c0_33] : memref<1x192xf32, #tpu.memory_space<vmem>>, vector<1x192xf32>
      %56 = vector.broadcast %55 : vector<1x192xf32> to vector<16x192xf32>
      %57 = arith.addf %54, %56 : vector<16x192xf32>
      %58 = vector.extract_strided_slice %57 {offsets = [0, 0], sizes = [16, 64], strides = [1, 1]} : vector<16x192xf32> to vector<16x64xf32>
      %cst_34 = arith.constant 2.500000e-01 : f32
      %59 = vector.broadcast %cst_34 : f32 to vector<16x64xf32>
      %60 = arith.mulf %58, %59 : vector<16x64xf32>
      %61 = vector.extract_strided_slice %57 {offsets = [0, 64], sizes = [16, 64], strides = [1, 1]} : vector<16x192xf32> to vector<16x64xf32>
      %62 = vector.extract_strided_slice %57 {offsets = [0, 128], sizes = [16, 64], strides = [1, 1]} : vector<16x192xf32> to vector<16x64xf32>
      %63 = vector.shape_cast %60 : vector<16x64xf32> to vector<16x4x16xf32>
      %64 = tpu.transpose %63, [1, 0, 2] : vector<16x4x16xf32> -> vector<4x16x16xf32>
      %65 = arith.truncf %64 : vector<4x16x16xf32> to vector<4x16x16xbf16>
      %66 = vector.shape_cast %61 : vector<16x64xf32> to vector<16x4x16xf32>
      %67 = tpu.transpose %66, [1, 0, 2] : vector<16x4x16xf32> -> vector<4x16x16xf32>
      %68 = arith.truncf %67 : vector<4x16x16xf32> to vector<4x16x16xbf16>
      %69 = vector.shape_cast %62 : vector<16x64xf32> to vector<16x4x16xf32>
      %70 = tpu.transpose %69, [1, 0, 2] : vector<16x4x16xf32> -> vector<4x16x16xf32>
      %71 = arith.truncf %70 : vector<4x16x16xf32> to vector<4x16x16xbf16>
      %72 = vector.extract_strided_slice %65 {offsets = [0, 0, 0], sizes = [4, 8, 16], strides = [1, 1, 1]} : vector<4x16x16xbf16> to vector<4x8x16xbf16>
      "tpu.trace_start"() <{level = 10 : i32, message = "hqd,hkd->hqk"}> : () -> ()
      %cst_35 = arith.constant dense<0.000000e+00> : vector<4x8x16xf32>
      %73 = tpu.matmul %72, %68, %cst_35 {dimension_numbers = #tpu.dot_dimension_numbers<[2], [2], [1], [1], [0, 0, 0, 1, 1, 1], [0], [0]>} : vector<4x8x16xbf16>, vector<4x16x16xbf16>, vector<4x8x16xf32> -> vector<4x8x16xf32>
      "tpu.trace_stop"() : () -> ()
      %cst_36 = arith.constant dense<0xFF800000> : vector<4x8xf32>
      %74 = vector.multi_reduction <maximumf>, %73, %cst_36 [2] : vector<4x8x16xf32> to vector<4x8xf32>
      %75 = vector.shape_cast %74 : vector<4x8xf32> to vector<4x8x1xf32>
      %76 = vector.broadcast %75 : vector<4x8x1xf32> to vector<4x8x16xf32>
      %77 = arith.subf %73, %76 : vector<4x8x16xf32>
      %78 = math.exp %77 : vector<4x8x16xf32>
      %cst_37 = arith.constant dense<0.000000e+00> : vector<4x8xf32>
      %79 = vector.multi_reduction <add>, %78, %cst_37 [2] : vector<4x8x16xf32> to vector<4x8xf32>
      %80 = vector.shape_cast %79 : vector<4x8xf32> to vector<4x8x1xf32>
      %81 = tpu.reciprocal %80 {approx = true} : vector<4x8x1xf32> -> vector<4x8x1xf32>
      %82 = vector.broadcast %81 : vector<4x8x1xf32> to vector<4x8x16xf32>
      %83 = arith.mulf %78, %82 : vector<4x8x16xf32>
      %84 = arith.truncf %83 : vector<4x8x16xf32> to vector<4x8x16xbf16>
      "tpu.trace_start"() <{level = 10 : i32, message = "hqk,hkd->hqd"}> : () -> ()
      %cst_38 = arith.constant dense<0.000000e+00> : vector<4x8x16xf32>
      %85 = tpu.matmul %84, %71, %cst_38 {dimension_numbers = #tpu.dot_dimension_numbers<[2], [1], [1], [2], [0, 0, 0, 1, 1, 2], [0], [0]>} : vector<4x8x16xbf16>, vector<4x16x16xbf16>, vector<4x8x16xf32> -> vector<4x8x16xf32>
      "tpu.trace_stop"() : () -> ()
      %86 = tpu.transpose %85, [1, 0, 2] : vector<4x8x16xf32> -> vector<8x4x16xf32>
      %87 = vector.shape_cast %86 : vector<8x4x16xf32> to vector<8x64xf32>
      %88 = vector.extract_strided_slice %27 {offsets = [0, 0], sizes = [8, 64], strides = [1, 1]} : vector<16x64xf32> to vector<8x64xf32>
      %89 = arith.addf %88, %87 : vector<8x64xf32>
      %c0_39 = arith.constant 0 : index
      %c0_40 = arith.constant 0 : index
      %c0_41 = arith.constant 0 : index
      %90 = vector.load %arg14[%c0_39, %c0_40, %c0_41] : memref<2x16x64xf32, #tpu.memory_space<vmem>>, vector<1x8x64xf32>
      %91 = vector.shape_cast %90 : vector<1x8x64xf32> to vector<8x64xf32>
      %92 = vector.shape_cast %89 : vector<8x64xf32> to vector<1x8x64xf32>
      tpu.vector_store %arg14[%c0_39, %c0_40, %c0_41], %92 {strides = array<i32>} : memref<2x16x64xf32, #tpu.memory_space<vmem>>, vector<1x8x64xf32>,
      %93 = vector.extract_strided_slice %65 {offsets = [0, 8, 0], sizes = [4, 8, 16], strides = [1, 1, 1]} : vector<4x16x16xbf16> to vector<4x8x16xbf16>
      "tpu.trace_start"() <{level = 10 : i32, message = "hqd,hkd->hqk"}> : () -> ()
      %cst_42 = arith.constant dense<0.000000e+00> : vector<4x8x16xf32>
      %94 = tpu.matmul %93, %68, %cst_42 {dimension_numbers = #tpu.dot_dimension_numbers<[2], [2], [1], [1], [0, 0, 0, 1, 1, 1], [0], [0]>} : vector<4x8x16xbf16>, vector<4x16x16xbf16>, vector<4x8x16xf32> -> vector<4x8x16xf32>
      "tpu.trace_stop"() : () -> ()
      %cst_43 = arith.constant dense<0xFF800000> : vector<4x8xf32>
      %95 = vector.multi_reduction <maximumf>, %94, %cst_43 [2] : vector<4x8x16xf32> to vector<4x8xf32>
      %96 = vector.shape_cast %95 : vector<4x8xf32> to vector<4x8x1xf32>
      %97 = vector.broadcast %96 : vector<4x8x1xf32> to vector<4x8x16xf32>
      %98 = arith.subf %94, %97 : vector<4x8x16xf32>
      %99 = math.exp %98 : vector<4x8x16xf32>
      %cst_44 = arith.constant dense<0.000000e+00> : vector<4x8xf32>
      %100 = vector.multi_reduction <add>, %99, %cst_44 [2] : vector<4x8x16xf32> to vector<4x8xf32>
      %101 = vector.shape_cast %100 : vector<4x8xf32> to vector<4x8x1xf32>
      %102 = tpu.reciprocal %101 {approx = true} : vector<4x8x1xf32> -> vector<4x8x1xf32>
      %103 = vector.broadcast %102 : vector<4x8x1xf32> to vector<4x8x16xf32>
      %104 = arith.mulf %99, %103 : vector<4x8x16xf32>
      %105 = arith.truncf %104 : vector<4x8x16xf32> to vector<4x8x16xbf16>
      "tpu.trace_start"() <{level = 10 : i32, message = "hqk,hkd->hqd"}> : () -> ()
      %cst_45 = arith.constant dense<0.000000e+00> : vector<4x8x16xf32>
      %106 = tpu.matmul %105, %71, %cst_45 {dimension_numbers = #tpu.dot_dimension_numbers<[2], [1], [1], [2], [0, 0, 0, 1, 1, 2], [0], [0]>} : vector<4x8x16xbf16>, vector<4x16x16xbf16>, vector<4x8x16xf32> -> vector<4x8x16xf32>
      "tpu.trace_stop"() : () -> ()
      %107 = tpu.transpose %106, [1, 0, 2] : vector<4x8x16xf32> -> vector<8x4x16xf32>
      %108 = vector.shape_cast %107 : vector<8x4x16xf32> to vector<8x64xf32>
      %109 = vector.extract_strided_slice %27 {offsets = [8, 0], sizes = [8, 64], strides = [1, 1]} : vector<16x64xf32> to vector<8x64xf32>
      %110 = arith.addf %109, %108 : vector<8x64xf32>
      %c0_46 = arith.constant 0 : index
      %c8 = arith.constant 8 : index
      %c0_47 = arith.constant 0 : index
      %111 = vector.load %arg14[%c0_46, %c8, %c0_47] : memref<2x16x64xf32, #tpu.memory_space<vmem>>, vector<1x8x64xf32>
      %112 = vector.shape_cast %111 : vector<1x8x64xf32> to vector<8x64xf32>
      %113 = vector.shape_cast %110 : vector<8x64xf32> to vector<1x8x64xf32>
      tpu.vector_store %arg14[%c0_46, %c8, %c0_47], %113 {strides = array<i32>} : memref<2x16x64xf32, #tpu.memory_space<vmem>>, vector<1x8x64xf32>,
      %c0_48 = arith.constant 0 : index
      %c0_49 = arith.constant 0 : index
      %c0_50 = arith.constant 0 : index
      %114 = vector.load %arg14[%c0_48, %c0_49, %c0_50] : memref<2x16x64xf32, #tpu.memory_space<vmem>>, vector<1x16x64xf32>
      %115 = vector.shape_cast %114 : vector<1x16x64xf32> to vector<16x64xf32>
      %c0_51 = arith.constant 0 : index
      %c0_52 = arith.constant 0 : index
      %116 = vector.load %arg7[%c0_51, %c0_52] : memref<1x64xf32, #tpu.memory_space<vmem>>, vector<1x64xf32>
      %c0_53 = arith.constant 0 : index
      %c0_54 = arith.constant 0 : index
      %117 = vector.load %arg8[%c0_53, %c0_54] : memref<1x64xf32, #tpu.memory_space<vmem>>, vector<1x64xf32>
      %cst_55 = arith.constant dense<0.000000e+00> : vector<16xf32>
      %118 = vector.multi_reduction <add>, %115, %cst_55 [1] : vector<16x64xf32> to vector<16xf32>
      %119 = vector.shape_cast %118 : vector<16xf32> to vector<16x1xf32>
      %cst_56 = arith.constant 6.400000e+01 : f32
      %120 = vector.broadcast %cst_56 : f32 to vector<16x1xf32>
      %121 = arith.divf %119, %120 : vector<16x1xf32>
      %122 = vector.broadcast %121 : vector<16x1xf32> to vector<16x64xf32>
      %123 = arith.subf %115, %122 : vector<16x64xf32>
      %124 = arith.mulf %123, %123 : vector<16x64xf32>
      %cst_57 = arith.constant dense<0.000000e+00> : vector<16xf32>
      %125 = vector.multi_reduction <add>, %124, %cst_57 [1] : vector<16x64xf32> to vector<16xf32>
      %126 = vector.shape_cast %125 : vector<16xf32> to vector<16x1xf32>
      %cst_58 = arith.constant 6.400000e+01 : f32
      %127 = vector.broadcast %cst_58 : f32 to vector<16x1xf32>
      %128 = arith.divf %126, %127 : vector<16x1xf32>
      %129 = vector.broadcast %121 : vector<16x1xf32> to vector<16x64xf32>
      %130 = arith.subf %115, %129 : vector<16x64xf32>
      %cst_59 = arith.constant 9.99999997E-7 : f32
      %131 = vector.broadcast %cst_59 : f32 to vector<16x1xf32>
      %132 = arith.addf %128, %131 : vector<16x1xf32>
      %133 = math.rsqrt %132 : vector<16x1xf32>
      %134 = vector.broadcast %133 : vector<16x1xf32> to vector<16x64xf32>
      %135 = arith.mulf %130, %134 : vector<16x64xf32>
      %136 = vector.broadcast %116 : vector<1x64xf32> to vector<16x64xf32>
      %137 = arith.mulf %135, %136 : vector<16x64xf32>
      %138 = vector.broadcast %117 : vector<1x64xf32> to vector<16x64xf32>
      %139 = arith.addf %137, %138 : vector<16x64xf32>
      %140 = arith.truncf %139 : vector<16x64xf32> to vector<16x64xbf16>
      %c0_60 = arith.constant 0 : index
      %c0_61 = arith.constant 0 : index
      %141 = vector.load %arg15[%c0_60, %c0_61] : memref<32x64xbf16, #tpu.memory_space<vmem>>, vector<16x64xbf16>
      tpu.vector_store %arg15[%c0_60, %c0_61], %140 {strides = array<i32>} : memref<32x64xbf16, #tpu.memory_space<vmem>>, vector<16x64xbf16>,
      %c1 = arith.constant 1 : index
      %c0_62 = arith.constant 0 : index
      %c0_63 = arith.constant 0 : index
      %142 = vector.load %arg2[%c1, %c0_62, %c0_63] : memref<2x16x64xf32, #tpu.memory_space<vmem>>, vector<1x16x64xf32>
      %143 = vector.shape_cast %142 : vector<1x16x64xf32> to vector<16x64xf32>
      %c0_64 = arith.constant 0 : index
      %c0_65 = arith.constant 0 : index
      %144 = vector.load %arg3[%c0_64, %c0_65] : memref<1x64xf32, #tpu.memory_space<vmem>>, vector<1x64xf32>
      %c0_66 = arith.constant 0 : index
      %c0_67 = arith.constant 0 : index
      %145 = vector.load %arg4[%c0_66, %c0_67] : memref<1x64xf32, #tpu.memory_space<vmem>>, vector<1x64xf32>
      %cst_68 = arith.constant dense<0.000000e+00> : vector<16xf32>
      %146 = vector.multi_reduction <add>, %143, %cst_68 [1] : vector<16x64xf32> to vector<16xf32>
      %147 = vector.shape_cast %146 : vector<16xf32> to vector<16x1xf32>
      %cst_69 = arith.constant 6.400000e+01 : f32
      %148 = vector.broadcast %cst_69 : f32 to vector<16x1xf32>
      %149 = arith.divf %147, %148 : vector<16x1xf32>
      %150 = vector.broadcast %149 : vector<16x1xf32> to vector<16x64xf32>
      %151 = arith.subf %143, %150 : vector<16x64xf32>
      %152 = arith.mulf %151, %151 : vector<16x64xf32>
      %cst_70 = arith.constant dense<0.000000e+00> : vector<16xf32>
      %153 = vector.multi_reduction <add>, %152, %cst_70 [1] : vector<16x64xf32> to vector<16xf32>
      %154 = vector.shape_cast %153 : vector<16xf32> to vector<16x1xf32>
      %cst_71 = arith.constant 6.400000e+01 : f32
      %155 = vector.broadcast %cst_71 : f32 to vector<16x1xf32>
      %156 = arith.divf %154, %155 : vector<16x1xf32>
      %157 = vector.broadcast %149 : vector<16x1xf32> to vector<16x64xf32>
      %158 = arith.subf %143, %157 : vector<16x64xf32>
      %cst_72 = arith.constant 9.99999997E-7 : f32
      %159 = vector.broadcast %cst_72 : f32 to vector<16x1xf32>
      %160 = arith.addf %156, %159 : vector<16x1xf32>
      %161 = math.rsqrt %160 : vector<16x1xf32>
      %162 = vector.broadcast %161 : vector<16x1xf32> to vector<16x64xf32>
      %163 = arith.mulf %158, %162 : vector<16x64xf32>
      %164 = vector.broadcast %144 : vector<1x64xf32> to vector<16x64xf32>
      %165 = arith.mulf %163, %164 : vector<16x64xf32>
      %166 = vector.broadcast %145 : vector<1x64xf32> to vector<16x64xf32>
      %167 = arith.addf %165, %166 : vector<16x64xf32>
      %168 = arith.truncf %167 : vector<16x64xf32> to vector<16x64xbf16>
      %c0_73 = arith.constant 0 : index
      %c0_74 = arith.constant 0 : index
      %169 = vector.load %arg5[%c0_73, %c0_74] : memref<64x192xbf16, #tpu.memory_space<vmem>>, vector<64x192xbf16>
      %cst_75 = arith.constant dense<0.000000e+00> : vector<16x192xf32>
      %170 = tpu.matmul %168, %169, %cst_75 {dimension_numbers = #tpu.dot_dimension_numbers<[1], [0], [0], [1], [0, 0, 1, 1], [], []>} : vector<16x64xbf16>, vector<64x192xbf16>, vector<16x192xf32> -> vector<16x192xf32>
      %c0_76 = arith.constant 0 : index
      %c0_77 = arith.constant 0 : index
      %171 = vector.load %arg6[%c0_76, %c0_77] : memref<1x192xf32, #tpu.memory_space<vmem>>, vector<1x192xf32>
      %172 = vector.broadcast %171 : vector<1x192xf32> to vector<16x192xf32>
      %173 = arith.addf %170, %172 : vector<16x192xf32>
      %174 = vector.extract_strided_slice %173 {offsets = [0, 0], sizes = [16, 64], strides = [1, 1]} : vector<16x192xf32> to vector<16x64xf32>
      %cst_78 = arith.constant 2.500000e-01 : f32
      %175 = vector.broadcast %cst_78 : f32 to vector<16x64xf32>
      %176 = arith.mulf %174, %175 : vector<16x64xf32>
      %177 = vector.extract_strided_slice %173 {offsets = [0, 64], sizes = [16, 64], strides = [1, 1]} : vector<16x192xf32> to vector<16x64xf32>
      %178 = vector.extract_strided_slice %173 {offsets = [0, 128], sizes = [16, 64], strides = [1, 1]} : vector<16x192xf32> to vector<16x64xf32>
      %179 = vector.shape_cast %176 : vector<16x64xf32> to vector<16x4x16xf32>
      %180 = tpu.transpose %179, [1, 0, 2] : vector<16x4x16xf32> -> vector<4x16x16xf32>
      %181 = arith.truncf %180 : vector<4x16x16xf32> to vector<4x16x16xbf16>
      %182 = vector.shape_cast %177 : vector<16x64xf32> to vector<16x4x16xf32>
      %183 = tpu.transpose %182, [1, 0, 2] : vector<16x4x16xf32> -> vector<4x16x16xf32>
      %184 = arith.truncf %183 : vector<4x16x16xf32> to vector<4x16x16xbf16>
      %185 = vector.shape_cast %178 : vector<16x64xf32> to vector<16x4x16xf32>
      %186 = tpu.transpose %185, [1, 0, 2] : vector<16x4x16xf32> -> vector<4x16x16xf32>
      %187 = arith.truncf %186 : vector<4x16x16xf32> to vector<4x16x16xbf16>
      %188 = vector.extract_strided_slice %181 {offsets = [0, 0, 0], sizes = [4, 8, 16], strides = [1, 1, 1]} : vector<4x16x16xbf16> to vector<4x8x16xbf16>
      "tpu.trace_start"() <{level = 10 : i32, message = "hqd,hkd->hqk"}> : () -> ()
      %cst_79 = arith.constant dense<0.000000e+00> : vector<4x8x16xf32>
      %189 = tpu.matmul %188, %184, %cst_79 {dimension_numbers = #tpu.dot_dimension_numbers<[2], [2], [1], [1], [0, 0, 0, 1, 1, 1], [0], [0]>} : vector<4x8x16xbf16>, vector<4x16x16xbf16>, vector<4x8x16xf32> -> vector<4x8x16xf32>
      "tpu.trace_stop"() : () -> ()
      %cst_80 = arith.constant dense<0xFF800000> : vector<4x8xf32>
      %190 = vector.multi_reduction <maximumf>, %189, %cst_80 [2] : vector<4x8x16xf32> to vector<4x8xf32>
      %191 = vector.shape_cast %190 : vector<4x8xf32> to vector<4x8x1xf32>
      %192 = vector.broadcast %191 : vector<4x8x1xf32> to vector<4x8x16xf32>
      %193 = arith.subf %189, %192 : vector<4x8x16xf32>
      %194 = math.exp %193 : vector<4x8x16xf32>
      %cst_81 = arith.constant dense<0.000000e+00> : vector<4x8xf32>
      %195 = vector.multi_reduction <add>, %194, %cst_81 [2] : vector<4x8x16xf32> to vector<4x8xf32>
      %196 = vector.shape_cast %195 : vector<4x8xf32> to vector<4x8x1xf32>
      %197 = tpu.reciprocal %196 {approx = true} : vector<4x8x1xf32> -> vector<4x8x1xf32>
      %198 = vector.broadcast %197 : vector<4x8x1xf32> to vector<4x8x16xf32>
      %199 = arith.mulf %194, %198 : vector<4x8x16xf32>
      %200 = arith.truncf %199 : vector<4x8x16xf32> to vector<4x8x16xbf16>
      "tpu.trace_start"() <{level = 10 : i32, message = "hqk,hkd->hqd"}> : () -> ()
      %cst_82 = arith.constant dense<0.000000e+00> : vector<4x8x16xf32>
      %201 = tpu.matmul %200, %187, %cst_82 {dimension_numbers = #tpu.dot_dimension_numbers<[2], [1], [1], [2], [0, 0, 0, 1, 1, 2], [0], [0]>} : vector<4x8x16xbf16>, vector<4x16x16xbf16>, vector<4x8x16xf32> -> vector<4x8x16xf32>
      "tpu.trace_stop"() : () -> ()
      %202 = tpu.transpose %201, [1, 0, 2] : vector<4x8x16xf32> -> vector<8x4x16xf32>
      %203 = vector.shape_cast %202 : vector<8x4x16xf32> to vector<8x64xf32>
      %204 = vector.extract_strided_slice %143 {offsets = [0, 0], sizes = [8, 64], strides = [1, 1]} : vector<16x64xf32> to vector<8x64xf32>
      %205 = arith.addf %204, %203 : vector<8x64xf32>
      %c1_83 = arith.constant 1 : index
      %c0_84 = arith.constant 0 : index
      %c0_85 = arith.constant 0 : index
      %206 = vector.load %arg14[%c1_83, %c0_84, %c0_85] : memref<2x16x64xf32, #tpu.memory_space<vmem>>, vector<1x8x64xf32>
      %207 = vector.shape_cast %206 : vector<1x8x64xf32> to vector<8x64xf32>
      %208 = vector.shape_cast %205 : vector<8x64xf32> to vector<1x8x64xf32>
      tpu.vector_store %arg14[%c1_83, %c0_84, %c0_85], %208 {strides = array<i32>} : memref<2x16x64xf32, #tpu.memory_space<vmem>>, vector<1x8x64xf32>,
      %209 = vector.extract_strided_slice %181 {offsets = [0, 8, 0], sizes = [4, 8, 16], strides = [1, 1, 1]} : vector<4x16x16xbf16> to vector<4x8x16xbf16>
      "tpu.trace_start"() <{level = 10 : i32, message = "hqd,hkd->hqk"}> : () -> ()
      %cst_86 = arith.constant dense<0.000000e+00> : vector<4x8x16xf32>
      %210 = tpu.matmul %209, %184, %cst_86 {dimension_numbers = #tpu.dot_dimension_numbers<[2], [2], [1], [1], [0, 0, 0, 1, 1, 1], [0], [0]>} : vector<4x8x16xbf16>, vector<4x16x16xbf16>, vector<4x8x16xf32> -> vector<4x8x16xf32>
      "tpu.trace_stop"() : () -> ()
      %cst_87 = arith.constant dense<0xFF800000> : vector<4x8xf32>
      %211 = vector.multi_reduction <maximumf>, %210, %cst_87 [2] : vector<4x8x16xf32> to vector<4x8xf32>
      %212 = vector.shape_cast %211 : vector<4x8xf32> to vector<4x8x1xf32>
      %213 = vector.broadcast %212 : vector<4x8x1xf32> to vector<4x8x16xf32>
      %214 = arith.subf %210, %213 : vector<4x8x16xf32>
      %215 = math.exp %214 : vector<4x8x16xf32>
      %cst_88 = arith.constant dense<0.000000e+00> : vector<4x8xf32>
      %216 = vector.multi_reduction <add>, %215, %cst_88 [2] : vector<4x8x16xf32> to vector<4x8xf32>
      %217 = vector.shape_cast %216 : vector<4x8xf32> to vector<4x8x1xf32>
      %218 = tpu.reciprocal %217 {approx = true} : vector<4x8x1xf32> -> vector<4x8x1xf32>
      %219 = vector.broadcast %218 : vector<4x8x1xf32> to vector<4x8x16xf32>
      %220 = arith.mulf %215, %219 : vector<4x8x16xf32>
      %221 = arith.truncf %220 : vector<4x8x16xf32> to vector<4x8x16xbf16>
      "tpu.trace_start"() <{level = 10 : i32, message = "hqk,hkd->hqd"}> : () -> ()
      %cst_89 = arith.constant dense<0.000000e+00> : vector<4x8x16xf32>
      %222 = tpu.matmul %221, %187, %cst_89 {dimension_numbers = #tpu.dot_dimension_numbers<[2], [1], [1], [2], [0, 0, 0, 1, 1, 2], [0], [0]>} : vector<4x8x16xbf16>, vector<4x16x16xbf16>, vector<4x8x16xf32> -> vector<4x8x16xf32>
      "tpu.trace_stop"() : () -> ()
      %223 = tpu.transpose %222, [1, 0, 2] : vector<4x8x16xf32> -> vector<8x4x16xf32>
      %224 = vector.shape_cast %223 : vector<8x4x16xf32> to vector<8x64xf32>
      %225 = vector.extract_strided_slice %143 {offsets = [8, 0], sizes = [8, 64], strides = [1, 1]} : vector<16x64xf32> to vector<8x64xf32>
      %226 = arith.addf %225, %224 : vector<8x64xf32>
      %c1_90 = arith.constant 1 : index
      %c8_91 = arith.constant 8 : index
      %c0_92 = arith.constant 0 : index
      %227 = vector.load %arg14[%c1_90, %c8_91, %c0_92] : memref<2x16x64xf32, #tpu.memory_space<vmem>>, vector<1x8x64xf32>
      %228 = vector.shape_cast %227 : vector<1x8x64xf32> to vector<8x64xf32>
      %229 = vector.shape_cast %226 : vector<8x64xf32> to vector<1x8x64xf32>
      tpu.vector_store %arg14[%c1_90, %c8_91, %c0_92], %229 {strides = array<i32>} : memref<2x16x64xf32, #tpu.memory_space<vmem>>, vector<1x8x64xf32>,
      %c1_93 = arith.constant 1 : index
      %c0_94 = arith.constant 0 : index
      %c0_95 = arith.constant 0 : index
      %230 = vector.load %arg14[%c1_93, %c0_94, %c0_95] : memref<2x16x64xf32, #tpu.memory_space<vmem>>, vector<1x16x64xf32>
      %231 = vector.shape_cast %230 : vector<1x16x64xf32> to vector<16x64xf32>
      %c0_96 = arith.constant 0 : index
      %c0_97 = arith.constant 0 : index
      %232 = vector.load %arg7[%c0_96, %c0_97] : memref<1x64xf32, #tpu.memory_space<vmem>>, vector<1x64xf32>
      %c0_98 = arith.constant 0 : index
      %c0_99 = arith.constant 0 : index
      %233 = vector.load %arg8[%c0_98, %c0_99] : memref<1x64xf32, #tpu.memory_space<vmem>>, vector<1x64xf32>
      %cst_100 = arith.constant dense<0.000000e+00> : vector<16xf32>
      %234 = vector.multi_reduction <add>, %231, %cst_100 [1] : vector<16x64xf32> to vector<16xf32>
      %235 = vector.shape_cast %234 : vector<16xf32> to vector<16x1xf32>
      %cst_101 = arith.constant 6.400000e+01 : f32
      %236 = vector.broadcast %cst_101 : f32 to vector<16x1xf32>
      %237 = arith.divf %235, %236 : vector<16x1xf32>
      %238 = vector.broadcast %237 : vector<16x1xf32> to vector<16x64xf32>
      %239 = arith.subf %231, %238 : vector<16x64xf32>
      %240 = arith.mulf %239, %239 : vector<16x64xf32>
      %cst_102 = arith.constant dense<0.000000e+00> : vector<16xf32>
      %241 = vector.multi_reduction <add>, %240, %cst_102 [1] : vector<16x64xf32> to vector<16xf32>
      %242 = vector.shape_cast %241 : vector<16xf32> to vector<16x1xf32>
      %cst_103 = arith.constant 6.400000e+01 : f32
      %243 = vector.broadcast %cst_103 : f32 to vector<16x1xf32>
      %244 = arith.divf %242, %243 : vector<16x1xf32>
      %245 = vector.broadcast %237 : vector<16x1xf32> to vector<16x64xf32>
      %246 = arith.subf %231, %245 : vector<16x64xf32>
      %cst_104 = arith.constant 9.99999997E-7 : f32
      %247 = vector.broadcast %cst_104 : f32 to vector<16x1xf32>
      %248 = arith.addf %244, %247 : vector<16x1xf32>
      %249 = math.rsqrt %248 : vector<16x1xf32>
      %250 = vector.broadcast %249 : vector<16x1xf32> to vector<16x64xf32>
      %251 = arith.mulf %246, %250 : vector<16x64xf32>
      %252 = vector.broadcast %232 : vector<1x64xf32> to vector<16x64xf32>
      %253 = arith.mulf %251, %252 : vector<16x64xf32>
      %254 = vector.broadcast %233 : vector<1x64xf32> to vector<16x64xf32>
      %255 = arith.addf %253, %254 : vector<16x64xf32>
      %256 = arith.truncf %255 : vector<16x64xf32> to vector<16x64xbf16>
      %c16 = arith.constant 16 : index
      %c0_105 = arith.constant 0 : index
      %257 = vector.load %arg15[%c16, %c0_105] : memref<32x64xbf16, #tpu.memory_space<vmem>>, vector<16x64xbf16>
      tpu.vector_store %arg15[%c16, %c0_105], %256 {strides = array<i32>} : memref<32x64xbf16, #tpu.memory_space<vmem>>, vector<16x64xbf16>,
      %cst_106 = arith.constant 0.000000e+00 : f32
      %258 = vector.broadcast %cst_106 : f32 to vector<32x64xf32>
      %c0_107 = arith.constant 0 : index
      %c0_108 = arith.constant 0 : index
      %259 = vector.load %arg16[%c0_107, %c0_108] : memref<32x64xf32, #tpu.memory_space<vmem>>, vector<32x64xf32>
      tpu.vector_store %arg16[%c0_107, %c0_108], %258 {strides = array<i32>} : memref<32x64xf32, #tpu.memory_space<vmem>>, vector<32x64xf32>,
    } else {
    }
    %c0 = arith.constant 0 : index
    %c0_1 = arith.constant 0 : index
    %3 = vector.load %arg15[%c0, %c0_1] : memref<32x64xbf16, #tpu.memory_space<vmem>>, vector<32x64xbf16>
    %c0_2 = arith.constant 0 : index
    %c0_3 = arith.constant 0 : index
    %4 = vector.load %arg9[%c0_2, %c0_3] : memref<64x128xbf16, #tpu.memory_space<vmem>>, vector<64x128xbf16>
    %cst = arith.constant dense<0.000000e+00> : vector<32x128xf32>
    %5 = tpu.matmul %3, %4, %cst {dimension_numbers = #tpu.dot_dimension_numbers<[1], [0], [0], [1], [0, 0, 1, 1], [], []>} : vector<32x64xbf16>, vector<64x128xbf16>, vector<32x128xf32> -> vector<32x128xf32>
    %c0_4 = arith.constant 0 : index
    %c0_5 = arith.constant 0 : index
    %6 = vector.load %arg10[%c0_4, %c0_5] : memref<1x128xf32, #tpu.memory_space<vmem>>, vector<1x128xf32>
    %7 = vector.broadcast %6 : vector<1x128xf32> to vector<32x128xf32>
    %8 = arith.addf %5, %7 : vector<32x128xf32>
    %cst_6 = arith.constant 5.000000e-01 : f32
    %9 = vector.broadcast %cst_6 : f32 to vector<32x128xf32>
    %10 = arith.mulf %9, %8 : vector<32x128xf32>
    %cst_7 = arith.constant 0.707106769 : f32
    %11 = vector.broadcast %cst_7 : f32 to vector<32x128xf32>
    %12 = arith.mulf %8, %11 : vector<32x128xf32>
    %13 = math.erf %12 : vector<32x128xf32>
    %cst_8 = arith.constant 1.000000e+00 : f32
    %14 = vector.broadcast %cst_8 : f32 to vector<32x128xf32>
    %15 = arith.addf %14, %13 : vector<32x128xf32>
    %16 = arith.mulf %10, %15 : vector<32x128xf32>
    %c0_9 = arith.constant 0 : index
    %c0_10 = arith.constant 0 : index
    %17 = vector.load %arg16[%c0_9, %c0_10] : memref<32x64xf32, #tpu.memory_space<vmem>>, vector<32x64xf32>
    %18 = arith.truncf %16 : vector<32x128xf32> to vector<32x128xbf16>
    %c0_11 = arith.constant 0 : index
    %c0_12 = arith.constant 0 : index
    %19 = vector.load %arg11[%c0_11, %c0_12] : memref<128x64xbf16, #tpu.memory_space<vmem>>, vector<128x64xbf16>
    %cst_13 = arith.constant dense<0.000000e+00> : vector<32x64xf32>
    %20 = tpu.matmul %18, %19, %cst_13 {dimension_numbers = #tpu.dot_dimension_numbers<[1], [0], [0], [1], [0, 0, 1, 1], [], []>} : vector<32x128xbf16>, vector<128x64xbf16>, vector<32x64xf32> -> vector<32x64xf32>
    %21 = arith.addf %17, %20 : vector<32x64xf32>
    %c0_14 = arith.constant 0 : index
    %c0_15 = arith.constant 0 : index
    %22 = vector.load %arg16[%c0_14, %c0_15] : memref<32x64xf32, #tpu.memory_space<vmem>>, vector<32x64xf32>
    tpu.vector_store %arg16[%c0_14, %c0_15], %21 {strides = array<i32>} : memref<32x64xf32, #tpu.memory_space<vmem>>, vector<32x64xf32>,
    %c1_i32 = arith.constant 1 : i32
    %23 = arith.cmpi eq, %arg1, %c1_i32 : i32
    %24 = arith.extui %23 : i1 to i32
    %c0_i32_16 = arith.constant 0 : i32
    %25 = arith.cmpi ne, %24, %c0_i32_16 : i32
    scf.if %25 {
      %c0_17 = arith.constant 0 : index
      %c0_18 = arith.constant 0 : index
      %c0_19 = arith.constant 0 : index
      %26 = vector.load %arg14[%c0_17, %c0_18, %c0_19] : memref<2x16x64xf32, #tpu.memory_space<vmem>>, vector<2x16x64xf32>
      %c0_20 = arith.constant 0 : index
      %c0_21 = arith.constant 0 : index
      %27 = vector.load %arg16[%c0_20, %c0_21] : memref<32x64xf32, #tpu.memory_space<vmem>>, vector<32x64xf32>
      %28 = vector.shape_cast %27 : vector<32x64xf32> to vector<2x16x64xf32>
      %29 = arith.addf %26, %28 : vector<2x16x64xf32>
      %c0_22 = arith.constant 0 : index
      %c0_23 = arith.constant 0 : index
      %30 = vector.load %arg12[%c0_22, %c0_23] : memref<1x64xf32, #tpu.memory_space<vmem>>, vector<1x64xf32>
      %31 = vector.shape_cast %30 : vector<1x64xf32> to vector<1x1x64xf32>
      %32 = vector.broadcast %31 : vector<1x1x64xf32> to vector<2x16x64xf32>
      %33 = arith.addf %29, %32 : vector<2x16x64xf32>
      %c0_24 = arith.constant 0 : index
      %c0_25 = arith.constant 0 : index
      %c0_26 = arith.constant 0 : index
      %34 = vector.load %arg13[%c0_24, %c0_25, %c0_26] : memref<2x16x64xf32, #tpu.memory_space<vmem>>, vector<2x16x64xf32>
      tpu.vector_store %arg13[%c0_24, %c0_25, %c0_26], %33 {strides = array<i32>} : memref<2x16x64xf32, #tpu.memory_space<vmem>>, vector<2x16x64xf32>,
    } else {
    }
    return
  }
  func.func @transform_0(%arg0: i32, %arg1: i32) -> (i32, i32, i32) {
    %c0_i32 = arith.constant 0 : i32
    %c0_i32_0 = arith.constant 0 : i32
    %c0_i32_1 = arith.constant 0 : i32
    return %arg0, %c0_i32, %c0_i32_0 : i32, i32, i32
  }
  func.func @transform_1(%arg0: i32, %arg1: i32) -> (i32, i32) {
    %c0_i32 = arith.constant 0 : i32
    %c0_i32_0 = arith.constant 0 : i32
    %c0_i32_1 = arith.constant 0 : i32
    return %c0_i32, %c0_i32_0 : i32, i32
  }
  func.func @transform_2(%arg0: i32, %arg1: i32) -> (i32, i32) {
    %c0_i32 = arith.constant 0 : i32
    %c0_i32_0 = arith.constant 0 : i32
    %c0_i32_1 = arith.constant 0 : i32
    return %c0_i32, %c0_i32_0 : i32, i32
  }
  func.func @transform_3(%arg0: i32, %arg1: i32) -> (i32, i32) {
    %c0_i32 = arith.constant 0 : i32
    %c0_i32_0 = arith.constant 0 : i32
    %c0_i32_1 = arith.constant 0 : i32
    return %c0_i32, %c0_i32_0 : i32, i32
  }
  func.func @transform_4(%arg0: i32, %arg1: i32) -> (i32, i32) {
    %c0_i32 = arith.constant 0 : i32
    %c0_i32_0 = arith.constant 0 : i32
    %c0_i32_1 = arith.constant 0 : i32
    return %c0_i32, %c0_i32_0 : i32, i32
  }
  func.func @transform_5(%arg0: i32, %arg1: i32) -> (i32, i32) {
    %c0_i32 = arith.constant 0 : i32
    %c0_i32_0 = arith.constant 0 : i32
    %c0_i32_1 = arith.constant 0 : i32
    return %c0_i32, %c0_i32_0 : i32, i32
  }
  func.func @transform_6(%arg0: i32, %arg1: i32) -> (i32, i32) {
    %c0_i32 = arith.constant 0 : i32
    %c0_i32_0 = arith.constant 0 : i32
    %c0_i32_1 = arith.constant 0 : i32
    return %c0_i32, %c0_i32_0 : i32, i32
  }
  func.func @transform_7(%arg0: i32, %arg1: i32) -> (i32, i32) {
    %c0_i32 = arith.constant 0 : i32
    %c0_i32_0 = arith.constant 0 : i32
    return %c0_i32, %arg1 : i32, i32
  }
  func.func @transform_8(%arg0: i32, %arg1: i32) -> (i32, i32) {
    %c0_i32 = arith.constant 0 : i32
    %c0_i32_0 = arith.constant 0 : i32
    return %c0_i32, %arg1 : i32, i32
  }
  func.func @transform_9(%arg0: i32, %arg1: i32) -> (i32, i32) {
    %c0_i32 = arith.constant 0 : i32
    %c0_i32_0 = arith.constant 0 : i32
    return %arg1, %c0_i32 : i32, i32
  }
  func.func @transform_10(%arg0: i32, %arg1: i32) -> (i32, i32) {
    %c0_i32 = arith.constant 0 : i32
    %c0_i32_0 = arith.constant 0 : i32
    %c0_i32_1 = arith.constant 0 : i32
    return %c0_i32, %c0_i32_0 : i32, i32
  }
  func.func @transform_11(%arg0: i32, %arg1: i32) -> (i32, i32, i32) {
    %c0_i32 = arith.constant 0 : i32
    %c0_i32_0 = arith.constant 0 : i32
    %c0_i32_1 = arith.constant 0 : i32
    return %arg0, %c0_i32, %c0_i32_0 : i32, i32, i32
  }
}

</mosaic_0001>

<bundles_post_ra>
// kernel: tpu_custom_call.1
= control target key start
LH: loop header
LB: loop body
LE: loop exit
PB: predicated region body
PF: predicated region fallthrough
CT: control target
= control target key end

     0   :  { %s8127_s0 = inlined_call_operand.hbm [shape: f32[2,16,64], index: 0, kind: input, shape index: {}]   ;;  %s8128_s1 = inlined_call_operand.hbm [shape: f32[1,64], index: 1, kind: input, shape index: {}]   ;;  %s8129_s2 = inlined_call_operand.hbm [shape: f32[1,64], index: 2, kind: input, shape index: {}]   ;;  %s8130_s3 = inlined_call_operand.hbm [shape: bf16[64,192], index: 3, kind: input, shape index: {}]   ;;  %s8131_s4 = inlined_call_operand.hbm [shape: f32[1,192], index: 4, kind: input, shape index: {}]   ;;  %s8132_s5 = inlined_call_operand.hbm [shape: f32[1,64], index: 5, kind: input, shape index: {}]   ;;  %s8133_s6 = inlined_call_operand.hbm [shape: f32[1,64], index: 6, kind: input, shape index: {}]   ;;  %s8134_s7 = inlined_call_operand.hbm [shape: bf16[64,256], index: 7, kind: input, shape index: {}]   ;;  %s8135_s8 = inlined_call_operand.hbm [shape: f32[1,256], index: 8, kind: input, shape index: {}]   ;;  %s8136_s9 = inlined_call_operand.hbm [shape: bf16[256,64], index: 9, kind: input, shape index: {}]   ;;  %s8137_s10 = inlined_call_operand.hbm [shape: f32[1,64], index: 10, kind: input, shape index: {}]   ;;  %s8138_s11 = inlined_call_operand.hbm [shape: f32[2,16,64], index: 11, kind: output, shape index: {}]  }
   0x1   :  { %8162 = sst [smem:[#allocation38_spill]] %s8128_s1 }
   0x2   :  { %8163 = sst [smem:[#allocation39_spill]] %s8130_s3 }
   0x3   :  { %8164 = sst [smem:[#allocation40_spill]] %s8132_s5 }
   0x4   :  { %8165 = sst [smem:[#allocation41_spill]] %s8134_s7 }
   0x5   :  { %8166 = sst [smem:[#allocation42_spill]] %s8137_s10 }
   0x6   :  { %8167 = sst [smem:[#allocation43_spill]] %s8138_s11 }
   0x7   :  { %16 = vsyncpa [#allocation6], 0 }
   0x8   :  { %17 = vsyncpa [#allocation9], 0 }
   0x9   :  { %18 = vsyncpa [#allocation12], 0 }
   0xa   :  { %19 = vsyncpa [#allocation15], 0 }
   0xb   :  { %20 = vsyncpa [#allocation18], 0 }
   0xc   :  { %22 = vsyncpa [#allocation18 + $0x1], 0 }
   0xd   :  { %23 = vsyncpa [#allocation21], 0 }
   0xe   :  { %25 = vsyncpa [#allocation21 + $0x1], 0 }
   0xf   :  { %26 = vsyncpa [#allocation7], 0  ;;  %s6774_s17 = smov 0   ;;  %s6776_s18 = smov 0  }
  0x10   :  { %s6778_s19 = smov 0   ;;  %s6780_s20 = smov 0  }
  0x11   :  { %s6782_s21 = smov 0   ;;  %s6784_s22 = smov 0  }
  0x12 LB: > { %8168 = sst [smem:[#allocation32_spill]] %s6670_s19  ;;  %s6684_s23 = smov [#allocation8]   ;;  %s6682_s22 = sphi %s6784_s22, %s32_s22   ;;  %s6678_s21 = sphi %s6782_s21, %s8219_s21   ;;  %s6674_s20 = sphi %s6780_s20, %s8218_s20   ;;  %s6670_s19 = sphi %s6778_s19, %s8214_s19   ;;  %s6666_s18 = sphi %s6776_s18, %s8217_s18   ;;  %s6662_s17 = sphi %s6774_s17, %s8216_s17  }
  0x13   : > { %8169 = sst [smem:[#allocation33_spill]] %s6674_s20  ;;  %s356_s24 = sshll.u32 %s6684_s23, 4  ;;  %s357_s24 = int_to_ptr.vmem [resolvable:$true] %s356_s24 }
  0x14   : > { %s6805_s25 = sadd.s32 4294967295, %s6682_s22   ;;  %p5520_p0 = scmp.ge.s32.totalorder %s6682_s22, 1 }
  0x15   : > { %p8140_p1 = scmp.eq.s32.totalorder %s6805_s25, 0  ;;  %p326_p2 = scmp.lt.s32.totalorder %s6682_s22, 3 }
  0x16   : > { %s6685_s27 = smov [#allocation11]   ;;  %s6686_s30 = smov [#allocation14]  }
  0x17   : > { %p6810_p3 = pnand %p5520_p0, %p326_p2  ;;  %s377_s28 = sshll.u32 %s6685_s27, 4  ;;  %s6822_s28 = int_to_ptr.vmem [resolvable:$true] %s377_s28 }
  0x18   : > { %s402_s12 = sshll.u32 %s6686_s30, 4  ;;  %s8173_s1 = sld [smem:[#allocation38_spill]]  ;;  %s6824_s12 = int_to_ptr.vmem [resolvable:$true] %s402_s12 }
  0x19   : > { %s8170_s26 = scalar_select %p6810_p3, 1, 0 }
  0x1a   : > { %p6006_p4 = pneg %p6810_p3 }
  0x1b   : > { %8171 = sst [smem:[#allocation34_spill]] %s8170_s26 }
  0x1c   : > { %p6818_p5 = pnand %p6006_p4, %p8140_p1 }
  0x1e   : > { %s8172_s29 = scalar_select %p6818_p5, 1, 0 }
  0x1f   : > { %s6264_s15 = scalar_lea.hbm %s8173_s1, 16  ;;  %p6834_p7 = pneg %p6818_p5 }
  0x20   : > { %p6265_p6 = scmp.ne.s32.totalorder %s8173_s1, %s6264_s15  ;;  %p6271_p10 = scmp.lt.u32.totalorder %s6264_s15, %s8173_s1 }
  0x21   : > { %s8174_s27 = scalar_select %p6834_p7, 1, 0 }
  0x22   : > { %p6267_p8 = pnand %p6834_p7, %p6265_p6 }
  0x24   : > { %p6268_p9 = pneg %p6267_p8 }
  0x26   : > { %p6273_p11 = pnand %p6271_p10, %p6268_p9 }
  0x28   : > { %6276 = shalt.err (!%p6273_p11)
}
  0x29   : > { %s6277_s13 = scalar_lea.vmem %s357_s24, 16  ;;  %s6284_s14 = scalar_lea.vmem %s357_s24, 32 }
  0x2a   : > { %p6278_p12 = scmp.ne.s32.totalorder %s357_s24, %s6277_s13  ;;  %p6285_p2 = scmp.lt.s32.totalorder %s357_s24, %s357_s24 }
  0x2b   : > { %p6286_p4 = scmp.lt.s32.totalorder %s6284_s14, %s6277_s13 }
  0x2c   : > { %p6280_p13 = pnand %p6278_p12, %p6834_p7 }
  0x2d   : > { %p6287_p1 = por %p6286_p4, %p6285_p2 }
  0x2e   : > { %p6281_p0 = pneg %p6280_p13 }
  0x30   : > { %p6288_p3 = pnand %p6287_p1, %p6281_p0 }
  0x32   : > { %6291 = shalt.err (!%p6288_p3)
}
  0x33   : > { %6012 = dma.hbm_to_vmem [thread:$0]  (!%p6818_p5), %s8173_s1, 16, %s357_s24, [#allocation9]  }
  0x34   : > { %s8175_s3 = sld [smem:[#allocation39_spill]] }
  0x3a   : > { %s6292_s30 = scalar_lea.hbm %s8175_s3, 1024 }
  0x3b   : > { %p6293_p6 = scmp.ne.s32.totalorder %s8175_s3, %s6292_s30  ;;  %p6299_p1 = scmp.lt.u32.totalorder %s6292_s30, %s8175_s3 }
  0x3d   : > { %p6295_p8 = pnand %p6293_p6, %p6834_p7 }
  0x3f   : > { %p6296_p9 = pneg %p6295_p8 }
  0x41   : > { %p6301_p3 = pnand %p6299_p1, %p6296_p9 }
  0x43   : > { %6304 = shalt.err (!%p6301_p3)
}
  0x44   : > { %s6305_s24 = scalar_lea.vmem %s6822_s28, 1024  ;;  %p6313_p13 = scmp.lt.s32.totalorder %s6822_s28, %s6822_s28 }
  0x45   : > { %p6306_p10 = scmp.ne.s32.totalorder %s6822_s28, %s6305_s24  ;;  %p6314_p0 = scmp.lt.s32.totalorder %s6305_s24, %s6305_s24 }
  0x47   : > { %p6308_p11 = pnand %p6306_p10, %p6834_p7  ;;  %p6315_p2 = por %p6314_p0, %p6313_p13 }
  0x49   : > { %p6309_p12 = pneg %p6308_p11 }
  0x4b   : > { %p6316_p4 = pnand %p6315_p2, %p6309_p12 }
  0x4d   : > { %6319 = shalt.err (!%p6316_p4)
}
  0x4e   : > { %s8144_s20 = smov 128   ;;  %s8143_s26 = smov 8  }
  0x4f   : > { %6018 = dma.hbm_to_vmem [thread:$0]  (!%p6818_p5), %s8175_s3, 1024, %s6822_s28, [#allocation12], %s8144_s20, %s8144_s20, %s8143_s26  }
  0x50   : > { %s8176_s5 = sld [smem:[#allocation40_spill]] }
  0x56   : > { %s6320_s30 = scalar_lea.hbm %s8176_s5, 16 }
  0x57   : > { %p6321_p6 = scmp.ne.s32.totalorder %s8176_s5, %s6320_s30  ;;  %p6327_p1 = scmp.lt.u32.totalorder %s6320_s30, %s8176_s5 }
  0x59   : > { %p6323_p8 = pnand %p6321_p6, %p6834_p7 }
  0x5b   : > { %p6324_p9 = pneg %p6323_p8 }
  0x5d   : > { %p6329_p3 = pnand %p6327_p1, %p6324_p9 }
  0x5f   : > { %6332 = shalt.err (!%p6329_p3)
}
  0x60   : > { %s6333_s28 = scalar_lea.vmem %s6824_s12, 16  ;;  %s6340_s16 = scalar_lea.vmem %s6824_s12, 32 }
  0x61   : > { %p6334_p10 = scmp.ne.s32.totalorder %s6824_s12, %s6333_s28  ;;  %p6341_p13 = scmp.lt.s32.totalorder %s6824_s12, %s6824_s12 }
  0x62   : > { %p6342_p0 = scmp.lt.s32.totalorder %s6340_s16, %s6333_s28 }
  0x63   : > { %p6336_p11 = pnand %p6334_p10, %p6834_p7 }
  0x64   : > { %p6343_p2 = por %p6342_p0, %p6341_p13 }
  0x65   : > { %p6337_p12 = pneg %p6336_p11 }
  0x67   : > { %p6344_p4 = pnand %p6343_p2, %p6337_p12 }
  0x69   : > { %6347 = shalt.err (!%p6344_p4)
}
  0x6a   : > { %6024 = dma.hbm_to_vmem [thread:$0]  (!%p6818_p5), %s8176_s5, 16, %s6824_s12, [#allocation15]  }
  0x6b   : > { %s6689_s11 = smov [#allocation22]   ;;  %s8177_s10 = sld [smem:[#allocation42_spill]] }
  0x6c   : > { %s424_s15 = sshll.u32 %s6689_s11, 4  ;;  %s425_s15 = int_to_ptr.vmem [resolvable:$true] %s424_s15 }
  0x71   : > { %s6348_s14 = scalar_lea.hbm %s8177_s10, 16 }
  0x72   : > { %p6349_p6 = scmp.ne.s32.totalorder %s8177_s10, %s6348_s14  ;;  %p6355_p1 = scmp.lt.u32.totalorder %s6348_s14, %s8177_s10 }
  0x74   : > { %p6351_p8 = pnand %p6349_p6, %p6834_p7 }
  0x76   : > { %p6352_p9 = pneg %p6351_p8 }
  0x78   : > { %p6357_p3 = pnand %p6355_p1, %p6352_p9 }
  0x7a   : > { %6360 = shalt.err (!%p6357_p3)
}
  0x7b   : > { %s6361_s12 = scalar_lea.vmem %s425_s15, 16  ;;  %s6368_s1 = scalar_lea.vmem %s425_s15, 32 }
  0x7c   : > { %p6362_p10 = scmp.ne.s32.totalorder %s425_s15, %s6361_s12  ;;  %p6369_p13 = scmp.lt.s32.totalorder %s425_s15, %s425_s15 }
  0x7d   : > { %p6370_p0 = scmp.lt.s32.totalorder %s6368_s1, %s6361_s12 }
  0x7e   : > { %p6364_p11 = pnand %p6362_p10, %p6834_p7 }
  0x7f   : > { %p6371_p2 = por %p6370_p0, %p6369_p13 }
  0x80   : > { %p6365_p12 = pneg %p6364_p11 }
  0x82   : > { %p6372_p4 = pnand %p6371_p2, %p6365_p12 }
  0x84   : > { %6375 = shalt.err (!%p6372_p4)
}
  0x85   : > { %6030 = dma.hbm_to_vmem [thread:$0]  (!%p6818_p5), %s8177_s10, 16, %s425_s15, [#allocation21]  }
  0x86   : > { %s41_s26 = sadd.s32 1, %s6678_s21  ;;  %s203_s30 = sadd.s32 1, %s6670_s19 }
  0x87   : > { %p42_p6 = scmp.ge.s32.totalorder %s41_s26, 2  ;;  %p210_p8 = scmp.ne.s32.totalorder %s6670_s19, %s6666_s18 }
  0x88   : > { %p211_p9 = scmp.eq.s32.totalorder %s6682_s22, 0  ;;  %p216_p1 = scmp.ne.s32.totalorder %s6666_s18, %s6662_s17 }
  0x89   : > { %s8221_s26 = smov (%p42_p6, %s41_s26), 0  ;;  %p8180_p10 = scmp.eq.s32.totalorder %s6805_s25, 0 }
  0x8a   : > { %8178 = sst [smem:[#allocation35_spill]] %s8221_s26  ;;  %p6927_p3 = por %p211_p9, %p210_p8 }
  0x8b   : > { %p6933_p11 = por %p8180_p10, %p216_p1  ;;  %s200_s15 = ssub.s32 %s6678_s21, %s8221_s26 }
  0x8c   : > { %p6049_p12 = scmp.lt.s32.totalorder %s6682_s22, 2  ;;  %p201_p13 = scmp.eq.s32.totalorder %s200_s15, 0 }
  0x8d   : > { %s8181_s14 = scalar_select %p6933_p11, 1, 0 }
  0x8e   : > { %s8146_s24 = sand.u32 1, %s6682_s22   ;;  %s6942_s28 = sand.u32 1, %s6670_s19  }
  0x8f   : > { %8182 = sst [smem:[#allocation36_spill]] %s8181_s14  ;;  %s5530_s16 = sshll.u32 %s6942_s28, 5 }
  0x90   : > { %s6945_s17 = scalar_select %p201_p13, %s6670_s19, %s203_s30  }
  0x91   : > { %s5531_s12 = sshll.u32 %s6678_s21, 6  ;;  %s8184_s7 = sld [smem:[#allocation41_spill]] }
  0x92   : > { %8183 = sst [smem:[#allocation37_spill]] %s6945_s17  ;;  %s439_s20 = scalar_lea.vmem [#allocation17], %s5530_s16 }
  0x93   : > { %s445_s3 = sshll.u32 %s439_s20, 4  ;;  %p6956_p0 = pnand %p6049_p12, %p6927_p3  ;;  %s6960_s3 = int_to_ptr.vmem [resolvable:$true] %s445_s3 }
  0x94   : > { %s6964_s30 = scalar_lea.sflag [#allocation18], %s8146_s24 }
  0x95   : > { %s8185_s15 = scalar_select %p6956_p0, 1, 0 }
  0x96   : > { %p6970_p4 = pneg %p6956_p0 }
  0x97   : > { %s6952_s11 = scalar_lea.hbm %s8184_s7, %s5531_s12  ;;  %s6381_s16 = scalar_lea.hbm %s8184_s7, 1024 }
  0x98   : > { %s6376_s1 = scalar_lea.hbm %s6952_s11, 512  ;;  %p6382_p9 = scmp.lt.u32.totalorder %s6952_s11, %s8184_s7 }
  0x99   : > { %p6377_p2 = scmp.ne.s32.totalorder %s6952_s11, %s6376_s1  ;;  %p6383_p1 = scmp.lt.u32.totalorder %s6381_s16, %s6376_s1 }
  0x9a   : > { %s8186_s12 = scalar_select %p6970_p4, 1, 0 }
  0x9b   : > { %p6379_p6 = pnand %p6970_p4, %p6377_p2  ;;  %p6384_p3 = por %p6383_p1, %p6382_p9 }
  0x9c   : > { %p6385_p10 = scmp.lt.u32.totalorder %s6376_s1, %s6952_s11 }
  0x9d   : > { %p6380_p8 = pneg %p6379_p6 }
  0x9e   : > { %p6386_p12 = por %p6385_p10, %p6384_p3 }
  0xa0   : > { %p6387_p13 = pnand %p6386_p12, %p6380_p8 }
  0xa2   : > { %6390 = shalt.err (!%p6387_p13)
}
  0xa3   : > { %s6391_s24 = scalar_lea.vmem %s6960_s3, 512  ;;  %s6690_s20 = smov [#allocation17]  }
  0xa4   : > { %p6392_p2 = scmp.ne.s32.totalorder %s6960_s3, %s6391_s24  ;;  %s6396_s13 = sshll.u32 %s6690_s20, 4  ;;  %s6397_s13 = int_to_ptr.vmem [resolvable:$false] %s6396_s13 }
  0xa5   : > { %s6398_s5 = scalar_lea.vmem %s6397_s13, 1024  ;;  %p6399_p5 = scmp.lt.s32.totalorder %s6960_s3, %s6397_s13 }
  0xa6   : > { %p6394_p6 = pnand %p6392_p2, %p6970_p4  ;;  %p6400_p7 = scmp.lt.s32.totalorder %s6398_s5, %s6391_s24 }
  0xa8   : > { %p6395_p11 = pneg %p6394_p6  ;;  %p6401_p9 = por %p6400_p7, %p6399_p5 }
  0xaa   : > { %p6402_p1 = pnand %p6401_p9, %p6395_p11 }
  0xac   : > { %6405 = shalt.err (!%p6402_p1)
}
  0xad   : > { %s8156_s1 = smov 64   ;;  %s8157_s16 = smov 4  }
  0xae   : > { %s8187_s23 = smov 128   ;;  %s6693_s20 = smov [#allocation5]  }
  0xaf   : > { %6034 = dma.hbm_to_vmem [thread:$0]  (!%p6956_p0), %s6952_s11, 512, %s6960_s3, %s6964_s30, %s8187_s23, %s8156_s1, %s8157_s16  }
  0xb0   : > { %s342_s7 = sshll.u32 %s6693_s20, 4  ;;  %s6406_s5 = scalar_lea.hbm %s8127_s0, 512  ;;  %s343_s7 = int_to_ptr.vmem [resolvable:$true] %s342_s7 }
  0xb1   : > { %p6407_p5 = scmp.ne.s32.totalorder %s8127_s0, %s6406_s5  ;;  %p8188_p7 = scmp.ne.s32.totalorder %s8174_s27, 0 }
  0xb2   : > { %p6413_p3 = scmp.lt.u32.totalorder %s6406_s5, %s8127_s0 }
  0xb3   : > { %p6409_p11 = pnand %p6407_p5, %p8188_p7 }
  0xb5   : > { %p6410_p8 = pneg %p6409_p11 }
  0xb7   : > { %p6415_p10 = pnand %p6413_p3, %p6410_p8 }
  0xb9   : > { %6418 = shalt.err (!%p6415_p10)
}
  0xba   : > { %s6419_s3 = scalar_lea.vmem %s343_s7, 512  ;;  %p6427_p6 = scmp.lt.s32.totalorder %s343_s7, %s343_s7 }
  0xbb   : > { %p6420_p12 = scmp.ne.s32.totalorder %s343_s7, %s6419_s3  ;;  %p6428_p9 = scmp.lt.s32.totalorder %s6419_s3, %s6419_s3 }
  0xbd   : > { %p6422_p13 = pnand %p6420_p12, %p8188_p7  ;;  %p6429_p1 = por %p6428_p9, %p6427_p6 }
  0xbf   : > { %p6423_p2 = pneg %p6422_p13 }
  0xc1   : > { %p6430_p0 = pnand %p6429_p1, %p6423_p2 }
  0xc3   : > { %6433 = shalt.err (!%p6430_p0)
}
  0xc4   : > { %p8189_p5 = scmp.ne.s32.totalorder %s8172_s29, 0  ;;  %s8190_s10 = smov 8  }
  0xc5   : > { %s6694_s17 = smov [#allocation10]   ;;  %s6695_s20 = smov [#allocation13]  }
  0xc6   : > { %6009 = dma.hbm_to_vmem [thread:$0]  (!%p8189_p5), %s8127_s0, 512, %s343_s7, [#allocation6], %s8187_s23, %s8187_s23, %s8190_s10  }
  0xc7   : > { %s367_s11 = sshll.u32 %s6694_s17, 4  ;;  %s391_s13 = sshll.u32 %s6695_s20, 4  ;;  %s368_s11 = int_to_ptr.vmem [resolvable:$true] %s367_s11  ;;  %s392_s13 = int_to_ptr.vmem [resolvable:$true] %s391_s13 }
  0xc8   : > { %s6434_s3 = scalar_lea.hbm %s8129_s2, 16 }
  0xc9   : > { %p6435_p0 = scmp.ne.s32.totalorder %s8129_s2, %s6434_s3  ;;  %p6441_p3 = scmp.lt.u32.totalorder %s6434_s3, %s8129_s2 }
  0xcb   : > { %p6437_p11 = pnand %p6435_p0, %p8188_p7 }
  0xcd   : > { %p6438_p8 = pneg %p6437_p11 }
  0xcf   : > { %p6443_p10 = pnand %p6441_p3, %p6438_p8 }
  0xd1   : > { %6446 = shalt.err (!%p6443_p10)
}
  0xd2   : > { %s6447_s7 = scalar_lea.vmem %s368_s11, 16  ;;  %s6454_s23 = scalar_lea.vmem %s368_s11, 32 }
  0xd3   : > { %p6448_p12 = scmp.ne.s32.totalorder %s368_s11, %s6447_s7  ;;  %p6455_p6 = scmp.lt.s32.totalorder %s368_s11, %s368_s11 }
  0xd4   : > { %p6456_p9 = scmp.lt.s32.totalorder %s6454_s23, %s6447_s7 }
  0xd5   : > { %p6450_p13 = pnand %p6448_p12, %p8188_p7 }
  0xd6   : > { %p6457_p1 = por %p6456_p9, %p6455_p6 }
  0xd7   : > { %p6451_p2 = pneg %p6450_p13 }
  0xd9   : > { %p6458_p4 = pnand %p6457_p1, %p6451_p2 }
  0xdb   : > { %6461 = shalt.err (!%p6458_p4)
}
  0xdc   : > { %6015 = dma.hbm_to_vmem [thread:$0]  (!%p8189_p5), %s8129_s2, 16, %s368_s11, [#allocation9]  }
  0xdd   : > { %s6462_s26 = scalar_lea.hbm %s8131_s4, 32 }
  0xde   : > { %p6463_p0 = scmp.ne.s32.totalorder %s8131_s4, %s6462_s26  ;;  %p6469_p4 = scmp.lt.u32.totalorder %s6462_s26, %s8131_s4 }
  0xe0   : > { %p6465_p11 = pnand %p6463_p0, %p8188_p7 }
  0xe2   : > { %p6466_p8 = pneg %p6465_p11 }
  0xe4   : > { %p6471_p3 = pnand %p6469_p4, %p6466_p8 }
  0xe6   : > { %6474 = shalt.err (!%p6471_p3)
}
  0xe7   : > { %s6475_s3 = scalar_lea.vmem %s392_s13, 32  ;;  %p6483_p2 = scmp.lt.s32.totalorder %s392_s13, %s392_s13 }
  0xe8   : > { %p6476_p10 = scmp.ne.s32.totalorder %s392_s13, %s6475_s3  ;;  %p6484_p6 = scmp.lt.s32.totalorder %s6475_s3, %s6475_s3 }
  0xea   : > { %p6478_p12 = pnand %p6476_p10, %p8188_p7  ;;  %p6485_p9 = por %p6484_p6, %p6483_p2 }
  0xec   : > { %p6479_p13 = pneg %p6478_p12 }
  0xee   : > { %p6486_p1 = pnand %p6485_p9, %p6479_p13 }
  0xf0   : > { %6489 = shalt.err (!%p6486_p1)
}
  0xf1   : > { %6021 = dma.hbm_to_vmem [thread:$0]  (!%p8189_p5), %s8131_s4, 32, %s392_s13, [#allocation12]  }
  0xf2   : > { %s6696_s7 = smov [#allocation16]   ;;  %s5532_s1 = sshll.u32 %s6678_s21, 4 }
  0xf3   : > { %s413_s23 = sshll.u32 %s6696_s7, 4  ;;  %s6490_s10 = scalar_lea.hbm %s8133_s6, 16  ;;  %s414_s23 = int_to_ptr.vmem [resolvable:$true] %s413_s23 }
  0xf4   : > { %p6491_p0 = scmp.ne.s32.totalorder %s8133_s6, %s6490_s10  ;;  %p6497_p4 = scmp.lt.u32.totalorder %s6490_s10, %s8133_s6 }
  0xf6   : > { %p6493_p11 = pnand %p6491_p0, %p8188_p7 }
  0xf8   : > { %p6494_p8 = pneg %p6493_p11 }
  0xfa   : > { %p6499_p3 = pnand %p6497_p4, %p6494_p8 }
  0xfc   : > { %6502 = shalt.err (!%p6499_p3)
}
  0xfd   : > { %s6503_s13 = scalar_lea.vmem %s414_s23, 16  ;;  %s6510_s5 = scalar_lea.vmem %s414_s23, 32 }
  0xfe   : > { %p6504_p10 = scmp.ne.s32.totalorder %s414_s23, %s6503_s13  ;;  %p6511_p2 = scmp.lt.s32.totalorder %s414_s23, %s414_s23 }
  0xff   : > { %p6512_p6 = scmp.lt.s32.totalorder %s6510_s5, %s6503_s13 }
 0x100   : > { %p6506_p12 = pnand %p6504_p10, %p8188_p7 }
 0x101   : > { %p6513_p9 = por %p6512_p6, %p6511_p2 }
 0x102   : > { %p6507_p13 = pneg %p6506_p12 }
 0x104   : > { %p6514_p1 = pnand %p6513_p9, %p6507_p13 }
 0x106   : > { %6517 = shalt.err (!%p6514_p1)
}
 0x107   : > { %6027 = dma.hbm_to_vmem [thread:$0]  (!%p8189_p5), %s8133_s6, 16, %s414_s23, [#allocation15]  }
 0x108   : > { %s7076_s27 = scalar_lea.hbm %s8135_s8, %s5532_s1  ;;  %s458_s16 = scalar_lea.vmem [#allocation19], %s6942_s28 }
 0x109   : > { %s465_s14 = sshll.u32 %s458_s16, 4  ;;  %s6518_s10 = scalar_lea.hbm %s7076_s27, 16  ;;  %s466_s14 = int_to_ptr.vmem [resolvable:$true] %s465_s14 }
 0x10a   : > { %p6519_p7 = scmp.ne.s32.totalorder %s7076_s27, %s6518_s10  ;;  %p8191_p0 = scmp.ne.s32.totalorder %s8186_s12, 0 }
 0x10b   : > { %s6523_s23 = scalar_lea.hbm %s8135_s8, 32  ;;  %p6524_p5 = scmp.lt.u32.totalorder %s7076_s27, %s8135_s8 }
 0x10c   : > { %p6521_p11 = pnand %p6519_p7, %p8191_p0  ;;  %p6525_p4 = scmp.lt.u32.totalorder %s6523_s23, %s6518_s10 }
 0x10d   : > { %p6527_p10 = scmp.lt.u32.totalorder %s6518_s10, %s7076_s27 }
 0x10e   : > { %p6522_p8 = pneg %p6521_p11  ;;  %p6526_p3 = por %p6525_p4, %p6524_p5 }
 0x110   : > { %p6528_p12 = por %p6527_p10, %p6526_p3 }
 0x112   : > { %p6529_p13 = pnand %p6528_p12, %p6522_p8 }
 0x114   : > { %6532 = shalt.err (!%p6529_p13)
}
 0x115   : > { %s6533_s1 = scalar_lea.vmem %s466_s14, 16  ;;  %s6697_s24 = smov [#allocation19]  }
 0x116   : > { %p6534_p2 = scmp.ne.s32.totalorder %s466_s14, %s6533_s1  ;;  %s6538_s13 = sshll.u32 %s6697_s24, 4  ;;  %s6539_s13 = int_to_ptr.vmem [resolvable:$false] %s6538_s13 }
 0x117   : > { %s6540_s5 = scalar_lea.vmem %s6539_s13, 32  ;;  %p6541_p1 = scmp.lt.s32.totalorder %s466_s14, %s6539_s13 }
 0x118   : > { %p6536_p6 = pnand %p6534_p2, %p8191_p0  ;;  %p6542_p7 = scmp.lt.s32.totalorder %s6540_s5, %s6533_s1 }
 0x11a   : > { %p6537_p9 = pneg %p6536_p6  ;;  %p6543_p11 = por %p6542_p7, %p6541_p1 }
 0x11c   : > { %p6544_p4 = pnand %p6543_p11, %p6537_p9 }
 0x11e   : > { %6547 = shalt.err (!%p6544_p4)
}
 0x11f   : > { %p8192_p5 = scmp.ne.s32.totalorder %s8185_s15, 0  ;;  %s5533_s3 = sshll.u32 %s6942_s28, 6 }
 0x120   : > { %s5659_s11 = sshll.u32 %s6678_s21, 10  ;;  %s476_s10 = scalar_lea.vmem [#allocation20], %s5533_s3 }
 0x121   : > { %6037 = dma.hbm_to_vmem [thread:$0]  (!%p8192_p5), %s7076_s27, 16, %s466_s14, %s6964_s30  }
 0x122   : > { %s7102_s16 = scalar_lea.hbm %s8136_s9, %s5659_s11  ;;  %s483_s29 = sshll.u32 %s476_s10, 4  ;;  %s7104_s29 = int_to_ptr.vmem [resolvable:$true] %s483_s29 }
 0x123   : > { %s8193_s26 = sand.u32 1, %s6682_s22   ;;  %s6548_s17 = scalar_lea.hbm %s7102_s16, 1024 }
 0x124   : > { %s7108_s23 = scalar_lea.sflag [#allocation21], %s8193_s26  ;;  %p6549_p8 = scmp.ne.s32.totalorder %s7102_s16, %s6548_s17 }
 0x125   : > { %s6553_s27 = scalar_lea.hbm %s8136_s9, 2048  ;;  %p6554_p12 = scmp.lt.u32.totalorder %s7102_s16, %s8136_s9 }
 0x126   : > { %p6551_p3 = pnand %p6549_p8, %p8191_p0  ;;  %p6555_p13 = scmp.lt.u32.totalorder %s6553_s27, %s6548_s17 }
 0x127   : > { %p6557_p6 = scmp.lt.u32.totalorder %s6548_s17, %s7102_s16 }
 0x128   : > { %p6552_p10 = pneg %p6551_p3  ;;  %p6556_p2 = por %p6555_p13, %p6554_p12 }
 0x12a   : > { %p6558_p9 = por %p6557_p6, %p6556_p2 }
 0x12c   : > { %p6559_p1 = pnand %p6558_p9, %p6552_p10 }
 0x12e   : > { %6562 = shalt.err (!%p6559_p1)
}
 0x12f   : > { %s6563_s1 = scalar_lea.vmem %s7104_s29, 1024  ;;  %s6698_s24 = smov [#allocation20]  }
 0x130   : > { %p6564_p7 = scmp.ne.s32.totalorder %s7104_s29, %s6563_s1  ;;  %s6568_s13 = sshll.u32 %s6698_s24, 4  ;;  %s6569_s13 = int_to_ptr.vmem [resolvable:$false] %s6568_s13 }
 0x131   : > { %s6570_s5 = scalar_lea.vmem %s6569_s13, 2048  ;;  %p6571_p8 = scmp.lt.s32.totalorder %s7104_s29, %s6569_s13 }
 0x132   : > { %p6566_p11 = pnand %p6564_p7, %p8191_p0  ;;  %p6572_p3 = scmp.lt.s32.totalorder %s6570_s5, %s6563_s1 }
 0x134   : > { %p6567_p4 = pneg %p6566_p11  ;;  %p6573_p12 = por %p6572_p3, %p6571_p8 }
 0x136   : > { %p6574_p13 = pnand %p6573_p12, %p6567_p4 }
 0x138   : > { %6577 = shalt.err (!%p6574_p13)
}
 0x139   : > { %s8194_s3 = smov 4   ;;  %s8195_s11 = smov 64  }
 0x13a   : > { %6040 = dma.hbm_to_vmem [thread:$0]  (!%p8192_p5), %s7102_s16, 1024, %s7104_s29, %s7108_s23, %s8195_s11, %s8195_s11, %s8194_s3  }
 0x13b   : > { %s8196_s12 = sld [smem:[#allocation34_spill]] }
 0x141   : > { %p8197_p0 = scmp.ne.s32.totalorder %s8196_s12, 0 }
 0x142   : > { %p8198_p10 = scmp.eq.s32.totalorder (!%p8197_p0), %s6805_s25, 0 }
 0x143   : > { %495 = sbr.rel (%p8197_p0) target bundleno = 5111 (0x13f7), region = 64 }
 0x14a   : > { %6629 = dma.done.wait (%p8198_p10), [#allocation6], 512   ;;  %p8199_p2 = pmov %p8198_p10 }
 0x14c   : > { %6631 = vsyncadd (%p8199_p2), [#allocation6], 4294966784  ;;  %p8200_p6 = pmov %p8199_p2 }
 0x14d   : > { %p8201_p9 = pmov %p8199_p2 }
 0x14e   : > { %6633 = dma.done.wait (%p8200_p6), [#allocation9], 32  }
 0x14f   : > { %6635 = vsyncadd (%p8201_p9), [#allocation9], 4294967264  ;;  %p8202_p1 = pmov %p8199_p2 }
 0x151   : > { %6637 = dma.done.wait (%p8202_p1), [#allocation12], 1056   ;;  %p8203_p5 = pmov %p8202_p1 }
 0x152   : > { %p8204_p7 = pmov %p8202_p1 }
 0x153   : > { %6639 = vsyncadd (%p8203_p5), [#allocation12], 4294966240 }
 0x154   : > { %6641 = dma.done.wait (%p8204_p7), [#allocation15], 32   ;;  %p8205_p11 = pmov %p8202_p1 }
 0x155   : > { %s8206_s15 = sld [smem:[#allocation36_spill]]  ;;  %s525_s19 = sand.u32 1, %s6805_s25  }
 0x156   : > { %6643 = vsyncadd (%p8205_p11), [#allocation15], 4294967264  ;;  %s7155_s7 = sand.u32 1, %s6666_s18   ;;  %s526_s10 = scalar_lea.sflag [#allocation18], %s525_s19 }
 0x157   : > { %s5544_s16 = sshll.u32 %s7155_s7, 5 }
 0x158   : > { %s7158_s29 = scalar_lea.vmem [#allocation17], %s5544_s16 }
 0x15b   : > { %p8207_p4 = scmp.ne.s32.totalorder %s8206_s15, 0 }
 0x15d   : > { %6645 = dma.done.wait (%p8207_p4), %s526_s10, 528  }
 0x15e   : > { %6647 = vsyncadd (%p8207_p4), %s526_s10, 4294966768  ;;  %s5545_s26 = sshll.u32 %s7155_s7, 6  ;;  %s537_s23 = scalar_lea.vmem [#allocation19], %s7155_s7 }
 0x15f   : > { %s543_s17 = scalar_lea.sflag [#allocation21], %s525_s19  ;;  %s7166_s28 = scalar_lea.vmem [#allocation20], %s5545_s26 }
 0x160   : > { %6649 = dma.done.wait (%p8207_p4), %s543_s17, 1024  }
 0x161   : > { %6651 = vsyncadd (%p8207_p4), %s543_s17, 4294966272  ;;  %p8208_p8 = pmov %p8202_p1 }
 0x162   : > { %p8209_p3 = pmov %p8202_p1 }
 0x163   : > { %6653 = dma.done.wait (%p8208_p8), [#allocation21], 16  }
 0x164   : > { %6655 = vsyncadd (%p8209_p3), [#allocation21], 4294967280  ;;  %s8210_s30 = sld [smem:[#allocation33_spill]] }
 0x16a   : > { %p5547_p12 = scmp.ne.s32.totalorder %s8210_s30, 0 }
 0x16b   : > { %v601_v0 = vld [vmem:[#allocation5] sm:$0xff] (!%p5547_p12)  ;;  %vm605_vm0 = vcmask (!%p5547_p12), 523264   ;;  %v602_v1 = vld [vmem:[#allocation5 + $0x8] sm:$0xff] (!%p5547_p12)  ;;  %v6699_v3 = vmov (!%p5547_p12), 0.0   ;;  %v6140_v18 = vld [vmem:[#allocation11 + $0x10] ss:$8 sps:$4 sm:$0xff] (!%p5547_p12)   ;;  %v660_v41 = vlaneseq (!%p5547_p12) }
 0x16c   : > { %600 = sbr.rel (%p5547_p12) target bundleno = 4595 (0x11f3), region = 112  ;;  %v606_v2 = vsel (!%p5547_p12), %vm605_vm0, %v601_v0, 0.0  ;;  %5046 = vst.msk [vmem:[#allocation4] sm:$0xff] (!%p5547_p12), %vm605_vm0, %v6699_v3  ;;  %5047 = vst.msk [vmem:[#allocation4 + $0x8] sm:$0xff] (!%p5547_p12), %vm605_vm0, %v6699_v3  ;;  %5740 = vmatprep.subr.bf16.mxu1 (!%p5547_p12), %v6699_v3  ;;  %v609_v4 = vsel (!%p5547_p12), %vm605_vm0, %v602_v1, 0.0  ;;  %v6700_v19 = vmov (!%p5547_p12), 0  }
 0x16d   : > { %5048 = vst.msk [vmem:[#allocation4 + $0x10] sm:$0xff] (!%p5547_p12), %vm605_vm0, %v6699_v3  ;;  %5049 = vst.msk [vmem:[#allocation4 + $0x18] sm:$0xff] (!%p5547_p12), %vm605_vm0, %v6699_v3  ;;  %607 = vadd.xlane.f32.xlu0 (!%p5547_p12), %v606_v2  ;;  %v6135_v15 = vld [vmem:[#allocation11 + $0x4] ss:$8 sps:$4 sm:$0xff] (!%p5547_p12)   ;;  %v6137_v16 = vld [vmem:[#allocation11] ss:$8 sps:$4 sm:$0xff] (!%p5547_p12)   ;;  %745 = vmatprep.mubr.bf16.mxu0 (!%p5547_p12), %v6700_v19 }
 0x16e   : > { %v6138_v17 = vld [vmem:[#allocation11 + $0x14] ss:$8 sps:$4 sm:$0xff] (!%p5547_p12)   ;;  %713 = vmatprep.subr.bf16.mxu0 (!%p5547_p12), %v6135_v15  ;;  %v6141_v20 = vld [vmem:[#allocation11 + $0x24] ss:$8 sps:$4 sm:$0xff] (!%p5547_p12)   ;;  %v6143_v21 = vld [vmem:[#allocation11 + $0x20] ss:$8 sps:$4 sm:$0xff] (!%p5547_p12)  }
 0x16f   : > { %714 = vmatpush1.bf16.msra.mxu0 (!%p5547_p12), %v6137_v16  ;;  %v6144_v22 = vld [vmem:[#allocation11 + $0x34] ss:$8 sps:$4 sm:$0xff] (!%p5547_p12)   ;;  %v6146_v23 = vld [vmem:[#allocation11 + $0x30] ss:$8 sps:$4 sm:$0xff] (!%p5547_p12)   ;;  %v7193_v42 = vshrl.u32 (!%p5547_p12), %v660_v41, 7  ;;  %s6701_s27 = smov (!%p5547_p12), 96  }
 0x170   : > { %715 = vmatprep.subr.bf16.mxu0 (!%p5547_p12), %v6138_v17  ;;  %v5548_v32 = vld [vmem:[#allocation8] ss:$0 sm:$0xff] (!%p5547_p12)  ;;  %v5549_v36 = vld [vmem:[#allocation10] ss:$0 sm:$0xff] (!%p5547_p12)  ;;  %v7196_v44 = vld [vmem:[#allocation13] sm:$0x3] (!%p5547_p12) }
 0x171   : > { %610 = vadd.xlane.f32.xlu0 (!%p5547_p12), %v609_v4  ;;  %v662_v43 = vsub.s32 (!%p5547_p12), 0, %v7193_v42  ;;  %s6702_s14 = smov (!%p5547_p12), 112   ;;  %s6703_s20 = smov (!%p5547_p12), 80   ;;  %vm6705_vm1 = vmmov (!%p5547_p12), 0   ;;  %v6706_v63 = vmov (!%p5547_p12), 1983009808  }
 0x172   : > { %s6704_s1 = smov (!%p5547_p12), 64   ;;  %5742 = vmatprep.mubr.msk.bf16.mxu1 (!%p5547_p12), %vm6705_vm1, %v6699_v3  ;;  %vm1664_vm2 = vcmask (!%p5547_p12), 130048   ;;  %s6708_s24 = smov (!%p5547_p12), 16   ;;  %vm2218_vm3 = vcmask (!%p5547_p12), 261120   ;;  %vm2220_vm4 = vcmask (!%p5547_p12), 392192  }
 0x173   : > { %716 = vmatpush1.bf16.msra.mxu0 %v6140_v18  ;;  %v663_v45 = vrot.slane %v7196_v44, %v662_v43  ;;  %s6709_s13 = smov 32   ;;  %s6710_s5 = smov 48  }
 0x174   : > { %717 = vmatprep.subr.bf16.mxu0 %v6141_v20 }
 0x177   : > { %718 = vmatpush1.bf16.msra.mxu0 %v6143_v21 }
 0x178   : > { %719 = vmatprep.subr.bf16.mxu0 %v6144_v22 }
 0x17b   : > { %720 = vmatpush1.bf16.msra.mxu0 %v6146_v23 }
 0x17c   : > { %5752 = vmatprep.subr.bf16.mxu0 %v6699_v3 }
 0x1fa   : > { %v608_v5 = vpop.xlane.xlu0 %607 }
 0x1fb   : > { %v613_v6 = vmul.f32 0.015625, %v608_v5  ;;  %v6707_v5 = vmov 1934713408  }
 0x1fd   : > { %v615_v7 = vsub.f32 %v601_v0, %v613_v6  ;;  %v781_v0 = vunpack.c.l.s4 %v6706_v63  ;;  %v813_v6 = vunpack.c.l.s4 %v6707_v5 }
 0x1fe   : > { %v611_v8 = vpop.xlane.xlu0 %610 }
 0x1ff   : > { %v614_v9 = vmul.f32 0.015625, %v611_v8  ;;  %v617_v10 = vmul.f32 %v615_v7, %v615_v7  ;;  %v782_v4 = vunpack.c.0.s8 %v781_v0 }
 0x201   : > { %v616_v11 = vsub.f32 %v602_v1, %v614_v9  ;;  %v619_v12 = vsel %vm605_vm0, %v617_v10, 0.0  ;;  %v7242_v9 = vsub.s32 %v782_v4, %v7193_v42 }
 0x202   : > { %620 = vadd.xlane.f32.xlu1 %v619_v12  ;;  %v814_v12 = vunpack.c.0.s8 %v813_v6 }
 0x203   : > { %v618_v13 = vmul.f32 %v616_v11, %v616_v11 }
 0x205   : > { %v622_v14 = vsel %vm605_vm0, %v618_v13, 0.0 }
 0x206   : > { %623 = vadd.xlane.f32.xlu1 %v622_v14 }
 0x28f   : > { %v621_v24 = vpop.xlane.xlu1 %620 }
 0x290   : > { %v625_v25 = vmul.f32 0.015625, %v621_v24  ;;  %v7249_v24 = vsub.s32 %v814_v12, %v7193_v42 }
 0x292   : > { %v627_v26 = vadd.f32 1e-06, %v625_v25 }
 0x293   : > { %v624_v27 = vpop.xlane.xlu1 %623 }
 0x294   : > { %6159 = vrsqrt.f32 %v627_v26  ;;  %v626_v28 = vmul.f32 0.015625, %v624_v27 }
 0x296   : > { %v628_v29 = vadd.f32 1e-06, %v626_v28 }
 0x298   : > { %6161 = vrsqrt.f32 %v628_v29 }
 0x29e   : > { %v6160_v30 = vpop.eup %6159 }
 0x29f   : > { %v631_v31 = vmul.f32 %v6160_v30, %v615_v7 }
 0x2a1   : > { %v639_v35 = vmul.f32 %v5548_v32, %v631_v31 }
 0x2a2   : > { %v6162_v33 = vpop.eup %6161 }
 0x2a3   : > { %v632_v34 = vmul.f32 %v6162_v33, %v616_v11  ;;  %v647_v38 = vadd.f32 %v5549_v36, %v639_v35 }
 0x2a5   : > { %v640_v37 = vmul.f32 %v5548_v32, %v632_v34 }
 0x2a7   : > { %v648_v39 = vadd.f32 %v5549_v36, %v640_v37 }
 0x2a9   : > { %v649_v40 = vpack.c.bf16 %v648_v39, %v647_v38 }
 0x2ab   : > { %5558 = vmatmul.mubr.msk.bf16.vlgmr.msra.gmra.mrb[0].mxu0 %vm605_vm0, %v649_v40 }
 0x2ac   : > { %5754 = vmatprep.mubr.msk.bf16.mxu0 %vm6705_vm1, %v6699_v3 }
 0x37e   : > { %v747_v46 = vpop.f32.mrb[0].mxu0 }
 0x37f   : > { %v748_v47 = vadd.f32 %v747_v46, %v663_v45  ;;  %v7201_v48 = vpop.f32.mrb[1].mxu0 }
 0x380   : > { %v751_v49 = vpop.f32.mrb[2].mxu0 }
 0x381   : > { %v7203_v50 = vpop.f32.mrb[3].mxu0  ;;  %1060 = vrot.lane.b32.xlu1 %v748_v47, %s6701_s27  ;;  %1056 = vrot.lane.b32.xlu0 %v748_v47, %s6702_s14  ;;  %v752_v51 = vadd.f32 %v751_v49, %v663_v45  ;;  %v7211_v52 = vmul.f32 0.25, %v748_v47 }
 0x383   : > { %v7217_v53 = vmul.f32 0.25, %v752_v51 }
 0x385   : > { %1058 = vrot.lane.b32.xlu1 %v752_v51, %s6702_s14  ;;  %1064 = vrot.lane.b32.xlu0 %v748_v47, %s6703_s20 }
 0x389   : > { %1062 = vrot.lane.b32.xlu1 %v752_v51, %s6701_s27  ;;  %1068 = vrot.lane.b32.xlu0 %v748_v47, %s6704_s1 }
 0x38d   : > { %1066 = vrot.lane.b32.xlu1 %v752_v51, %s6703_s20  ;;  %760 = vrot.lane.b32.xlu0 %v7211_v52, %s6702_s14 }
 0x391   : > { %1070 = vrot.lane.b32.xlu1 %v752_v51, %s6704_s1 }
 0x395   : > { %762 = vrot.lane.b32.xlu1 %v7217_v53, %s6702_s14 }
 0x3f3   : > { %v1061_v54 = vpop.permute.xlu1 %1060  ;;  %v1057_v55 = vpop.permute.xlu0 %1056 }
 0x3f4   : > { %1072 = vrot.lane.b32.xlu0 %v1057_v55, %s6704_s1 }
 0x3f7   : > { %v1059_v56 = vpop.permute.xlu1 %1058  ;;  %v1065_v57 = vpop.permute.xlu0 %1064 }
 0x3f8   : > { %1074 = vrot.lane.b32.xlu1 %v1059_v56, %s6704_s1  ;;  %1076 = vrot.lane.b32.xlu0 %v1061_v54, %s6704_s1 }
 0x3fb   : > { %v1063_v58 = vpop.permute.xlu1 %1062  ;;  %v1069_v60 = vpop.permute.xlu0 %1068 }
 0x3fc   : > { %1078 = vrot.lane.b32.xlu1 %v1063_v58, %s6704_s1  ;;  %1080 = vrot.lane.b32.xlu0 %v1065_v57, %s6704_s1 }
 0x3ff   : > { %v1067_v59 = vpop.permute.xlu1 %1066  ;;  %v761_v62 = vpop.permute.xlu0 %760 }
 0x400   : > { %1082 = vrot.lane.b32.xlu1 %v1067_v59, %s6704_s1  ;;  %766 = vrot.lane.b32.xlu0 %v7211_v52, %s6701_s27 }
 0x403   : > { %v1071_v61 = vpop.permute.xlu1 %1070 }
 0x404   : > { %768 = vrot.lane.b32.xlu1 %v7217_v53, %s6701_s27  ;;  %772 = vrot.lane.b32.xlu0 %v7211_v52, %s6703_s20 }
 0x407   : > { %v7239_v1 = vpop.permute.xlu1 %762 }
 0x408   : > { %774 = vrot.lane.b32.xlu1 %v7217_v53, %s6703_s20 }
 0x466   : > { %v1073_v2 = vpop.permute.xlu0 %1072 }
 0x46a   : > { %v1075_v7 = vpop.permute.xlu1 %1074  ;;  %v1077_v8 = vpop.permute.xlu0 %1076 }
 0x46b   : > { %v1092_v10 = vcombine.low %v1069_v60, %v1077_v8  ;;  %v1093_v11 = vcombine.high %v1069_v60, %v1077_v8 }
 0x46d   : > { %v1100_v17 = vrot.slane %v1092_v10, %v7242_v9  ;;  %v1107_v18 = vrot.slane %v1093_v11, %v7242_v9 }
 0x46e   : > { %v1079_v13 = vpop.permute.xlu1 %1078  ;;  %v1081_v14 = vpop.permute.xlu0 %1080 }
 0x46f   : > { %v1108_v15 = vcombine.low %v1073_v2, %v1081_v14  ;;  %v1109_v16 = vcombine.high %v1073_v2, %v1081_v14  ;;  %v1160_v20 = vcombine.low %v1071_v61, %v1079_v13  ;;  %v1161_v21 = vcombine.high %v1071_v61, %v1079_v13 }
 0x471   : > { %v1116_v22 = vrot.slane %v1108_v15, %v7242_v9  ;;  %v1123_v23 = vrot.slane %v1109_v16, %v7242_v9  ;;  %v1168_v33 = vrot.slane %v1160_v20, %v7242_v9  ;;  %v1175_v34 = vrot.slane %v1161_v21, %v7242_v9 }
 0x472   : > { %v1083_v25 = vpop.permute.xlu1 %1082  ;;  %v767_v26 = vpop.permute.xlu0 %766 }
 0x473   : > { %v1124_v27 = vcombine.low %v1100_v17, %v1116_v22  ;;  %v1125_v28 = vcombine.high %v1100_v17, %v1116_v22  ;;  %v1140_v29 = vcombine.low %v1107_v18, %v1123_v23  ;;  %v1141_v30 = vcombine.high %v1107_v18, %v1123_v23 }
 0x474   : > { %v1176_v31 = vcombine.low %v1075_v7, %v1083_v25  ;;  %v1177_v32 = vcombine.high %v1075_v7, %v1083_v25  ;;  %v778_v35 = vcombine.low %v7211_v52, %v767_v26  ;;  %v779_v36 = vcombine.high %v7211_v52, %v767_v26 }
 0x475   : > { %v1132_v37 = vrot.slane %v1124_v27, %v7249_v24  ;;  %v1139_v38 = vrot.slane %v1125_v28, %v7249_v24  ;;  %v1148_v46 = vrot.slane %v1140_v29, %v7249_v24  ;;  %v1155_v47 = vrot.slane %v1141_v30, %v7249_v24 }
 0x476   : > { %v1184_v39 = vrot.slane %v1176_v31, %v7242_v9  ;;  %v1191_v40 = vrot.slane %v1177_v32, %v7242_v9  ;;  %v769_v41 = vpop.permute.xlu1 %768  ;;  %v773_v45 = vpop.permute.xlu0 %772  ;;  %v786_v52 = vrot.slane %v778_v35, %v7242_v9  ;;  %v793_v59 = vrot.slane %v779_v36, %v7242_v9 }
 0x477   : > { %v794_v56 = vcombine.low %v761_v62, %v773_v45  ;;  %v795_v57 = vcombine.high %v761_v62, %v773_v45  ;;  %v1228_v58 = vcombine.low %v1132_v37, %v1139_v38  ;;  %v846_v60 = vcombine.low %v7217_v53, %v769_v41 }
 0x478   : > { %v1192_v49 = vcombine.low %v1168_v33, %v1184_v39  ;;  %v1193_v51 = vcombine.high %v1168_v33, %v1184_v39  ;;  %v1208_v54 = vcombine.low %v1175_v34, %v1191_v40  ;;  %v1209_v55 = vcombine.high %v1175_v34, %v1191_v40 }
 0x479   : > { %v847_v61 = vcombine.high %v7217_v53, %v769_v41  ;;  %v802_v2 = vrot.slane %v794_v56, %v7242_v9  ;;  %v809_v4 = vrot.slane %v795_v57, %v7242_v9  ;;  %v5563_v6 = vcombine.high %v1132_v37, %v1139_v38 }
 0x47a   : > { %v1200_v63 = vrot.slane %v1192_v49, %v7249_v24  ;;  %v1207_v0 = vrot.slane %v1193_v51, %v7249_v24  ;;  %v775_v5 = vpop.permute.xlu1 %774  ;;  %v1244_v7 = vcombine.low %v1148_v46, %v1155_v47  ;;  %v1216_v62 = vrot.slane %v1208_v54, %v7249_v24 }
 0x47b   : > { %v1223_v8 = vrot.slane %v1209_v55, %v7249_v24  ;;  %v810_v10 = vcombine.low %v786_v52, %v802_v2  ;;  %v811_v11 = vcombine.high %v786_v52, %v802_v2  ;;  %v826_v12 = vcombine.low %v793_v59, %v809_v4 }
 0x47c   : > { %v827_v13 = vcombine.high %v793_v59, %v809_v4  ;;  %v5564_v53 = vcombine.high %v1148_v46, %v1155_v47  ;;  %v854_v14 = vrot.slane %v846_v60, %v7242_v9  ;;  %v862_v15 = vcombine.low %v7239_v1, %v775_v5 }
 0x47d   : > { %v863_v16 = vcombine.high %v7239_v1, %v775_v5  ;;  %v1296_v17 = vcombine.low %v1200_v63, %v1207_v0  ;;  %v861_v18 = vrot.slane %v847_v61, %v7242_v9  ;;  %v818_v20 = vrot.slane %v810_v10, %v7249_v24 }
 0x47e   : > { %v825_v21 = vrot.slane %v811_v11, %v7249_v24  ;;  %v5565_v22 = vcombine.high %v1200_v63, %v1207_v0  ;;  %v1312_v23 = vcombine.low %v1216_v62, %v1223_v8  ;;  %v870_v25 = vrot.slane %v862_v15, %v7242_v9 }
 0x47f   : > { %v877_v26 = vrot.slane %v863_v16, %v7242_v9  ;;  %v834_v27 = vrot.slane %v826_v12, %v7249_v24  ;;  %v841_v28 = vrot.slane %v827_v13, %v7249_v24  ;;  %v1235_v29 = vrot.slane %v1228_v58, %v7242_v9 }
 0x480   : > { %v1243_v1 = vrot.slane %v5563_v6, %v7242_v9  ;;  %v878_v30 = vcombine.low %v854_v14, %v870_v25  ;;  %v879_v31 = vcombine.high %v854_v14, %v870_v25  ;;  %v914_v34 = vcombine.low %v818_v20, %v825_v21 }
 0x481   : > { %v894_v32 = vcombine.low %v861_v18, %v877_v26  ;;  %v895_v33 = vcombine.high %v861_v18, %v877_v26  ;;  %v5559_v35 = vcombine.high %v818_v20, %v825_v21  ;;  %v1251_v36 = vrot.slane %v1244_v7, %v7242_v9 }
 0x482   : > { %v1259_v37 = vrot.slane %v5564_v53, %v7242_v9  ;;  %v886_v38 = vrot.slane %v878_v30, %v7249_v24  ;;  %v893_v39 = vrot.slane %v879_v31, %v7249_v24  ;;  %v5566_v45 = vcombine.high %v1216_v62, %v1223_v8 }
 0x483   : > { %v902_v40 = vrot.slane %v894_v32, %v7249_v24  ;;  %v909_v41 = vrot.slane %v895_v33, %v7249_v24  ;;  %v930_v46 = vcombine.low %v834_v27, %v841_v28  ;;  %v5560_v47 = vcombine.high %v834_v27, %v841_v28 }
 0x484   : > { %v1260_v49 = vcombine.low %v1235_v29, %v1243_v1  ;;  %v982_v51 = vcombine.low %v886_v38, %v893_v39  ;;  %v5561_v54 = vcombine.high %v886_v38, %v893_v39  ;;  %v921_v56 = vrot.slane %v914_v34, %v7242_v9 }
 0x485   : > { %v998_v55 = vcombine.low %v902_v40, %v909_v41  ;;  %v5562_v52 = vcombine.high %v902_v40, %v909_v41  ;;  %v929_v57 = vrot.slane %v5559_v35, %v7242_v9  ;;  %v1276_v58 = vcombine.low %v1251_v36, %v1259_v37 }
 0x486   : > { %v989_v59 = vrot.slane %v982_v51, %v7242_v9  ;;  %v997_v60 = vrot.slane %v5561_v54, %v7242_v9  ;;  %v937_v0 = vrot.slane %v930_v46, %v7242_v9  ;;  %v1303_v2 = vrot.slane %v1296_v17, %v7242_v9 }
 0x487   : > { %v1005_v61 = vrot.slane %v998_v55, %v7242_v9  ;;  %v1013_v63 = vrot.slane %v5562_v52, %v7242_v9  ;;  %v1311_v4 = vrot.slane %v5565_v22, %v7242_v9  ;;  %v1319_v5 = vrot.slane %v1312_v23, %v7242_v9 }
 0x488   : > { %v945_v6 = vrot.slane %v5560_v47, %v7242_v9  ;;  %v1268_v7 = vrot.slane %v1260_v49, %v7249_v24  ;;  %v1327_v62 = vrot.slane %v5566_v45, %v7242_v9  ;;  %v1261_v8 = vcombine.high %v1235_v29, %v1243_v1 }
 0x489   : > { %v1284_v10 = vrot.slane %v1276_v58, %v7249_v24  ;;  %v1328_v11 = vcombine.low %v1303_v2, %v1311_v4  ;;  %v1277_v12 = vcombine.high %v1251_v36, %v1259_v37  ;;  %v1329_v13 = vcombine.high %v1303_v2, %v1311_v4 }
 0x48a   : > { %v1015_v53 = vcombine.high %v989_v59, %v997_v60  ;;  %v1031_v14 = vcombine.high %v1005_v61, %v1013_v63  ;;  %v1344_v15 = vcombine.low %v1319_v5, %v1327_v62  ;;  %v1275_v16 = vrot.slane %v1261_v8, %v7249_v24 }
 0x48b   : > { %v1336_v17 = vrot.slane %v1328_v11, %v7249_v24  ;;  %v1291_v18 = vrot.slane %v1277_v12, %v7249_v24  ;;  %v1343_v20 = vrot.slane %v1329_v13, %v7249_v24  ;;  %v1345_v21 = vcombine.high %v1319_v5, %v1327_v62 }
 0x48c   : > { %v1352_v22 = vrot.slane %v1344_v15, %v7249_v24  ;;  %v946_v23 = vcombine.low %v921_v56, %v929_v57  ;;  %v962_v25 = vcombine.low %v937_v0, %v945_v6  ;;  %v1014_v26 = vcombine.low %v989_v59, %v997_v60 }
 0x48d   : > { %v947_v27 = vcombine.high %v921_v56, %v929_v57  ;;  %v963_v28 = vcombine.high %v937_v0, %v945_v6  ;;  %v1359_v29 = vrot.slane %v1345_v21, %v7249_v24  ;;  %v1030_v1 = vcombine.low %v1005_v61, %v1013_v63 }
 0x48e   : > { %v1029_v30 = vrot.slane %v1015_v53, %v7249_v24  ;;  %v1292_v31 = vcombine.low %v1268_v7, %v1284_v10  ;;  %v1360_v32 = vcombine.low %v1336_v17, %v1352_v22  ;;  %v1022_v33 = vrot.slane %v1014_v26, %v7249_v24 }
 0x48f   : > { %v1045_v34 = vrot.slane %v1031_v14, %v7249_v24  ;;  %v1294_v35 = vcombine.low %v1275_v16, %v1291_v18  ;;  %v1362_v36 = vcombine.low %v1343_v20, %v1359_v29  ;;  %v1038_v37 = vrot.slane %v1030_v1, %v7249_v24 }
 0x490   : > { %v1364_v38 = vpack.c.bf16 %v1360_v32, %v1292_v31  ;;  %v954_v39 = vrot.slane %v946_v23, %v7249_v24  ;;  %v970_v40 = vrot.slane %v962_v25, %v7249_v24  ;;  %v961_v41 = vrot.slane %v947_v27, %v7249_v24 }
 0x491   : > { %v977_v45 = vrot.slane %v963_v28, %v7249_v24  ;;  %v1366_v46 = vpack.c.bf16 %v1362_v36, %v1294_v35  ;;  %v1046_v49 = vcombine.low %v1022_v33, %v1038_v37  ;;  %v1361_v51 = vcombine.high %v1336_v17, %v1352_v22 }
 0x492   : > { %v7318_v47 = vsel %vm1664_vm2, %v1364_v38, 0  ;;  %v1048_v55 = vcombine.low %v1029_v30, %v1045_v34  ;;  %v978_v52 = vcombine.low %v954_v39, %v970_v40  ;;  %v1293_v56 = vcombine.high %v1268_v7, %v1284_v10 }
 0x493   : > { %5741 = vmatpush3.bf16.xpose.msra.mxu1 %v7318_v47  ;;  %v7322_v54 = vsel %vm1664_vm2, %v1366_v46, 0  ;;  %v980_v57 = vcombine.low %v961_v41, %v977_v45  ;;  %v1363_v63 = vcombine.high %v1343_v20, %v1359_v29  ;;  %v1047_v0 = vcombine.high %v1022_v33, %v1038_v37 }
 0x494   : > { %5753 = vmatpush3.bf16.xpose.msra.mxu0 %v7322_v54  ;;  %5746 = vmatprep.subr.bf16.mxu1 %v6699_v3  ;;  %v7327_v58 = vpack.c.bf16 %v1046_v49, %v978_v52  ;;  %v1365_v59 = vpack.c.bf16 %v1361_v51, %v1293_v56  ;;  %v1295_v2 = vcombine.high %v1275_v16, %v1291_v18  ;;  %v666_v26 = vsub.s32 1, %v7193_v42 }
 0x495   : > { %5764 = vmatprep.subr.bf16.mxu0 %v6699_v3  ;;  %v7329_v60 = vpack.c.bf16 %v1048_v55, %v980_v57  ;;  %v979_v4 = vcombine.high %v954_v39, %v970_v40  ;;  %v1049_v62 = vcombine.high %v1029_v30, %v1045_v34  ;;  %v981_v8 = vcombine.high %v961_v41, %v977_v45 }
 0x496   : > { %v7334_v61 = vsel %vm1664_vm2, %v1365_v59, 0  ;;  %v1367_v5 = vpack.c.bf16 %v1363_v63, %v1295_v2  ;;  %v667_v27 = vrot.slane %v7196_v44, %v666_v26 }
 0x497   : > { %v7344_v6 = vpack.c.bf16 %v1047_v0, %v979_v4  ;;  %v7355_v10 = vpack.c.bf16 %v1049_v62, %v981_v8 }
 0x498   : > { %v7349_v7 = vsel %vm1664_vm2, %v1367_v5, 0  ;;  %v7372_v1 = vadd.f32 %v7203_v50, %v667_v27  ;;  %v750_v32 = vadd.f32 %v7201_v48, %v667_v27 }
 0x49a   : > { %5743 = vmatmul.mubr.msk.bf16.vlgmr.msra.gmra.mrb[0].mxu1 %vm1664_vm2, %v7327_v58 }
 0x49b   : > { %5755 = vmatmul.mubr.msk.bf16.vlgmr.msra.gmra.mrb[4].mxu0 %vm1664_vm2, %v7329_v60  ;;  %5747 = vmatpush3.bf16.xpose.msra.mxu1 %v7334_v61 }
 0x49c   : > { %5748 = vmatprep.mubr.msk.bf16.mxu1 %vm6705_vm1, %v6699_v3  ;;  %5758 = vmatprep.subr.bf16.mxu1 %v6699_v3 }
 0x49d   : > { %5766 = vmatprep.mubr.msk.bf16.mxu0 %vm6705_vm1, %v6699_v3 }
 0x4a2   : > { %5749 = vmatmul.mubr.msk.bf16.vlgmr.msra.gmra.mrb[4].mxu1 %vm1664_vm2, %v7344_v6 }
 0x4a3   : > { %5759 = vmatpush3.bf16.xpose.msra.mxu1 %v7349_v7  ;;  %5760 = vmatprep.mubr.msk.bf16.mxu1 %vm6705_vm1, %v6699_v3 }
 0x4a4   : > { %5770 = vmatprep.subr.bf16.mxu1 %v6699_v3 }
 0x4aa   : > { %5761 = vmatmul.mubr.msk.bf16.vlgmr.msra.gmra.mrb[8].mxu1 %vm1664_vm2, %v7355_v10 }
 0x4ab   : > { %5772 = vmatprep.mubr.msk.bf16.mxu1 %vm6705_vm1, %v6699_v3 }
 0x56d   : > { %v1705_v11 = vpop.f32.mrb[0].mxu1 }
 0x56e   : > { %v1797_v12 = vpop.f32.mrb[4].mxu0  ;;  %v5744_v13 = vpop.f32.mrb[1].mxu1  ;;  %v1849_v53 = vsel %vm1664_vm2, %v1705_v11, -inf }
 0x56f   : > { %v5756_v14 = vpop.f32.mrb[5].mxu0  ;;  %v1855_v15 = vsel %vm1664_vm2, %v1797_v12, -inf  ;;  %1850 = vmax.xlane.f32.xlu0 %v1849_v53  ;;  %v1708_v16 = vpop.f32.mrb[2].mxu1 }
 0x570   : > { %1856 = vmax.xlane.f32.xlu1 %v1855_v15  ;;  %v1800_v17 = vpop.f32.mrb[6].mxu0  ;;  %v5745_v18 = vpop.f32.mrb[3].mxu1 }
 0x571   : > { %v5757_v20 = vpop.f32.mrb[7].mxu0 }
 0x575   : > { %v7363_v21 = vpop.f32.mrb[4].mxu1 }
 0x576   : > { %v5750_v22 = vpop.f32.mrb[5].mxu1 }
 0x577   : > { %v1754_v23 = vpop.f32.mrb[6].mxu1 }
 0x578   : > { %v5751_v25 = vpop.f32.mrb[7].mxu1 }
 0x57d   : > { %v7369_v28 = vpop.f32.mrb[8].mxu1 }
 0x57e   : > { %v5762_v29 = vpop.f32.mrb[9].mxu1 }
 0x57f   : > { %v1846_v30 = vpop.f32.mrb[10].mxu1 }
 0x580   : > { %v5763_v31 = vpop.f32.mrb[11].mxu1  ;;  %v1852_v30 = vsel %vm1664_vm2, %v7363_v21, -inf }
 0x581   : > { %1372 = vrot.lane.b32.xlu1 %v7372_v1, %s6702_s14  ;;  %v1858_v31 = vsel %vm1664_vm2, %v7369_v28, -inf }
 0x585   : > { %1376 = vrot.lane.b32.xlu1 %v750_v32, %s6701_s27  ;;  %1370 = vrot.lane.b32.xlu0 %v750_v32, %s6702_s14 }
 0x589   : > { %1382 = vrot.lane.b32.xlu1 %v750_v32, %s6703_s20  ;;  %1378 = vrot.lane.b32.xlu0 %v7372_v1, %s6701_s27 }
 0x5fc   : > { %v1851_v44 = vpop.xlane.xlu0 %1850 }
 0x5fd   : > { %v1857_v33 = vpop.xlane.xlu1 %1856  ;;  %v1861_v50 = vsub.f32 %v1705_v11, %v1851_v44 }
 0x5fe   : > { %v1863_v34 = vsub.f32 %v1797_v12, %v1857_v33 }
 0x5ff   : > { %v1865_v35 = vmul.f32 1.442695, %v1861_v50 }
 0x600   : > { %v1869_v36 = vmul.f32 1.442695, %v1863_v34  ;;  %v1371_v40 = vpop.permute.xlu0 %1370 }
 0x601   : > { %6163 = vpow2.f32 %v1865_v35  ;;  %v1373_v37 = vpop.permute.xlu1 %1372 }
 0x602   : > { %6165 = vpow2.f32 %v1869_v36 }
 0x605   : > { %v1377_v38 = vpop.permute.xlu1 %1376 }
 0x606   : > { %v1388_v48 = vcombine.low %v750_v32, %v1377_v38  ;;  %v1389_v39 = vcombine.high %v750_v32, %v1377_v38  ;;  %v1379_v32 = vpop.permute.xlu0 %1378 }
 0x607   : > { %v1456_v33 = vcombine.low %v7372_v1, %v1379_v32  ;;  %v1457_v50 = vcombine.high %v7372_v1, %v1379_v32 }
 0x608   : > { %v1396_v51 = vrot.slane %v1388_v48, %v7242_v9  ;;  %v1403_v52 = vrot.slane %v1389_v39, %v7242_v9 }
 0x609   : > { %v1383_v41 = vpop.permute.xlu1 %1382  ;;  %v1464_v38 = vrot.slane %v1456_v33, %v7242_v9  ;;  %v1471_v48 = vrot.slane %v1457_v50, %v7242_v9 }
 0x60a   : > { %v1404_v45 = vcombine.low %v1371_v40, %v1383_v41  ;;  %v1405_v46 = vcombine.high %v1371_v40, %v1383_v41 }
 0x60b   : > { %v7382_v49 = vpop.eup %6163 }
 0x60c   : > { %v7385_v55 = vpop.eup %6165  ;;  %v1412_v56 = vrot.slane %v1404_v45, %v7242_v9  ;;  %v1419_v57 = vrot.slane %v1405_v46, %v7242_v9  ;;  %v1873_v59 = vsel %vm1664_vm2, %v7382_v49, 0.0 }
 0x60d   : > { %v1879_v63 = vsel %vm1664_vm2, %v7385_v55, 0.0  ;;  %1874 = vadd.xlane.f32.xlu0 %v1873_v59 }
 0x60e   : > { %v1420_v0 = vcombine.low %v1396_v51, %v1412_v56  ;;  %v1421_v2 = vcombine.high %v1396_v51, %v1412_v56  ;;  %v1436_v4 = vcombine.low %v1403_v52, %v1419_v57  ;;  %v1437_v5 = vcombine.high %v1403_v52, %v1419_v57  ;;  %1880 = vadd.xlane.f32.xlu1 %v1879_v63 }
 0x610   : > { %v1428_v62 = vrot.slane %v1420_v0, %v7249_v24  ;;  %v1435_v8 = vrot.slane %v1421_v2, %v7249_v24  ;;  %v1444_v11 = vrot.slane %v1436_v4, %v7249_v24  ;;  %v1451_v12 = vrot.slane %v1437_v5, %v7249_v24 }
 0x612   : > { %v1524_v13 = vcombine.low %v1428_v62, %v1435_v8  ;;  %v5567_v53 = vcombine.high %v1428_v62, %v1435_v8  ;;  %v1540_v14 = vcombine.low %v1444_v11, %v1451_v12  ;;  %v5568_v15 = vcombine.high %v1444_v11, %v1451_v12 }
 0x614   : > { %v1531_v16 = vrot.slane %v1524_v13, %v7242_v9  ;;  %v1539_v17 = vrot.slane %v5567_v53, %v7242_v9  ;;  %v1547_v18 = vrot.slane %v1540_v14, %v7242_v9  ;;  %v1555_v20 = vrot.slane %v5568_v15, %v7242_v9 }
 0x616   : > { %v1557_v22 = vcombine.high %v1531_v16, %v1539_v17  ;;  %v1573_v23 = vcombine.high %v1547_v18, %v1555_v20  ;;  %v1556_v57 = vcombine.low %v1531_v16, %v1539_v17  ;;  %v1572_v2 = vcombine.low %v1547_v18, %v1555_v20 }
 0x618   : > { %v7403_v25 = vrot.slane %v1557_v22, %v7249_v24  ;;  %v7406_v27 = vrot.slane %v1573_v23, %v7249_v24  ;;  %v1564_v13 = vrot.slane %v1556_v57, %v7249_v24  ;;  %v1580_v53 = vrot.slane %v1572_v2, %v7249_v24 }
 0x61a   : > { %v1591_v29 = vcombine.high %v7403_v25, %v7406_v27 }
 0x623   : > { %1384 = vrot.lane.b32.xlu0 %v7372_v1, %s6703_s20 }
 0x642   : > { %1853 = vmax.xlane.f32.xlu0 %v1852_v30 }
 0x646   : > { %1859 = vmax.xlane.f32.xlu0 %v1858_v31  ;;  %v1588_v31 = vcombine.low %v1564_v13, %v1580_v53 }
 0x69a   : > { %v1875_v44 = vpop.xlane.xlu0 %1874 }
 0x69b   : > { %6167 = vrcp.f32 %v1875_v44  ;;  %v1881_v5 = vpop.xlane.xlu1 %1880  ;;  %v1589_v44 = vcombine.high %v1564_v13, %v1580_v53 }
 0x69c   : > { %6169 = vrcp.f32 %v1881_v5  ;;  %v2826_v5 = vld [vmem:[#allocation5 + $0x10] sm:$0xff] }
 0x69e   : > { %v1385_v34 = vpop.permute.xlu0 %1384 }
 0x69f   : > { %v1472_v35 = vcombine.low %v1373_v37, %v1385_v34  ;;  %v1473_v36 = vcombine.high %v1373_v37, %v1385_v34 }
 0x6a1   : > { %v1480_v39 = vrot.slane %v1472_v35, %v7242_v9  ;;  %v1487_v40 = vrot.slane %v1473_v36, %v7242_v9 }
 0x6a3   : > { %v1488_v41 = vcombine.low %v1464_v38, %v1480_v39  ;;  %v1489_v45 = vcombine.high %v1464_v38, %v1480_v39  ;;  %v1504_v46 = vcombine.low %v1471_v48, %v1487_v40  ;;  %v1505_v51 = vcombine.high %v1471_v48, %v1487_v40 }
 0x6a4   : > { %v1590_v39 = vcombine.low %v7403_v25, %v7406_v27  ;;  %v2225_v27 = vrot.slane %v7327_v58, 4 }
 0x6a5   : > { %v1496_v52 = vrot.slane %v1488_v41, %v7249_v24  ;;  %v1503_v1 = vrot.slane %v1489_v45, %v7249_v24  ;;  %v1512_v56 = vrot.slane %v1504_v46, %v7249_v24  ;;  %v1519_v37 = vrot.slane %v1505_v51, %v7249_v24  ;;  %v6168_v22 = vpop.eup %6167 }
 0x6a6   : > { %v1889_v34 = vmul.f32 %v6168_v22, %v7382_v49  ;;  %v6170_v41 = vpop.eup %6169 }
 0x6a7   : > { %v1592_v59 = vcombine.low %v1496_v52, %v1503_v1  ;;  %v5569_v63 = vcombine.high %v1496_v52, %v1503_v1  ;;  %v1608_v0 = vcombine.low %v1512_v56, %v1519_v37  ;;  %v5570_v4 = vcombine.high %v1512_v56, %v1519_v37 }
 0x6a8   : > { %v1893_v40 = vpack.c.bf16 %v1889_v34, %v1889_v34  ;;  %v1891_v49 = vmul.f32 %v6170_v41, %v7385_v55  ;;  %v2315_v55 = vrot.slane %v7329_v60, 4 }
 0x6a9   : > { %v1599_v62 = vrot.slane %v1592_v59, %v7242_v9  ;;  %v1607_v8 = vrot.slane %v5569_v63, %v7242_v9  ;;  %v1615_v11 = vrot.slane %v1608_v0, %v7242_v9  ;;  %v1623_v12 = vrot.slane %v5570_v4, %v7242_v9 }
 0x6aa   : > { %v1895_v25 = vpack.c.bf16 %v1891_v49, %v1891_v49 }
 0x6ab   : > { %v1624_v14 = vcombine.low %v1599_v62, %v1607_v8  ;;  %v1625_v15 = vcombine.high %v1599_v62, %v1607_v8  ;;  %v1640_v16 = vcombine.low %v1615_v11, %v1623_v12  ;;  %v1641_v17 = vcombine.high %v1615_v11, %v1623_v12 }
 0x6ac   : > { %v2830_v12 = vsel %vm605_vm0, %v2826_v5, 0.0 }
 0x6ad   : > { %v1632_v18 = vrot.slane %v1624_v14, %v7249_v24  ;;  %v1639_v20 = vrot.slane %v1625_v15, %v7249_v24  ;;  %v1648_v23 = vrot.slane %v1640_v16, %v7249_v24  ;;  %v1655_v30 = vrot.slane %v1641_v17, %v7249_v24  ;;  %v2827_v14 = vld [vmem:[#allocation5 + $0x18] sm:$0xff] }
 0x6af   : > { %v1656_v32 = vcombine.low %v1632_v18, %v1648_v23  ;;  %v1657_v33 = vcombine.high %v1632_v18, %v1648_v23  ;;  %v1659_v50 = vcombine.high %v1639_v20, %v1655_v30  ;;  %v1658_v38 = vcombine.low %v1639_v20, %v1655_v30 }
 0x6b0   : > { %v2833_v20 = vsel %vm605_vm0, %v2827_v14, 0.0 }
 0x6b1   : > { %v1660_v35 = vpack.c.bf16 %v1656_v32, %v1588_v31  ;;  %v7437_v36 = vpack.c.bf16 %v1657_v33, %v1589_v44  ;;  %v7439_v48 = vpack.c.bf16 %v1659_v50, %v1591_v29  ;;  %v7446_v45 = vpack.c.bf16 %v1658_v38, %v1590_v39 }
 0x6b3   : > { %5765 = vmatpush3.bf16.msra.mxu0 %v1660_v35  ;;  %5771 = vmatpush3.bf16.msra.mxu1 %v7437_v36 }
 0x6b4   : > { %5776 = vmatprep.subr.bf16.mxu0 %v6699_v3  ;;  %5782 = vmatprep.subr.bf16.mxu1 %v6699_v3 }
 0x6b6   : > { %5767 = vmatmul.mubr.msk.bf16.vlgmr.msra.gmra.mrb[8].mxu0 %vm1664_vm2, %v1893_v40 }
 0x6b7   : > { %5777 = vmatpush3.bf16.msra.mxu0 %v7446_v45  ;;  %5778 = vmatprep.mubr.msk.bf16.mxu0 %vm6705_vm1, %v6699_v3 }
 0x6b8   : > { %5788 = vmatprep.subr.bf16.mxu0 %v6699_v3 }
 0x6be   : > { %5779 = vmatmul.mubr.msk.bf16.vlgmr.msra.gmra.mrb[12].mxu0 %vm1664_vm2, %v1895_v25 }
 0x6bf   : > { %5790 = vmatprep.mubr.msk.bf16.mxu0 %vm6705_vm1, %v6699_v3 }
 0x6c0   : > { %5789 = vmatpush3.bf16.xpose.msra.mxu0 %v7318_v47 }
 0x6c1   : > { %5800 = vmatprep.subr.bf16.mxu0 %v6699_v3 }
 0x6c7   : > { %5791 = vmatmul.mubr.msk.bf16.vlgmr.msra.gmra.mrb[16].mxu0 %vm1664_vm2, %v2225_v27 }
 0x6c8   : > { %5801 = vmatpush3.bf16.xpose.msra.mxu0 %v7322_v54  ;;  %5802 = vmatprep.mubr.msk.bf16.mxu0 %vm6705_vm1, %v6699_v3 }
 0x6c9   : > { %5812 = vmatprep.subr.bf16.mxu0 %v6699_v3 }
 0x6cf   : > { %5803 = vmatmul.mubr.msk.bf16.vlgmr.msra.gmra.mrb[20].mxu0 %vm1664_vm2, %v2315_v55  ;;  %v1854_v29 = vpop.xlane.xlu0 %1853 }
 0x6d0   : > { %5813 = vmatpush3.bf16.msra.mxu0 %v1660_v35  ;;  %5814 = vmatprep.mubr.msk.bf16.mxu0 %vm6705_vm1, %v6699_v3  ;;  %v1862_v51 = vsub.f32 %v7363_v21, %v1854_v29 }
 0x6d1   : > { %5824 = vmatprep.subr.bf16.mxu0 %v6699_v3 }
 0x6d2   : > { %v1867_v1 = vmul.f32 1.442695, %v1862_v51 }
 0x6d3   : > { %v1860_v57 = vpop.xlane.xlu0 %1859 }
 0x6d4   : > { %6171 = vpow2.f32 %v1867_v1  ;;  %v1864_v0 = vsub.f32 %v7369_v28, %v1860_v57 }
 0x6d6   : > { %v1871_v2 = vmul.f32 1.442695, %v1864_v0 }
 0x6d8   : > { %6173 = vpow2.f32 %v1871_v2 }
 0x6de   : > { %v6172_v13 = vpop.eup %6171 }
 0x6df   : > { %v1876_v28 = vsel %vm1664_vm2, %v6172_v13, 0.0 }
 0x6e2   : > { %v6174_v22 = vpop.eup %6173 }
 0x6e3   : > { %v1882_v23 = vsel %vm1664_vm2, %v6174_v22, 0.0 }
 0x789   : > { %v7470_v47 = vpop.f32.mrb[8].mxu0 }
 0x78a   : > { %v5768_v58 = vpop.f32.mrb[9].mxu0 }
 0x78b   : > { %v1937_v54 = vpop.f32.mrb[10].mxu0 }
 0x78c   : > { %v5769_v46 = vpop.f32.mrb[11].mxu0 }
 0x791   : > { %v7473_v52 = vpop.f32.mrb[12].mxu0 }
 0x792   : > { %v2069_v60 = vcombine.low %v7470_v47, %v7473_v52  ;;  %v2070_v56 = vcombine.high %v7470_v47, %v7473_v52  ;;  %v5780_v37 = vpop.f32.mrb[13].mxu0 }
 0x793   : > { %v2023_v59 = vpop.f32.mrb[14].mxu0 }
 0x794   : > { %v5781_v63 = vpop.f32.mrb[15].mxu0 }
 0x79a   : > { %v2263_v4 = vpop.f32.mrb[16].mxu0 }
 0x79b   : > { %v5792_v21 = vpop.f32.mrb[17].mxu0  ;;  %v2404_v62 = vsel %vm1664_vm2, %v2263_v4, -inf }
 0x79c   : > { %v2266_v8 = vpop.f32.mrb[18].mxu0  ;;  %2405 = vmax.xlane.f32.xlu0 %v2404_v62 }
 0x79d   : > { %v5793_v11 = vpop.f32.mrb[19].mxu0 }
 0x7a0   : > { %2831 = vadd.xlane.f32.xlu0 %v2830_v12 }
 0x7a2   : > { %v2353_v53 = vpop.f32.mrb[20].mxu0 }
 0x7a3   : > { %v5804_v15 = vpop.f32.mrb[21].mxu0  ;;  %v2410_v16 = vsel %vm1664_vm2, %v2353_v53, -inf }
 0x7a4   : > { %2411 = vmax.xlane.f32.xlu1 %v2410_v16  ;;  %v2356_v17 = vpop.f32.mrb[22].mxu0  ;;  %1877 = vadd.xlane.f32.xlu0 %v1876_v28  ;;  %v6147_v16 = vld [vmem:[#allocation11] ss:$8 sps:$4 sm:$0xff]  }
 0x7a5   : > { %v5805_v18 = vpop.f32.mrb[23].mxu0  ;;  %v6152_v17 = vld [vmem:[#allocation11 + $0x14] ss:$8 sps:$4 sm:$0xff]  }
 0x7a8   : > { %2834 = vadd.xlane.f32.xlu1 %v2833_v20  ;;  %v6150_v20 = vld [vmem:[#allocation11 + $0x10] ss:$8 sps:$4 sm:$0xff]  }
 0x7ac   : > { %1883 = vadd.xlane.f32.xlu1 %v1882_v23  ;;  %v6155_v23 = vld [vmem:[#allocation11 + $0x24] ss:$8 sps:$4 sm:$0xff]  }
 0x829   : > { %v2406_v30 = vpop.xlane.xlu0 %2405 }
 0x82a   : > { %v2416_v31 = vsub.f32 %v2263_v4, %v2406_v30  ;;  %v2270_v4 = vrot.slane %v7344_v6, 4 }
 0x82c   : > { %v2420_v32 = vmul.f32 1.442695, %v2416_v31  ;;  %v6153_v31 = vld [vmem:[#allocation11 + $0x20] ss:$8 sps:$4 sm:$0xff]  }
 0x82d   : > { %v2832_v44 = vpop.xlane.xlu0 %2831 }
 0x82e   : > { %6175 = vpow2.f32 %v2420_v32  ;;  %v2836_v33 = vmul.f32 0.015625, %v2832_v44  ;;  %v6239_v32 = vld [vmem:[#allocation8] ss:$0 sm:$0xff] }
 0x830   : > { %v7486_v38 = vsub.f32 %v2826_v5, %v2836_v33  ;;  %v2360_v5 = vrot.slane %v7355_v10, 4  ;;  %v6158_v33 = vld [vmem:[#allocation11 + $0x34] ss:$8 sps:$4 sm:$0xff]  }
 0x831   : > { %v2412_v50 = vpop.xlane.xlu1 %2411  ;;  %v1878_v34 = vpop.xlane.xlu0 %1877 }
 0x832   : > { %v2418_v35 = vsub.f32 %v2353_v53, %v2412_v50  ;;  %6177 = vrcp.f32 %v1878_v34  ;;  %v2840_v49 = vmul.f32 %v7486_v38, %v7486_v38  ;;  %v6149_v53 = vld [vmem:[#allocation11 + $0x4] ss:$8 sps:$4 sm:$0xff]   ;;  %v6156_v34 = vld [vmem:[#allocation11 + $0x30] ss:$8 sps:$4 sm:$0xff]  }
 0x834   : > { %v2424_v39 = vmul.f32 1.442695, %v2418_v35  ;;  %v2842_v29 = vsel %vm605_vm0, %v2840_v49, 0.0  ;;  %v5594_v35 = vld [vmem:[#allocation10] ss:$0 sm:$0xff] }
 0x835   : > { %v2835_v40 = vpop.xlane.xlu1 %2834 }
 0x836   : > { %6179 = vpow2.f32 %v2424_v39  ;;  %v2837_v41 = vmul.f32 0.015625, %v2835_v40 }
 0x838   : > { %v6176_v25 = vpop.eup %6175  ;;  %v7491_v58 = vsub.f32 %v2827_v14, %v2837_v41 }
 0x839   : > { %v1884_v27 = vpop.xlane.xlu1 %1883  ;;  %v2428_v55 = vsel %vm1664_vm2, %v6176_v25, 0.0 }
 0x83a   : > { %6181 = vrcp.f32 %v1884_v27  ;;  %2429 = vadd.xlane.f32.xlu0 %v2428_v55  ;;  %v2841_v1 = vmul.f32 %v7491_v58, %v7491_v58 }
 0x83c   : > { %v6178_v54 = vpop.eup %6177  ;;  %v2845_v59 = vsel %vm605_vm0, %v2841_v1, 0.0 }
 0x83d   : > { %v1890_v46 = vmul.f32 %v6178_v54, %v6172_v13 }
 0x83e   : > { %2843 = vadd.xlane.f32.xlu0 %v2842_v29 }
 0x83f   : > { %v1894_v51 = vpack.c.bf16 %v1890_v46, %v1890_v46  ;;  %v2077_v46 = vrot.slane %v2069_v60, %v7242_v9 }
 0x840   : > { %v6180_v37 = vpop.eup %6179 }
 0x841   : > { %5773 = vmatmul.mubr.msk.bf16.vlgmr.msra.gmra.mrb[12].mxu1 %vm1664_vm2, %v1894_v51  ;;  %v2434_v57 = vsel %vm1664_vm2, %v6180_v37, 0.0  ;;  %v2084_v51 = vrot.slane %v2070_v56, %v7242_v9 }
 0x842   : > { %5783 = vmatpush3.bf16.msra.mxu1 %v7439_v48  ;;  %2435 = vadd.xlane.f32.xlu1 %v2434_v57 }
 0x843   : > { %5784 = vmatprep.mubr.msk.bf16.mxu1 %vm6705_vm1, %v6699_v3  ;;  %5794 = vmatprep.subr.bf16.mxu1 %v6699_v3 }
 0x844   : > { %v6182_v63 = vpop.eup %6181 }
 0x845   : > { %v1892_v0 = vmul.f32 %v6182_v63, %v6174_v22 }
 0x846   : > { %2846 = vadd.xlane.f32.xlu1 %v2845_v59 }
 0x847   : > { %v1896_v2 = vpack.c.bf16 %v1892_v0, %v1892_v0 }
 0x849   : > { %5785 = vmatmul.mubr.msk.bf16.vlgmr.msra.gmra.mrb[16].mxu1 %vm1664_vm2, %v1896_v2 }
 0x84a   : > { %5796 = vmatprep.mubr.msk.bf16.mxu1 %vm6705_vm1, %v6699_v3 }
 0x84b   : > { %5795 = vmatpush3.bf16.xpose.msra.mxu1 %v7334_v61 }
 0x84c   : > { %5806 = vmatprep.subr.bf16.mxu1 %v6699_v3 }
 0x852   : > { %5797 = vmatmul.mubr.msk.bf16.vlgmr.msra.gmra.mrb[20].mxu1 %vm1664_vm2, %v2270_v4 }
 0x853   : > { %5807 = vmatpush3.bf16.xpose.msra.mxu1 %v7349_v7  ;;  %5808 = vmatprep.mubr.msk.bf16.mxu1 %vm6705_vm1, %v6699_v3 }
 0x854   : > { %5818 = vmatprep.subr.bf16.mxu1 %v6699_v3 }
 0x85a   : > { %5809 = vmatmul.mubr.msk.bf16.vlgmr.msra.gmra.mrb[24].mxu1 %vm1664_vm2, %v2360_v5 }
 0x85b   : > { %5819 = vmatpush3.bf16.msra.mxu1 %v7437_v36  ;;  %5820 = vmatprep.mubr.msk.bf16.mxu1 %vm6705_vm1, %v6699_v3 }
 0x85c   : > { %5830 = vmatprep.subr.bf16.mxu1 %v6699_v3 }
 0x8c7   : > { %v2430_v61 = vpop.xlane.xlu0 %2429 }
 0x8c8   : > { %6183 = vrcp.f32 %v2430_v61 }
 0x8cb   : > { %v2844_v6 = vpop.xlane.xlu0 %2843 }
 0x8cc   : > { %v2848_v7 = vmul.f32 0.015625, %v2844_v6 }
 0x8ce   : > { %v2850_v11 = vadd.f32 1e-06, %v2848_v7 }
 0x8cf   : > { %v2436_v21 = vpop.xlane.xlu1 %2435 }
 0x8d0   : > { %6185 = vrcp.f32 %v2436_v21 }
 0x8d1   : > { %6187 = vrsqrt.f32 %v2850_v11 }
 0x8d2   : > { %v6184_v62 = vpop.eup %6183 }
 0x8d3   : > { %v2444_v8 = vmul.f32 %v6184_v62, %v6176_v25  ;;  %v2847_v12 = vpop.xlane.xlu1 %2846 }
 0x8d4   : > { %v2849_v10 = vmul.f32 0.015625, %v2847_v12 }
 0x8d5   : > { %v2448_v13 = vpack.c.bf16 %v2444_v8, %v2444_v8 }
 0x8d6   : > { %v2851_v14 = vadd.f32 1e-06, %v2849_v10 }
 0x8d7   : > { %5815 = vmatmul.mubr.msk.bf16.vlgmr.msra.gmra.mrb[24].mxu0 %vm1664_vm2, %v2448_v13 }
 0x8d8   : > { %6189 = vrsqrt.f32 %v2851_v14  ;;  %5825 = vmatpush3.bf16.msra.mxu0 %v7446_v45  ;;  %5826 = vmatprep.mubr.msk.bf16.mxu0 %vm6705_vm1, %v6699_v3 }
 0x8d9   : > { %2936 = vmatprep.subr.bf16.mxu0 %v6149_v53 }
 0x8da   : > { %v6186_v36 = vpop.eup %6185 }
 0x8db   : > { %v2446_v15 = vmul.f32 %v6186_v36, %v6180_v37  ;;  %v6188_v18 = vpop.eup %6187 }
 0x8dc   : > { %v2854_v30 = vmul.f32 %v6188_v18, %v7486_v38 }
 0x8dd   : > { %v2450_v28 = vpack.c.bf16 %v2446_v15, %v2446_v15 }
 0x8de   : > { %v2862_v50 = vmul.f32 %v6239_v32, %v2854_v30 }
 0x8df   : > { %5827 = vmatmul.mubr.msk.bf16.vlgmr.msra.gmra.mrb[28].mxu0 %vm1664_vm2, %v2450_v28 }
 0x8e0   : > { %2937 = vmatpush1.bf16.msra.mxu0 %v6147_v16  ;;  %2968 = vmatprep.mubr.bf16.mxu0 %v6700_v19  ;;  %v2870_v19 = vadd.f32 %v5594_v35, %v2862_v50 }
 0x8e1   : > { %2938 = vmatprep.subr.bf16.mxu0 %v6152_v17 }
 0x8e2   : > { %v6190_v22 = vpop.eup %6189 }
 0x8e3   : > { %v2855_v45 = vmul.f32 %v6190_v22, %v7491_v58 }
 0x8e4   : > { %2939 = vmatpush1.bf16.msra.mxu0 %v6150_v20 }
 0x8e5   : > { %v2863_v44 = vmul.f32 %v6239_v32, %v2855_v45  ;;  %2940 = vmatprep.subr.bf16.mxu0 %v6155_v23 }
 0x8e7   : > { %v2871_v39 = vadd.f32 %v5594_v35, %v2863_v44 }
 0x8e8   : > { %2941 = vmatpush1.bf16.msra.mxu0 %v6153_v31 }
 0x8e9   : > { %2942 = vmatprep.subr.bf16.mxu0 %v6158_v33  ;;  %v2872_v40 = vpack.c.bf16 %v2871_v39, %v2870_v19 }
 0x8ec   : > { %2943 = vmatpush1.bf16.msra.mxu0 %v6156_v34 }
 0x8ed   : > { %5848 = vmatprep.subr.bf16.mxu0 %v6699_v3 }
 0x8ef   : > { %5603 = vmatmul.mubr.msk.bf16.vlgmr.msra.gmra.mrb[32].mxu0 %vm605_vm0, %v2872_v40 }
 0x8f0   : > { %5850 = vmatprep.mubr.msk.bf16.mxu0 %vm6705_vm1, %v6699_v3 }
 0x914   : > { %v1977_v38 = vpop.f32.mrb[12].mxu1 }
 0x915   : > { %v5774_v41 = vpop.f32.mrb[13].mxu1 }
 0x916   : > { %v1980_v49 = vpop.f32.mrb[14].mxu1 }
 0x917   : > { %v5775_v25 = vpop.f32.mrb[15].mxu1 }
 0x91c   : > { %v2063_v27 = vpop.f32.mrb[16].mxu1 }
 0x91d   : > { %v2085_v55 = vcombine.low %v1977_v38, %v2063_v27  ;;  %v2086_v58 = vcombine.high %v1977_v38, %v2063_v27  ;;  %v5786_v29 = vpop.f32.mrb[17].mxu1 }
 0x91e   : > { %v2066_v54 = vpop.f32.mrb[18].mxu1 }
 0x91f   : > { %v2093_v1 = vrot.slane %v2085_v55, %v7242_v9  ;;  %v2100_v37 = vrot.slane %v2086_v58, %v7242_v9  ;;  %v5787_v57 = vpop.f32.mrb[19].mxu1  ;;  %v2881_v55 = vld [vmem:[#allocation13] sm:$0x3] }
 0x920   : > { %v2886_v58 = vrot.slane %v2881_v55, %v662_v43  ;;  %v2890_v29 = vrot.slane %v2881_v55, %v666_v26 }
 0x921   : > { %v2101_v59 = vcombine.low %v2077_v46, %v2093_v1  ;;  %v2102_v63 = vcombine.high %v2077_v46, %v2093_v1  ;;  %v2117_v0 = vcombine.low %v2084_v51, %v2100_v37  ;;  %v2118_v2 = vcombine.high %v2084_v51, %v2100_v37 }
 0x923   : > { %v2109_v4 = vrot.slane %v2101_v59, %v7249_v24  ;;  %v2116_v5 = vrot.slane %v2102_v63, %v7249_v24  ;;  %v2125_v60 = vrot.slane %v2117_v0, %v7249_v24  ;;  %v2132_v61 = vrot.slane %v2118_v2, %v7249_v24 }
 0x925   : > { %v2137_v6 = vcombine.low %v2109_v4, %v2116_v5  ;;  %v5579_v47 = vcombine.high %v2109_v4, %v2116_v5  ;;  %v2153_v52 = vcombine.low %v2125_v60, %v2132_v61  ;;  %v5580_v56 = vcombine.high %v2125_v60, %v2132_v61  ;;  %v2308_v7 = vpop.f32.mrb[20].mxu1 }
 0x926   : > { %v5798_v21 = vpop.f32.mrb[21].mxu1  ;;  %v2407_v62 = vsel %vm1664_vm2, %v2308_v7, -inf }
 0x927   : > { %2408 = vmax.xlane.f32.xlu0 %v2407_v62  ;;  %v2311_v8 = vpop.f32.mrb[22].mxu1  ;;  %v2144_v11 = vrot.slane %v2137_v6, %v7242_v9  ;;  %v2152_v12 = vrot.slane %v5579_v47, %v7242_v9  ;;  %v2160_v10 = vrot.slane %v2153_v52, %v7242_v9  ;;  %v2168_v13 = vrot.slane %v5580_v56, %v7242_v9 }
 0x928   : > { %v5799_v53 = vpop.f32.mrb[23].mxu1 }
 0x929   : > { %v2169_v14 = vcombine.low %v2144_v11, %v2152_v12  ;;  %v2185_v36 = vcombine.low %v2160_v10, %v2168_v13  ;;  %v2170_v15 = vcombine.high %v2144_v11, %v2152_v12  ;;  %v2186_v16 = vcombine.high %v2160_v10, %v2168_v13 }
 0x92b   : > { %v7552_v28 = vrot.slane %v2169_v14, %v7249_v24  ;;  %v7555_v17 = vrot.slane %v2185_v36, %v7249_v24  ;;  %v7558_v18 = vrot.slane %v2170_v15, %v7249_v24  ;;  %v7561_v20 = vrot.slane %v2186_v16, %v7249_v24 }
 0x92d   : > { %v2398_v22 = vpop.f32.mrb[24].mxu1  ;;  %v2202_v23 = vcombine.high %v7552_v28, %v7555_v17  ;;  %v2203_v45 = vcombine.low %v7558_v18, %v7561_v20  ;;  %v2204_v30 = vcombine.high %v7558_v18, %v7561_v20  ;;  %v2201_v31 = vcombine.low %v7552_v28, %v7555_v17  ;;  %v6240_v17 = vld [vmem:[#allocation5] sm:$0xff] }
 0x92e   : > { %v5810_v32 = vpop.f32.mrb[25].mxu1  ;;  %v2413_v44 = vsel %vm1664_vm2, %v2398_v22, -inf }
 0x92f   : > { %2414 = vmax.xlane.f32.xlu1 %v2413_v44  ;;  %v2401_v33 = vpop.f32.mrb[26].mxu1 }
 0x930   : > { %v5811_v50 = vpop.f32.mrb[27].mxu1 }
 0x9aa   : > { %v7572_v34 = vpop.f32.mrb[24].mxu0 }
 0x9ab   : > { %v5816_v35 = vpop.f32.mrb[25].mxu0 }
 0x9ac   : > { %v2492_v39 = vpop.f32.mrb[26].mxu0 }
 0x9ad   : > { %v5817_v19 = vpop.f32.mrb[27].mxu0 }
 0x9b2   : > { %v7574_v40 = vpop.f32.mrb[28].mxu0 }
 0x9b3   : > { %v2624_v38 = vcombine.low %v7572_v34, %v7574_v40  ;;  %v2625_v41 = vcombine.high %v7572_v34, %v7574_v40  ;;  %v5828_v49 = vpop.f32.mrb[29].mxu0 }
 0x9b4   : > { %v2578_v25 = vpop.f32.mrb[30].mxu0  ;;  %v2409_v42 = vpop.xlane.xlu0 %2408 }
 0x9b5   : > { %v5829_v27 = vpop.f32.mrb[31].mxu0  ;;  %v2417_v43 = vsub.f32 %v2308_v7, %v2409_v42 }
 0x9b7   : > { %v2422_v26 = vmul.f32 1.442695, %v2417_v43 }
 0x9b9   : > { %6191 = vpow2.f32 %v2422_v26 }
 0x9bc   : > { %v2415_v0 = vpop.xlane.xlu1 %2414 }
 0x9bd   : > { %v2419_v2 = vsub.f32 %v2398_v22, %v2415_v0 }
 0x9bf   : > { %v2426_v4 = vmul.f32 1.442695, %v2419_v2 }
 0x9c1   : > { %6193 = vpow2.f32 %v2426_v4 }
 0x9c2   : > { %v2970_v54 = vpop.f32.mrb[32].mxu0 }
 0x9c3   : > { %v2971_v46 = vadd.f32 %v2970_v54, %v2886_v58  ;;  %v2972_v51 = vpop.f32.mrb[33].mxu0  ;;  %v6192_v5 = vpop.eup %6191 }
 0x9c4   : > { %v7584_v1 = vadd.f32 %v2972_v51, %v2890_v29  ;;  %v2974_v37 = vpop.f32.mrb[34].mxu0  ;;  %v2431_v60 = vsel %vm1664_vm2, %v6192_v5, 0.0 }
 0x9c5   : > { %v2976_v57 = vpop.f32.mrb[35].mxu0  ;;  %3279 = vrot.lane.b32.xlu0 %v2971_v46, %s6702_s14  ;;  %3283 = vrot.lane.b32.xlu1 %v2971_v46, %s6701_s27  ;;  %v2975_v63 = vadd.f32 %v2974_v37, %v2886_v58  ;;  %v7597_v47 = vmul.f32 0.25, %v2971_v46 }
 0x9c6   : > { %v7588_v59 = vadd.f32 %v2976_v57, %v2890_v29 }
 0x9c7   : > { %v7602_v52 = vmul.f32 0.25, %v2975_v63 }
 0x9c9   : > { %3287 = vrot.lane.b32.xlu0 %v2971_v46, %s6703_s20  ;;  %3281 = vrot.lane.b32.xlu1 %v2975_v63, %s6702_s14 }
 0x9cb   : > { %v6194_v61 = vpop.eup %6193 }
 0x9cc   : > { %v2437_v6 = vsel %vm1664_vm2, %v6194_v61, 0.0 }
 0x9cd   : > { %3285 = vrot.lane.b32.xlu1 %v2975_v63, %s6701_s27 }
 0x9d1   : > { %3289 = vrot.lane.b32.xlu1 %v2975_v63, %s6703_s20 }
 0x9e8   : > { %2432 = vadd.xlane.f32.xlu0 %v2431_v60 }
 0x9f5   : > { %2438 = vadd.xlane.f32.xlu1 %v2437_v6 }
 0x9fe   : > { %3291 = vrot.lane.b32.xlu0 %v2971_v46, %s6704_s1 }
 0xa02   : > { %2983 = vrot.lane.b32.xlu0 %v7597_v47, %s6702_s14 }
 0xa06   : > { %3293 = vrot.lane.b32.xlu1 %v2975_v63, %s6704_s1 }
 0xa0a   : > { %2985 = vrot.lane.b32.xlu1 %v7602_v52, %s6702_s14 }
 0xa37   : > { %v3280_v56 = vpop.permute.xlu0 %3279  ;;  %v3284_v7 = vpop.permute.xlu1 %3283 }
 0xa38   : > { %3295 = vrot.lane.b32.xlu0 %v3280_v56, %s6704_s1 }
 0xa3b   : > { %v3282_v21 = vpop.permute.xlu1 %3281  ;;  %v3288_v62 = vpop.permute.xlu0 %3287 }
 0xa3c   : > { %3299 = vrot.lane.b32.xlu0 %v3284_v7, %s6704_s1  ;;  %3297 = vrot.lane.b32.xlu1 %v3282_v21, %s6704_s1 }
 0xa3f   : > { %v3286_v8 = vpop.permute.xlu1 %3285 }
 0xa40   : > { %3303 = vrot.lane.b32.xlu0 %v3288_v62, %s6704_s1  ;;  %3301 = vrot.lane.b32.xlu1 %v3286_v8, %s6704_s1 }
 0xa43   : > { %v3290_v11 = vpop.permute.xlu1 %3289 }
 0xa44   : > { %2989 = vrot.lane.b32.xlu0 %v7597_v47, %s6701_s27  ;;  %3305 = vrot.lane.b32.xlu1 %v3290_v11, %s6704_s1 }
 0xa48   : > { %2995 = vrot.lane.b32.xlu0 %v7597_v47, %s6703_s20  ;;  %2991 = vrot.lane.b32.xlu1 %v7602_v52, %s6701_s27 }
 0xa4c   : > { %2997 = vrot.lane.b32.xlu1 %v7602_v52, %s6703_s20 }
 0xa75   : > { %v2433_v12 = vpop.xlane.xlu0 %2432 }
 0xa76   : > { %6195 = vrcp.f32 %v2433_v12 }
 0xa79   : > { %v3292_v22 = vpop.permute.xlu0 %3291 }
 0xa7d   : > { %v7628_v44 = vpop.permute.xlu0 %2983 }
 0xa80   : > { %v6196_v10 = vpop.eup %6195 }
 0xa81   : > { %v2445_v13 = vmul.f32 %v6196_v10, %v6192_v5 }
 0xa82   : > { %v2439_v53 = vpop.xlane.xlu1 %2438 }
 0xa83   : > { %6197 = vrcp.f32 %v2439_v53  ;;  %v2449_v14 = vpack.c.bf16 %v2445_v13, %v2445_v13 }
 0xa85   : > { %5821 = vmatmul.mubr.msk.bf16.vlgmr.msra.gmra.mrb[28].mxu1 %vm1664_vm2, %v2449_v14 }
 0xa86   : > { %5831 = vmatpush3.bf16.msra.mxu1 %v7439_v48  ;;  %5832 = vmatprep.mubr.msk.bf16.mxu1 %vm6705_vm1, %v6699_v3  ;;  %v3294_v32 = vpop.permute.xlu1 %3293 }
 0xa87   : > { %5836 = vmatprep.subr.bf16.mxu1 %v6699_v3 }
 0xa8a   : > { %v7630_v33 = vpop.permute.xlu1 %2985 }
 0xa8d   : > { %v6198_v36 = vpop.eup %6197 }
 0xa8e   : > { %v2447_v15 = vmul.f32 %v6198_v36, %v6194_v61 }
 0xa90   : > { %v2451_v16 = vpack.c.bf16 %v2447_v15, %v2447_v15 }
 0xa92   : > { %5833 = vmatmul.mubr.msk.bf16.vlgmr.msra.gmra.mrb[32].mxu1 %vm1664_vm2, %v2451_v16 }
 0xa93   : > { %5838 = vmatprep.mubr.msk.bf16.mxu1 %vm6705_vm1, %v6699_v3 }
 0xaaa   : > { %v3296_v48 = vpop.permute.xlu0 %3295 }
 0xaae   : > { %v3300_v50 = vpop.permute.xlu0 %3299  ;;  %v3298_v35 = vpop.permute.xlu1 %3297 }
 0xaaf   : > { %v3315_v39 = vcombine.low %v3292_v22, %v3300_v50  ;;  %v3316_v19 = vcombine.high %v3292_v22, %v3300_v50 }
 0xab1   : > { %v3323_v58 = vrot.slane %v3315_v39, %v7242_v9  ;;  %v3330_v29 = vrot.slane %v3316_v19, %v7242_v9 }
 0xab2   : > { %v3304_v49 = vpop.permute.xlu0 %3303  ;;  %v3302_v25 = vpop.permute.xlu1 %3301 }
 0xab3   : > { %v3331_v27 = vcombine.low %v3296_v48, %v3304_v49  ;;  %v3332_v55 = vcombine.high %v3296_v48, %v3304_v49  ;;  %v3383_v51 = vcombine.low %v3294_v32, %v3302_v25  ;;  %v3384_v37 = vcombine.high %v3294_v32, %v3302_v25 }
 0xab5   : > { %v3339_v54 = vrot.slane %v3331_v27, %v7242_v9  ;;  %v3346_v46 = vrot.slane %v3332_v55, %v7242_v9  ;;  %v3391_v21 = vrot.slane %v3383_v51, %v7242_v9  ;;  %v3398_v62 = vrot.slane %v3384_v37, %v7242_v9 }
 0xab6   : > { %v2990_v57 = vpop.permute.xlu0 %2989  ;;  %v3306_v63 = vpop.permute.xlu1 %3305 }
 0xab7   : > { %v3347_v42 = vcombine.low %v3323_v58, %v3339_v54  ;;  %v3348_v43 = vcombine.high %v3323_v58, %v3339_v54  ;;  %v3363_v26 = vcombine.low %v3330_v29, %v3346_v46  ;;  %v3364_v0 = vcombine.high %v3330_v29, %v3346_v46 }
 0xab8   : > { %v3001_v2 = vcombine.low %v7597_v47, %v2990_v57  ;;  %v3002_v4 = vcombine.high %v7597_v47, %v2990_v57  ;;  %v3399_v5 = vcombine.low %v3298_v35, %v3306_v63  ;;  %v3400_v60 = vcombine.high %v3298_v35, %v3306_v63 }
 0xab9   : > { %v3355_v61 = vrot.slane %v3347_v42, %v7249_v24  ;;  %v3362_v6 = vrot.slane %v3348_v43, %v7249_v24  ;;  %v3371_v56 = vrot.slane %v3363_v26, %v7249_v24  ;;  %v3378_v7 = vrot.slane %v3364_v0, %v7249_v24 }
 0xaba   : > { %v3407_v8 = vrot.slane %v3399_v5, %v7242_v9  ;;  %v3414_v11 = vrot.slane %v3400_v60, %v7242_v9  ;;  %v2992_v53 = vpop.permute.xlu1 %2991  ;;  %v2996_v22 = vpop.permute.xlu0 %2995  ;;  %v3009_v32 = vrot.slane %v3001_v2, %v7242_v9  ;;  %v3016_v48 = vrot.slane %v3002_v4, %v7242_v9 }
 0xabb   : > { %v3451_v12 = vcombine.low %v3355_v61, %v3362_v6  ;;  %v5608_v47 = vcombine.high %v3355_v61, %v3362_v6  ;;  %v3467_v10 = vcombine.low %v3371_v56, %v3378_v7  ;;  %v5609_v13 = vcombine.high %v3371_v56, %v3378_v7 }
 0xabc   : > { %v3415_v14 = vcombine.low %v3391_v21, %v3407_v8  ;;  %v3416_v36 = vcombine.high %v3391_v21, %v3407_v8  ;;  %v3431_v15 = vcombine.low %v3398_v62, %v3414_v11  ;;  %v3432_v16 = vcombine.high %v3398_v62, %v3414_v11 }
 0xabd   : > { %v3017_v49 = vcombine.low %v7628_v44, %v2996_v22  ;;  %v3018_v25 = vcombine.high %v7628_v44, %v2996_v22  ;;  %v3069_v27 = vcombine.low %v7602_v52, %v2992_v53  ;;  %v3070_v55 = vcombine.high %v7602_v52, %v2992_v53 }
 0xabe   : > { %v3423_v50 = vrot.slane %v3415_v14, %v7249_v24  ;;  %v3430_v35 = vrot.slane %v3416_v36, %v7249_v24  ;;  %v3439_v39 = vrot.slane %v3431_v15, %v7249_v24  ;;  %v3446_v19 = vrot.slane %v3432_v16, %v7249_v24  ;;  %v2998_v63 = vpop.permute.xlu1 %2997 }
 0xabf   : > { %v7657_v58 = vrot.slane %v3451_v12, %v7242_v9  ;;  %v7660_v29 = vrot.slane %v5608_v47, %v7242_v9  ;;  %v7663_v54 = vrot.slane %v3467_v10, %v7242_v9  ;;  %v7666_v46 = vrot.slane %v5609_v13, %v7242_v9 }
 0xac0   : > { %v3519_v51 = vcombine.low %v3423_v50, %v3430_v35  ;;  %v5610_v37 = vcombine.high %v3423_v50, %v3430_v35  ;;  %v3025_v44 = vrot.slane %v3017_v49, %v7242_v9  ;;  %v3032_v57 = vrot.slane %v3018_v25, %v7242_v9 }
 0xac1   : > { %v3535_v52 = vcombine.low %v3439_v39, %v3446_v19  ;;  %v5611_v42 = vcombine.high %v3439_v39, %v3446_v19  ;;  %v3077_v43 = vrot.slane %v3069_v27, %v7242_v9  ;;  %v3084_v26 = vrot.slane %v3070_v55, %v7242_v9 }
 0xac2   : > { %v3033_v0 = vcombine.low %v3009_v32, %v3025_v44  ;;  %v3034_v2 = vcombine.high %v3009_v32, %v3025_v44  ;;  %v3049_v4 = vcombine.low %v3016_v48, %v3032_v57  ;;  %v3050_v5 = vcombine.high %v3016_v48, %v3032_v57 }
 0xac3   : > { %v3085_v60 = vcombine.low %v7630_v33, %v2998_v63  ;;  %v3086_v61 = vcombine.high %v7630_v33, %v2998_v63  ;;  %v3483_v6 = vcombine.low %v7657_v58, %v7660_v29  ;;  %v3499_v56 = vcombine.low %v7663_v54, %v7666_v46 }
 0xac4   : > { %v3041_v7 = vrot.slane %v3033_v0, %v7249_v24  ;;  %v3048_v21 = vrot.slane %v3034_v2, %v7249_v24  ;;  %v3057_v62 = vrot.slane %v3049_v4, %v7249_v24  ;;  %v3064_v8 = vrot.slane %v3050_v5, %v7249_v24 }
 0xac5   : > { %v3526_v11 = vrot.slane %v3519_v51, %v7242_v9  ;;  %v3534_v12 = vrot.slane %v5610_v37, %v7242_v9  ;;  %v3093_v33 = vrot.slane %v3085_v60, %v7242_v9  ;;  %v3100_v47 = vrot.slane %v3086_v61, %v7242_v9 }
 0xac6   : > { %v3137_v10 = vcombine.low %v3041_v7, %v3048_v21  ;;  %v5604_v13 = vcombine.high %v3041_v7, %v3048_v21  ;;  %v3153_v53 = vcombine.low %v3057_v62, %v3064_v8  ;;  %v5605_v14 = vcombine.high %v3057_v62, %v3064_v8 }
 0xac7   : > { %v3101_v36 = vcombine.low %v3077_v43, %v3093_v33  ;;  %v3102_v15 = vcombine.high %v3077_v43, %v3093_v33  ;;  %v3117_v16 = vcombine.low %v3084_v26, %v3100_v47  ;;  %v3118_v22 = vcombine.high %v3084_v26, %v3100_v47 }
 0xac8   : > { %v3542_v32 = vrot.slane %v3535_v52, %v7242_v9  ;;  %v3550_v48 = vrot.slane %v5611_v42, %v7242_v9  ;;  %v7689_v50 = vrot.slane %v3483_v6, %v7249_v24  ;;  %v3507_v35 = vrot.slane %v3499_v56, %v7249_v24 }
 0xac9   : > { %v3109_v39 = vrot.slane %v3101_v36, %v7249_v24  ;;  %v3116_v19 = vrot.slane %v3102_v15, %v7249_v24  ;;  %v3125_v49 = vrot.slane %v3117_v16, %v7249_v24  ;;  %v3132_v25 = vrot.slane %v3118_v22, %v7249_v24 }
 0xaca   : > { %v3144_v27 = vrot.slane %v3137_v10, %v7242_v9  ;;  %v3152_v55 = vrot.slane %v5604_v13, %v7242_v9  ;;  %v3160_v51 = vrot.slane %v3153_v53, %v7242_v9  ;;  %v3168_v37 = vrot.slane %v5605_v14, %v7242_v9 }
 0xacb   : > { %v3205_v44 = vcombine.low %v3109_v39, %v3116_v19  ;;  %v5606_v57 = vcombine.high %v3109_v39, %v3116_v19  ;;  %v3221_v63 = vcombine.low %v3125_v49, %v3132_v25  ;;  %v5607_v52 = vcombine.high %v3125_v49, %v3132_v25 }
 0xacc   : > { %v3169_v2 = vcombine.low %v3144_v27, %v3152_v55  ;;  %v3551_v4 = vcombine.low %v3526_v11, %v3534_v12  ;;  %v3567_v5 = vcombine.low %v3542_v32, %v3550_v48  ;;  %v3484_v60 = vcombine.high %v7657_v58, %v7660_v29 }
 0xacd   : > { %v3212_v42 = vrot.slane %v3205_v44, %v7242_v9  ;;  %v3220_v43 = vrot.slane %v5606_v57, %v7242_v9  ;;  %v3228_v26 = vrot.slane %v3221_v63, %v7242_v9  ;;  %v3236_v0 = vrot.slane %v5607_v52, %v7242_v9 }
 0xace   : > { %v3185_v61 = vcombine.low %v3160_v51, %v3168_v37  ;;  %v3515_v7 = vcombine.low %v7689_v50, %v3507_v35  ;;  %v3559_v62 = vrot.slane %v3551_v4, %v7249_v24  ;;  %v3575_v8 = vrot.slane %v3567_v5, %v7249_v24 }
 0xacf   : > { %v3237_v6 = vcombine.low %v3212_v42, %v3220_v43  ;;  %v3253_v56 = vcombine.low %v3228_v26, %v3236_v0  ;;  %v3238_v21 = vcombine.high %v3212_v42, %v3220_v43  ;;  %v3500_v33 = vcombine.high %v7663_v54, %v7666_v46 }
 0xad0   : > { %v3254_v10 = vcombine.high %v3228_v26, %v3236_v0  ;;  %v3498_v58 = vrot.slane %v3484_v60, %v7249_v24  ;;  %v3583_v29 = vcombine.low %v3559_v62, %v3575_v8  ;;  %v3552_v14 = vcombine.high %v3526_v11, %v3534_v12 }
 0xad1   : > { %v3245_v47 = vrot.slane %v3237_v6, %v7249_v24  ;;  %v3261_v13 = vrot.slane %v3253_v56, %v7249_v24  ;;  %v3514_v53 = vrot.slane %v3500_v33, %v7249_v24  ;;  %v3568_v36 = vcombine.high %v3542_v32, %v3550_v48 }
 0xad2   : > { %v3170_v15 = vcombine.high %v3144_v27, %v3152_v55  ;;  %v3177_v16 = vrot.slane %v3169_v2, %v7249_v24  ;;  %v3186_v22 = vcombine.high %v3160_v51, %v3168_v37  ;;  %v3193_v39 = vrot.slane %v3185_v61, %v7249_v24 }
 0xad3   : > { %v3587_v19 = vpack.c.bf16 %v3583_v29, %v3515_v7  ;;  %v3566_v54 = vrot.slane %v3552_v14, %v7249_v24  ;;  %v3582_v46 = vrot.slane %v3568_v36, %v7249_v24  ;;  %v3252_v49 = vrot.slane %v3238_v21, %v7249_v24 }
 0xad4   : > { %v3268_v25 = vrot.slane %v3254_v10, %v7249_v24  ;;  %v3269_v44 = vcombine.low %v3245_v47, %v3261_v13  ;;  %v3517_v11 = vcombine.low %v3498_v58, %v3514_v53  ;;  %v3584_v32 = vcombine.high %v3559_v62, %v3575_v8 }
 0xad5   : > { %v7722_v57 = vsel %vm1664_vm2, %v3587_v19, 0  ;;  %v3585_v12 = vcombine.low %v3566_v54, %v3582_v46  ;;  %v3184_v48 = vrot.slane %v3170_v15, %v7249_v24  ;;  %v3200_v27 = vrot.slane %v3186_v22, %v7249_v24 }
 0xad6   : > { %5837 = vmatpush3.bf16.xpose.msra.mxu1 %v7722_v57  ;;  %v3201_v51 = vcombine.low %v3177_v16, %v3193_v39  ;;  %v3516_v37 = vcombine.high %v7689_v50, %v3507_v35  ;;  %v3271_v42 = vcombine.low %v3252_v49, %v3268_v25  ;;  %v3586_v50 = vcombine.high %v3566_v54, %v3582_v46 }
 0xad7   : > { %v3589_v55 = vpack.c.bf16 %v3585_v12, %v3517_v11  ;;  %5842 = vmatprep.subr.bf16.mxu1 %v6699_v3  ;;  %v3203_v26 = vcombine.low %v3184_v48, %v3200_v27  ;;  %v3270_v35 = vcombine.high %v3245_v47, %v3261_v13  ;;  %v3518_v4 = vcombine.high %v3498_v58, %v3514_v53 }
 0xad8   : > { %v7732_v52 = vpack.c.bf16 %v3269_v44, %v3201_v51  ;;  %v3588_v43 = vpack.c.bf16 %v3584_v32, %v3516_v37  ;;  %v3202_v5 = vcombine.high %v3177_v16, %v3193_v39  ;;  %v3272_v56 = vcombine.high %v3252_v49, %v3268_v25 }
 0xad9   : > { %v7730_v63 = vsel %vm1664_vm2, %v3589_v55, 0  ;;  %v7738_v0 = vpack.c.bf16 %v3271_v42, %v3203_v26  ;;  %v3590_v60 = vpack.c.bf16 %v3586_v50, %v3518_v4  ;;  %v3204_v7 = vcombine.high %v3184_v48, %v3200_v27 }
 0xada   : > { %5849 = vmatpush3.bf16.xpose.msra.mxu0 %v7730_v63  ;;  %v7741_v2 = vsel %vm1664_vm2, %v3588_v43, 0  ;;  %v7751_v61 = vpack.c.bf16 %v3270_v35, %v3202_v5  ;;  %v2632_v14 = vrot.slane %v2624_v38, %v7242_v9  ;;  %v2639_v36 = vrot.slane %v2625_v41, %v7242_v9 }
 0xadb   : > { %5860 = vmatprep.subr.bf16.mxu0 %v6699_v3  ;;  %v7756_v6 = vsel %vm1664_vm2, %v3590_v60, 0  ;;  %v7762_v21 = vpack.c.bf16 %v3272_v56, %v3204_v7 }
 0xadd   : > { %5839 = vmatmul.mubr.msk.bf16.vlgmr.msra.gmra.mrb[36].mxu1 %vm1664_vm2, %v7732_v52 }
 0xade   : > { %5843 = vmatpush3.bf16.xpose.msra.mxu1 %v7741_v2  ;;  %5844 = vmatprep.mubr.msk.bf16.mxu1 %vm6705_vm1, %v6699_v3 }
 0xadf   : > { %5854 = vmatprep.subr.bf16.mxu1 %v6699_v3 }
 0xae1   : > { %5851 = vmatmul.mubr.msk.bf16.vlgmr.msra.gmra.mrb[36].mxu0 %vm1664_vm2, %v7738_v0 }
 0xae2   : > { %5862 = vmatprep.mubr.msk.bf16.mxu0 %vm6705_vm1, %v6699_v3 }
 0xae5   : > { %5845 = vmatmul.mubr.msk.bf16.vlgmr.msra.gmra.mrb[40].mxu1 %vm1664_vm2, %v7751_v61 }
 0xae6   : > { %5855 = vmatpush3.bf16.xpose.msra.mxu1 %v7756_v6  ;;  %5856 = vmatprep.mubr.msk.bf16.mxu1 %vm6705_vm1, %v6699_v3 }
 0xae7   : > { %5866 = vmatprep.subr.bf16.mxu1 %v6699_v3 }
 0xaed   : > { %5857 = vmatmul.mubr.msk.bf16.vlgmr.msra.gmra.mrb[44].mxu1 %vm1664_vm2, %v7762_v21 }
 0xaee   : > { %5868 = vmatprep.mubr.msk.bf16.mxu1 %vm6705_vm1, %v6699_v3 }
 0xb58   : > { %v2532_v62 = vpop.f32.mrb[28].mxu1 }
 0xb59   : > { %v5822_v8 = vpop.f32.mrb[29].mxu1 }
 0xb5a   : > { %v2535_v33 = vpop.f32.mrb[30].mxu1 }
 0xb5b   : > { %v5823_v47 = vpop.f32.mrb[31].mxu1 }
 0xb65   : > { %v2618_v10 = vpop.f32.mrb[32].mxu1 }
 0xb66   : > { %v2640_v13 = vcombine.low %v2532_v62, %v2618_v10  ;;  %v2641_v58 = vcombine.high %v2532_v62, %v2618_v10  ;;  %v5834_v29 = vpop.f32.mrb[33].mxu1 }
 0xb67   : > { %v2621_v53 = vpop.f32.mrb[34].mxu1 }
 0xb68   : > { %v2648_v15 = vrot.slane %v2640_v13, %v7242_v9  ;;  %v2655_v16 = vrot.slane %v2641_v58, %v7242_v9  ;;  %v5835_v22 = vpop.f32.mrb[35].mxu1 }
 0xb6a   : > { %v2656_v39 = vcombine.low %v2632_v14, %v2648_v15  ;;  %v2657_v19 = vcombine.high %v2632_v14, %v2648_v15  ;;  %v2672_v54 = vcombine.low %v2639_v36, %v2655_v16  ;;  %v2673_v46 = vcombine.high %v2639_v36, %v2655_v16 }
 0xb6c   : > { %v2664_v49 = vrot.slane %v2656_v39, %v7249_v24  ;;  %v2671_v25 = vrot.slane %v2657_v19, %v7249_v24  ;;  %v2680_v38 = vrot.slane %v2672_v54, %v7249_v24  ;;  %v2687_v44 = vrot.slane %v2673_v46, %v7249_v24 }
 0xb6e   : > { %v2692_v11 = vcombine.low %v2664_v49, %v2671_v25  ;;  %v5589_v34 = vcombine.high %v2664_v49, %v2671_v25  ;;  %v2708_v40 = vcombine.low %v2680_v38, %v2687_v44  ;;  %v5590_v41 = vcombine.high %v2680_v38, %v2687_v44 }
 0xb70   : > { %v2699_v12 = vrot.slane %v2692_v11, %v7242_v9  ;;  %v2707_v32 = vrot.slane %v5589_v34, %v7242_v9  ;;  %v2715_v48 = vrot.slane %v2708_v40, %v7242_v9  ;;  %v2723_v27 = vrot.slane %v5590_v41, %v7242_v9 }
 0xb72   : > { %v2724_v55 = vcombine.low %v2699_v12, %v2707_v32  ;;  %v2740_v51 = vcombine.low %v2715_v48, %v2723_v27  ;;  %v2725_v37 = vcombine.high %v2699_v12, %v2707_v32  ;;  %v2741_v42 = vcombine.high %v2715_v48, %v2723_v27 }
 0xb74   : > { %v7787_v43 = vrot.slane %v2724_v55, %v7249_v24  ;;  %v7790_v26 = vrot.slane %v2740_v51, %v7249_v24  ;;  %v7793_v50 = vrot.slane %v2725_v37, %v7249_v24  ;;  %v7796_v35 = vrot.slane %v2741_v42, %v7249_v24 }
 0xb76   : > { %v2757_v4 = vcombine.high %v7787_v43, %v7790_v26  ;;  %v2758_v5 = vcombine.low %v7793_v50, %v7796_v35  ;;  %v2759_v60 = vcombine.high %v7793_v50, %v7796_v35  ;;  %v2756_v56 = vcombine.low %v7787_v43, %v7790_v26  ;;  %v6242_v26 = vld [vmem:[#allocation5 + $0x10] sm:$0xff] }
 0xbb0   : > { %v3927_v7 = vpop.f32.mrb[36].mxu1 }
 0xbb1   : > { %v5840_v62 = vpop.f32.mrb[37].mxu1  ;;  %v4071_v8 = vsel %vm1664_vm2, %v3927_v7, -inf }
 0xbb2   : > { %4072 = vmax.xlane.f32.xlu0 %v4071_v8  ;;  %v3930_v33 = vpop.f32.mrb[38].mxu1 }
 0xbb3   : > { %v5841_v47 = vpop.f32.mrb[39].mxu1 }
 0xbb4   : > { %v4019_v10 = vpop.f32.mrb[36].mxu0 }
 0xbb5   : > { %v5852_v13 = vpop.f32.mrb[37].mxu0  ;;  %v4077_v58 = vsel %vm1664_vm2, %v4019_v10, -inf }
 0xbb6   : > { %v4022_v29 = vpop.f32.mrb[38].mxu0  ;;  %4078 = vmax.xlane.f32.xlu0 %v4077_v58 }
 0xbb7   : > { %v5853_v53 = vpop.f32.mrb[39].mxu0 }
 0xbb8   : > { %v3973_v14 = vpop.f32.mrb[40].mxu1 }
 0xbb9   : > { %v5846_v36 = vpop.f32.mrb[41].mxu1  ;;  %v4074_v15 = vsel %vm1664_vm2, %v3973_v14, -inf }
 0xbba   : > { %4075 = vmax.xlane.f32.xlu1 %v4074_v15  ;;  %v3976_v16 = vpop.f32.mrb[42].mxu1 }
 0xbbb   : > { %v5847_v22 = vpop.f32.mrb[43].mxu1 }
 0xbc0   : > { %v4065_v39 = vpop.f32.mrb[44].mxu1 }
 0xbc1   : > { %v5858_v19 = vpop.f32.mrb[45].mxu1  ;;  %v4080_v54 = vsel %vm1664_vm2, %v4065_v39, -inf }
 0xbc2   : > { %4081 = vmax.xlane.f32.xlu0 %v4080_v54  ;;  %v4068_v46 = vpop.f32.mrb[46].mxu1 }
 0xbc3   : > { %v5859_v49 = vpop.f32.mrb[47].mxu1 }
 0xbcb   : > { %3595 = vrot.lane.b32.xlu1 %v7588_v59, %s6702_s14 }
 0xbcf   : > { %3599 = vrot.lane.b32.xlu1 %v7584_v1, %s6701_s27 }
 0xbd3   : > { %3601 = vrot.lane.b32.xlu1 %v7588_v59, %s6701_s27 }
 0xbd8   : > { %3593 = vrot.lane.b32.xlu0 %v7584_v1, %s6702_s14 }
 0xc3f   : > { %v4073_v25 = vpop.xlane.xlu0 %4072 }
 0xc40   : > { %v4083_v38 = vsub.f32 %v3927_v7, %v4073_v25 }
 0xc42   : > { %v4087_v44 = vmul.f32 1.442695, %v4083_v38 }
 0xc43   : > { %v4079_v27 = vpop.xlane.xlu0 %4078 }
 0xc44   : > { %6199 = vpow2.f32 %v4087_v44  ;;  %v4085_v55 = vsub.f32 %v4019_v10, %v4079_v27 }
 0xc46   : > { %v4091_v51 = vmul.f32 1.442695, %v4085_v55 }
 0xc47   : > { %v4076_v11 = vpop.xlane.xlu1 %4075 }
 0xc48   : > { %v4084_v34 = vsub.f32 %v3973_v14, %v4076_v11 }
 0xc4a   : > { %v4089_v40 = vmul.f32 1.442695, %v4084_v34 }
 0xc4b   : > { %v3596_v13 = vpop.permute.xlu1 %3595 }
 0xc4c   : > { %6201 = vpow2.f32 %v4089_v40 }
 0xc4d   : > { %6203 = vpow2.f32 %v4091_v51 }
 0xc4e   : > { %v7818_v41 = vpop.eup %6199 }
 0xc4f   : > { %v4095_v12 = vsel %vm1664_vm2, %v7818_v41, 0.0  ;;  %v4082_v37 = vpop.xlane.xlu0 %4081  ;;  %v3600_v58 = vpop.permute.xlu1 %3599 }
 0xc50   : > { %4096 = vadd.xlane.f32.xlu0 %v4095_v12  ;;  %v4086_v42 = vsub.f32 %v4065_v39, %v4082_v37  ;;  %v3611_v53 = vcombine.low %v7584_v1, %v3600_v58  ;;  %v3612_v14 = vcombine.high %v7584_v1, %v3600_v58 }
 0xc52   : > { %v4093_v7 = vmul.f32 1.442695, %v4086_v42  ;;  %v3619_v39 = vrot.slane %v3611_v53, %v7242_v9  ;;  %v3626_v19 = vrot.slane %v3612_v14, %v7242_v9 }
 0xc53   : > { %v3594_v10 = vpop.permute.xlu0 %3593  ;;  %v3602_v36 = vpop.permute.xlu1 %3601 }
 0xc54   : > { %6205 = vpow2.f32 %v4093_v7  ;;  %v3679_v34 = vcombine.low %v7588_v59, %v3602_v36  ;;  %v3680_v27 = vcombine.high %v7588_v59, %v3602_v36 }
 0xc56   : > { %v7822_v32 = vpop.eup %6201  ;;  %v3694_v58 = vrot.slane %v3680_v27, %v7242_v9 }
 0xc57   : > { %v4098_v48 = vsel %vm1664_vm2, %v7822_v32, 0.0  ;;  %v7830_v62 = vpop.eup %6203 }
 0xc58   : > { %4099 = vadd.xlane.f32.xlu1 %v4098_v48  ;;  %v4101_v8 = vsel %vm1664_vm2, %v7830_v62, 0.0 }
 0xc5e   : > { %v7834_v33 = vpop.eup %6205 }
 0xc5f   : > { %v4104_v47 = vsel %vm1664_vm2, %v7834_v33, 0.0 }
 0xc66   : > { %3605 = vrot.lane.b32.xlu0 %v7584_v1, %s6703_s20 }
 0xc69   : > { %3607 = vrot.lane.b32.xlu1 %v7588_v59, %s6703_s20 }
 0xc85   : > { %4102 = vadd.xlane.f32.xlu0 %v4101_v8 }
 0xc8d   : > { %4105 = vadd.xlane.f32.xlu1 %v4104_v47 }
 0xcdd   : > { %v4097_v29 = vpop.xlane.xlu0 %4096 }
 0xcde   : > { %6207 = vrcp.f32 %v4097_v29 }
 0xce1   : > { %v3606_v15 = vpop.permute.xlu0 %3605 }
 0xce2   : > { %v3627_v16 = vcombine.low %v3594_v10, %v3606_v15  ;;  %v3628_v22 = vcombine.high %v3594_v10, %v3606_v15  ;;  %v3687_v10 = vrot.slane %v3679_v34, %v7242_v9 }
 0xce4   : > { %v3635_v54 = vrot.slane %v3627_v16, %v7242_v9  ;;  %v3642_v46 = vrot.slane %v3628_v22, %v7242_v9 }
 0xce5   : > { %v4100_v49 = vpop.xlane.xlu1 %4099 }
 0xce6   : > { %v3643_v25 = vcombine.low %v3619_v39, %v3635_v54  ;;  %v3644_v38 = vcombine.high %v3619_v39, %v3635_v54  ;;  %v3659_v44 = vcombine.low %v3626_v19, %v3642_v46  ;;  %v3660_v11 = vcombine.high %v3626_v19, %v3642_v46 }
 0xce7   : > { %6209 = vrcp.f32 %v4100_v49 }
 0xce8   : > { %v3651_v1 = vrot.slane %v3643_v25, %v7249_v24  ;;  %v3658_v40 = vrot.slane %v3644_v38, %v7249_v24  ;;  %v3667_v12 = vrot.slane %v3659_v44, %v7249_v24  ;;  %v3674_v48 = vrot.slane %v3660_v11, %v7249_v24 }
 0xce9   : > { %v3608_v55 = vpop.permute.xlu1 %3607 }
 0xcea   : > { %v3747_v51 = vcombine.low %v3651_v1, %v3658_v40  ;;  %v5612_v37 = vcombine.high %v3651_v1, %v3658_v40  ;;  %v3763_v42 = vcombine.low %v3667_v12, %v3674_v48  ;;  %v5613_v7 = vcombine.high %v3667_v12, %v3674_v48 }
 0xceb   : > { %v3695_v8 = vcombine.low %v3596_v13, %v3608_v55  ;;  %v3696_v47 = vcombine.high %v3596_v13, %v3608_v55  ;;  %v6208_v55 = vpop.eup %6207 }
 0xcec   : > { %v3754_v15 = vrot.slane %v3747_v51, %v7242_v9  ;;  %v3762_v59 = vrot.slane %v5612_v37, %v7242_v9  ;;  %v3770_v36 = vrot.slane %v3763_v42, %v7242_v9  ;;  %v3778_v16 = vrot.slane %v5613_v7, %v7242_v9 }
 0xced   : > { %v3703_v53 = vrot.slane %v3695_v8, %v7242_v9  ;;  %v3710_v14 = vrot.slane %v3696_v47, %v7242_v9 }
 0xcee   : > { %v3779_v25 = vcombine.low %v3754_v15, %v3762_v59  ;;  %v3795_v38 = vcombine.low %v3770_v36, %v3778_v16  ;;  %v3780_v42 = vcombine.high %v3754_v15, %v3762_v59  ;;  %v3796_v7 = vcombine.high %v3770_v36, %v3778_v16 }
 0xcef   : > { %v3711_v22 = vcombine.low %v3687_v10, %v3703_v53  ;;  %v3712_v13 = vcombine.high %v3687_v10, %v3703_v53  ;;  %v3727_v39 = vcombine.low %v3694_v58, %v3710_v14  ;;  %v3728_v19 = vcombine.high %v3694_v58, %v3710_v14 }
 0xcf0   : > { %v3787_v51 = vrot.slane %v3779_v25, %v7249_v24  ;;  %v3803_v37 = vrot.slane %v3795_v38, %v7249_v24  ;;  %v4111_v16 = vmul.f32 %v6208_v55, %v7818_v41 }
 0xcf1   : > { %v3719_v29 = vrot.slane %v3711_v22, %v7249_v24  ;;  %v3726_v54 = vrot.slane %v3712_v13, %v7249_v24  ;;  %v3735_v46 = vrot.slane %v3727_v39, %v7249_v24  ;;  %v3742_v49 = vrot.slane %v3728_v19, %v7249_v24  ;;  %v6210_v8 = vpop.eup %6209 }
 0xcf2   : > { %v3794_v19 = vrot.slane %v3780_v42, %v7249_v24  ;;  %v3812_v59 = vcombine.high %v3787_v51, %v3803_v37 }
 0xcf3   : > { %v3815_v44 = vcombine.low %v3719_v29, %v3726_v54  ;;  %v5614_v11 = vcombine.high %v3719_v29, %v3726_v54  ;;  %v3831_v34 = vcombine.low %v3735_v46, %v3742_v49  ;;  %v5615_v1 = vcombine.high %v3735_v46, %v3742_v49 }
 0xcf4   : > { %v3810_v29 = vrot.slane %v3796_v7, %v7249_v24  ;;  %v3811_v54 = vcombine.low %v3787_v51, %v3803_v37  ;;  %v4112_v46 = vmul.f32 %v6210_v8, %v7822_v32  ;;  %v4446_v8 = vrot.slane %v7732_v52, 4 }
 0xcf5   : > { %v3822_v40 = vrot.slane %v3815_v44, %v7242_v9  ;;  %v3830_v12 = vrot.slane %v5614_v11, %v7242_v9  ;;  %v3838_v48 = vrot.slane %v3831_v34, %v7242_v9  ;;  %v3846_v27 = vrot.slane %v5615_v1, %v7242_v9 }
 0xcf6   : > { %v3813_v11 = vcombine.low %v3794_v19, %v3810_v29  ;;  %v3814_v34 = vcombine.high %v3794_v19, %v3810_v29  ;;  %v4115_v1 = vpack.c.bf16 %v4111_v16, %v4111_v16  ;;  %v4536_v52 = vrot.slane %v7738_v0, 4 }
 0xcf7   : > { %v3847_v47 = vcombine.low %v3822_v40, %v3830_v12  ;;  %v3863_v10 = vcombine.low %v3838_v48, %v3846_v27  ;;  %v3848_v58 = vcombine.high %v3822_v40, %v3830_v12  ;;  %v3864_v53 = vcombine.high %v3838_v48, %v3846_v27 }
 0xcf8   : > { %v4116_v40 = vpack.c.bf16 %v4112_v46, %v4112_v46 }
 0xcf9   : > { %v3855_v14 = vrot.slane %v3847_v47, %v7249_v24  ;;  %v3871_v22 = vrot.slane %v3863_v10, %v7249_v24  ;;  %v3862_v13 = vrot.slane %v3848_v58, %v7249_v24  ;;  %v3878_v39 = vrot.slane %v3864_v53, %v7249_v24 }
 0xcfb   : > { %v3879_v15 = vcombine.low %v3855_v14, %v3871_v22  ;;  %v3880_v36 = vcombine.high %v3855_v14, %v3871_v22  ;;  %v3881_v38 = vcombine.low %v3862_v13, %v3878_v39  ;;  %v3882_v44 = vcombine.high %v3862_v13, %v3878_v39 }
 0xcfd   : > { %v3883_v49 = vpack.c.bf16 %v3879_v15, %v3811_v54  ;;  %v3884_v25 = vpack.c.bf16 %v3880_v36, %v3812_v59  ;;  %v7878_v12 = vpack.c.bf16 %v3881_v38, %v3813_v11  ;;  %v7880_v48 = vpack.c.bf16 %v3882_v44, %v3814_v34 }
 0xcff   : > { %5861 = vmatpush3.bf16.msra.mxu0 %v3883_v49  ;;  %5867 = vmatpush3.bf16.msra.mxu1 %v3884_v25 }
 0xd00   : > { %5872 = vmatprep.subr.bf16.mxu0 %v6699_v3  ;;  %5878 = vmatprep.subr.bf16.mxu1 %v6699_v3 }
 0xd02   : > { %5863 = vmatmul.mubr.msk.bf16.vlgmr.msra.gmra.mrb[40].mxu0 %vm1664_vm2, %v4115_v1  ;;  %5869 = vmatmul.mubr.msk.bf16.vlgmr.msra.gmra.mrb[48].mxu1 %vm1664_vm2, %v4116_v40 }
 0xd03   : > { %5873 = vmatpush3.bf16.msra.mxu0 %v7878_v12  ;;  %5879 = vmatpush3.bf16.msra.mxu1 %v7880_v48 }
 0xd04   : > { %5874 = vmatprep.mubr.msk.bf16.mxu0 %vm6705_vm1, %v6699_v3  ;;  %5884 = vmatprep.subr.bf16.mxu0 %v6699_v3 }
 0xd05   : > { %5880 = vmatprep.mubr.msk.bf16.mxu1 %vm6705_vm1, %v6699_v3  ;;  %5890 = vmatprep.subr.bf16.mxu1 %v6699_v3 }
 0xd12   : > { %v4103_v41 = vpop.xlane.xlu0 %4102 }
 0xd13   : > { %6211 = vrcp.f32 %v4103_v41 }
 0xd1a   : > { %v4106_v32 = vpop.xlane.xlu1 %4105 }
 0xd1b   : > { %6213 = vrcp.f32 %v4106_v32 }
 0xd1d   : > { %v6212_v27 = vpop.eup %6211 }
 0xd1e   : > { %v4113_v55 = vmul.f32 %v6212_v27, %v7830_v62 }
 0xd20   : > { %v4117_v51 = vpack.c.bf16 %v4113_v55, %v4113_v55 }
 0xd22   : > { %5875 = vmatmul.mubr.msk.bf16.vlgmr.msra.gmra.mrb[44].mxu0 %vm1664_vm2, %v4117_v51 }
 0xd23   : > { %5885 = vmatpush3.bf16.xpose.msra.mxu0 %v7722_v57  ;;  %5886 = vmatprep.mubr.msk.bf16.mxu0 %vm6705_vm1, %v6699_v3  ;;  %v4491_v57 = vrot.slane %v7751_v61, 4 }
 0xd24   : > { %5896 = vmatprep.subr.bf16.mxu0 %v6699_v3 }
 0xd25   : > { %v6214_v37 = vpop.eup %6213 }
 0xd26   : > { %v4114_v42 = vmul.f32 %v6214_v37, %v7834_v33 }
 0xd28   : > { %v4118_v7 = vpack.c.bf16 %v4114_v42, %v4114_v42 }
 0xd2a   : > { %5881 = vmatmul.mubr.msk.bf16.vlgmr.msra.gmra.mrb[52].mxu1 %vm1664_vm2, %v4118_v7  ;;  %5887 = vmatmul.mubr.msk.bf16.vlgmr.msra.gmra.mrb[48].mxu0 %vm1664_vm2, %v4446_v8 }
 0xd2b   : > { %5891 = vmatpush3.bf16.xpose.msra.mxu1 %v7741_v2  ;;  %5897 = vmatpush3.bf16.xpose.msra.mxu0 %v7730_v63  ;;  %v4581_v63 = vrot.slane %v7762_v21, 4 }
 0xd2c   : > { %5892 = vmatprep.mubr.msk.bf16.mxu1 %vm6705_vm1, %v6699_v3  ;;  %5898 = vmatprep.mubr.msk.bf16.mxu0 %vm6705_vm1, %v6699_v3 }
 0xd2d   : > { %5902 = vmatprep.subr.bf16.mxu1 %v6699_v3  ;;  %5908 = vmatprep.subr.bf16.mxu0 %v6699_v3 }
 0xd32   : > { %5893 = vmatmul.mubr.msk.bf16.vlgmr.msra.gmra.mrb[56].mxu1 %vm1664_vm2, %v4491_v57  ;;  %5899 = vmatmul.mubr.msk.bf16.vlgmr.msra.gmra.mrb[52].mxu0 %vm1664_vm2, %v4536_v52 }
 0xd33   : > { %5903 = vmatpush3.bf16.xpose.msra.mxu1 %v7756_v6  ;;  %5909 = vmatpush3.bf16.msra.mxu0 %v3883_v49 }
 0xd34   : > { %5904 = vmatprep.mubr.msk.bf16.mxu1 %vm6705_vm1, %v6699_v3  ;;  %5914 = vmatprep.subr.bf16.mxu1 %v6699_v3 }
 0xd35   : > { %5910 = vmatprep.mubr.msk.bf16.mxu0 %vm6705_vm1, %v6699_v3  ;;  %5920 = vmatprep.subr.bf16.mxu0 %v6699_v3 }
 0xd3a   : > { %5905 = vmatmul.mubr.msk.bf16.vlgmr.msra.gmra.mrb[60].mxu1 %vm1664_vm2, %v4581_v63 }
 0xd3b   : > { %5915 = vmatpush3.bf16.msra.mxu1 %v3884_v25  ;;  %5916 = vmatprep.mubr.msk.bf16.mxu1 %vm6705_vm1, %v6699_v3 }
 0xd3c   : > { %5926 = vmatprep.subr.bf16.mxu1 %v6699_v3 }
 0xdd5   : > { %v4156_v0 = vpop.f32.mrb[40].mxu0  ;;  %v4199_v2 = vpop.f32.mrb[48].mxu1 }
 0xdd6   : > { %v5864_v61 = vpop.f32.mrb[41].mxu0  ;;  %v5870_v6 = vpop.f32.mrb[49].mxu1 }
 0xdd7   : > { %v4159_v62 = vpop.f32.mrb[42].mxu0  ;;  %v4202_v33 = vpop.f32.mrb[50].mxu1 }
 0xdd8   : > { %v5865_v47 = vpop.f32.mrb[43].mxu0  ;;  %v5871_v10 = vpop.f32.mrb[51].mxu1 }
 0xdf5   : > { %v4242_v58 = vpop.f32.mrb[44].mxu0 }
 0xdf6   : > { %v4291_v53 = vcombine.low %v4156_v0, %v4242_v58  ;;  %v4292_v14 = vcombine.high %v4156_v0, %v4242_v58  ;;  %v5876_v21 = vpop.f32.mrb[45].mxu0 }
 0xdf7   : > { %v4245_v22 = vpop.f32.mrb[46].mxu0 }
 0xdf8   : > { %v5877_v13 = vpop.f32.mrb[47].mxu0  ;;  %v4299_v49 = vrot.slane %v4291_v53, %v7242_v9  ;;  %v4306_v25 = vrot.slane %v4292_v14, %v7242_v9 }
 0xdfd   : > { %v4285_v39 = vpop.f32.mrb[52].mxu1  ;;  %v7926_v19 = vpop.f32.mrb[48].mxu0 }
 0xdfe   : > { %v4307_v29 = vcombine.low %v4199_v2, %v4285_v39  ;;  %v4308_v54 = vcombine.high %v4199_v2, %v4285_v39  ;;  %v5882_v15 = vpop.f32.mrb[53].mxu1  ;;  %v5888_v59 = vpop.f32.mrb[49].mxu0  ;;  %v4625_v36 = vsel %vm1664_vm2, %v7926_v19, -inf }
 0xdff   : > { %4626 = vmax.xlane.f32.xlu0 %v4625_v36  ;;  %v4288_v16 = vpop.f32.mrb[54].mxu1  ;;  %v4487_v46 = vpop.f32.mrb[50].mxu0 }
 0xe00   : > { %v4315_v38 = vrot.slane %v4307_v29, %v7242_v9  ;;  %v4322_v44 = vrot.slane %v4308_v54, %v7242_v9  ;;  %v5883_v11 = vpop.f32.mrb[55].mxu1  ;;  %v5889_v34 = vpop.f32.mrb[51].mxu0 }
 0xe02   : > { %v4323_v1 = vcombine.low %v4299_v49, %v4315_v38  ;;  %v4324_v40 = vcombine.high %v4299_v49, %v4315_v38  ;;  %v4339_v41 = vcombine.low %v4306_v25, %v4322_v44  ;;  %v4340_v32 = vcombine.high %v4306_v25, %v4322_v44 }
 0xe04   : > { %v4331_v27 = vrot.slane %v4323_v1, %v7249_v24  ;;  %v4338_v55 = vrot.slane %v4324_v40, %v7249_v24  ;;  %v4347_v51 = vrot.slane %v4339_v41, %v7249_v24  ;;  %v4354_v37 = vrot.slane %v4340_v32, %v7249_v24 }
 0xe05   : > { %v4529_v42 = vpop.f32.mrb[56].mxu1  ;;  %v4574_v7 = vpop.f32.mrb[52].mxu0 }
 0xe06   : > { %v4359_v8 = vcombine.low %v4331_v27, %v4338_v55  ;;  %v5624_v57 = vcombine.high %v4331_v27, %v4338_v55  ;;  %v4375_v52 = vcombine.low %v4347_v51, %v4354_v37  ;;  %v5625_v63 = vcombine.high %v4347_v51, %v4354_v37  ;;  %v5894_v0 = vpop.f32.mrb[57].mxu1  ;;  %v5900_v2 = vpop.f32.mrb[53].mxu0 }
 0xe07   : > { %v4577_v61 = vpop.f32.mrb[54].mxu0  ;;  %v4628_v6 = vsel %vm1664_vm2, %v4529_v42, -inf  ;;  %v4532_v62 = vpop.f32.mrb[58].mxu1  ;;  %v4631_v29 = vsel %vm1664_vm2, %v4574_v7, -inf }
 0xe08   : > { %4629 = vmax.xlane.f32.xlu0 %v4628_v6  ;;  %v5895_v33 = vpop.f32.mrb[59].mxu1  ;;  %v5901_v47 = vpop.f32.mrb[55].mxu0  ;;  %v4366_v10 = vrot.slane %v4359_v8, %v7242_v9  ;;  %v4374_v58 = vrot.slane %v5624_v57, %v7242_v9  ;;  %v4382_v53 = vrot.slane %v4375_v52, %v7242_v9  ;;  %v4390_v14 = vrot.slane %v5625_v63, %v7242_v9 }
 0xe0a   : > { %v4391_v21 = vcombine.low %v4366_v10, %v4374_v58  ;;  %v4407_v22 = vcombine.low %v4382_v53, %v4390_v14  ;;  %v4392_v13 = vcombine.high %v4366_v10, %v4374_v58  ;;  %v4408_v39 = vcombine.high %v4382_v53, %v4390_v14 }
 0xe0c   : > { %4632 = vmax.xlane.f32.xlu0 %v4631_v29  ;;  %v7945_v54 = vrot.slane %v4391_v21, %v7249_v24  ;;  %v7948_v15 = vrot.slane %v4407_v22, %v7249_v24  ;;  %v4406_v59 = vrot.slane %v4392_v13, %v7249_v24  ;;  %v4422_v36 = vrot.slane %v4408_v39, %v7249_v24 }
 0xe0d   : > { %v4619_v16 = vpop.f32.mrb[60].mxu1 }
 0xe0e   : > { %v5906_v46 = vpop.f32.mrb[61].mxu1  ;;  %v4634_v49 = vsel %vm1664_vm2, %v4619_v16, -inf  ;;  %v4424_v25 = vcombine.high %v7945_v54, %v7948_v15  ;;  %v4425_v38 = vcombine.low %v4406_v59, %v4422_v36  ;;  %v4426_v44 = vcombine.high %v4406_v59, %v4422_v36 }
 0xe0f   : > { %4635 = vmax.xlane.f32.xlu1 %v4634_v49  ;;  %v4622_v11 = vpop.f32.mrb[62].mxu1  ;;  %v4423_v34 = vcombine.low %v7945_v54, %v7948_v15 }
 0xe10   : > { %v5907_v1 = vpop.f32.mrb[63].mxu1  ;;  %v6241_v11 = vld [vmem:[#allocation5 + $0x8] sm:$0xff] }
 0xe8c   : > { %v4627_v40 = vpop.xlane.xlu0 %4626 }
 0xe8d   : > { %v4637_v41 = vsub.f32 %v7926_v19, %v4627_v40 }
 0xe8f   : > { %v4641_v32 = vmul.f32 1.442695, %v4637_v41 }
 0xe91   : > { %6215 = vpow2.f32 %v4641_v32 }
 0xe95   : > { %v4630_v27 = vpop.xlane.xlu0 %4629 }
 0xe96   : > { %v4638_v55 = vsub.f32 %v4529_v42, %v4630_v27 }
 0xe98   : > { %v4643_v51 = vmul.f32 1.442695, %v4638_v55 }
 0xe99   : > { %v4633_v37 = vpop.xlane.xlu0 %4632 }
 0xe9a   : > { %6217 = vpow2.f32 %v4643_v51  ;;  %v4639_v8 = vsub.f32 %v4574_v7, %v4633_v37 }
 0xe9b   : > { %v6216_v57 = vpop.eup %6215 }
 0xe9c   : > { %v4645_v52 = vmul.f32 1.442695, %v4639_v8  ;;  %v4636_v63 = vpop.xlane.xlu1 %4635  ;;  %v4649_v0 = vsel %vm1664_vm2, %v6216_v57, 0.0 }
 0xe9d   : > { %v4640_v2 = vsub.f32 %v4619_v16, %v4636_v63  ;;  %4650 = vadd.xlane.f32.xlu0 %v4649_v0 }
 0xe9e   : > { %6219 = vpow2.f32 %v4645_v52 }
 0xe9f   : > { %v4647_v61 = vmul.f32 1.442695, %v4640_v2 }
 0xea1   : > { %6221 = vpow2.f32 %v4647_v61 }
 0xea4   : > { %v6218_v6 = vpop.eup %6217 }
 0xea5   : > { %v4652_v19 = vsel %vm1664_vm2, %v6218_v6, 0.0 }
 0xea6   : > { %4653 = vadd.xlane.f32.xlu1 %v4652_v19 }
 0xea8   : > { %v6220_v62 = vpop.eup %6219 }
 0xea9   : > { %v4655_v42 = vsel %vm1664_vm2, %v6220_v62, 0.0 }
 0xeaa   : > { %4656 = vadd.xlane.f32.xlu0 %v4655_v42 }
 0xeab   : > { %v6222_v33 = vpop.eup %6221 }
 0xeac   : > { %v4658_v7 = vsel %vm1664_vm2, %v6222_v33, 0.0 }
 0xead   : > { %4659 = vadd.xlane.f32.xlu1 %v4658_v7 }
 0xebe   : > { %2761 = vrot.lane.b32.xlu1 %v2757_v4, %s6708_s24 }
 0xec0   : > { %2206 = vrot.lane.b32.xlu0 %v2202_v23, %s6708_s24 }
 0xec2   : > { %4428 = vrot.lane.b32.xlu1 %v4424_v25, %s6708_s24 }
 0xec4   : > { %2210 = vrot.lane.b32.xlu0 %v2203_v45, %s6709_s13 }
 0xec6   : > { %2765 = vrot.lane.b32.xlu1 %v2758_v5, %s6709_s13 }
 0xec8   : > { %4432 = vrot.lane.b32.xlu0 %v4425_v38, %s6709_s13 }
 0xeca   : > { %2769 = vrot.lane.b32.xlu1 %v2759_v60, %s6710_s5 }
 0xecc   : > { %2214 = vrot.lane.b32.xlu0 %v2204_v30, %s6710_s5 }
 0xed0   : > { %4436 = vrot.lane.b32.xlu0 %v4426_v44, %s6710_s5 }
 0xf2a   : > { %v4651_v23 = vpop.xlane.xlu0 %4650 }
 0xf2b   : > { %6223 = vrcp.f32 %v4651_v23 }
 0xf33   : > { %v4654_v45 = vpop.xlane.xlu1 %4653 }
 0xf34   : > { %6225 = vrcp.f32 %v4654_v45 }
 0xf35   : > { %v6224_v4 = vpop.eup %6223 }
 0xf36   : > { %v4665_v5 = vmul.f32 %v6224_v4, %v6216_v57 }
 0xf37   : > { %v4657_v47 = vpop.xlane.xlu0 %4656 }
 0xf38   : > { %6227 = vrcp.f32 %v4657_v47  ;;  %v4669_v10 = vpack.c.bf16 %v4665_v5, %v4665_v5 }
 0xf3a   : > { %5911 = vmatmul.mubr.msk.bf16.vlgmr.msra.gmra.mrb[56].mxu0 %vm1664_vm2, %v4669_v10  ;;  %v4660_v50 = vpop.xlane.xlu1 %4659 }
 0xf3b   : > { %5921 = vmatpush3.bf16.msra.mxu0 %v7878_v12  ;;  %v2207_v35 = vpop.permute.xlu0 %2206  ;;  %6229 = vrcp.f32 %v4660_v50  ;;  %5922 = vmatprep.mubr.msk.bf16.mxu0 %vm6705_vm1, %v6699_v3 }
 0xf3c   : > { %v2217_v39 = vsel %vm1664_vm2, %v2201_v31, %v2207_v35 }
 0xf3e   : > { %v6226_v18 = vpop.eup %6225  ;;  %v2762_v20 = vpop.permute.xlu1 %2761 }
 0xf3f   : > { %v4666_v30 = vmul.f32 %v6226_v18, %v6218_v6  ;;  %v2211_v60 = vpop.permute.xlu0 %2210  ;;  %v2772_v28 = vsel %vm1664_vm2, %v2756_v56, %v2762_v20 }
 0xf40   : > { %v2219_v36 = vsel %vm2218_vm3, %v2217_v39, %v2211_v60 }
 0xf41   : > { %v4670_v58 = vpack.c.bf16 %v4666_v30, %v4666_v30 }
 0xf42   : > { %v6228_v53 = vpop.eup %6227  ;;  %v4429_v14 = vpop.permute.xlu1 %4428 }
 0xf43   : > { %v4667_v21 = vmul.f32 %v6228_v53, %v6220_v62  ;;  %v4433_v22 = vpop.permute.xlu0 %4432  ;;  %5917 = vmatmul.mubr.msk.bf16.vlgmr.msra.gmra.mrb[64].mxu1 %vm1664_vm2, %v4670_v58 }
 0xf44   : > { %5927 = vmatpush3.bf16.msra.mxu1 %v7880_v48  ;;  %5928 = vmatprep.mubr.msk.bf16.mxu1 %vm6705_vm1, %v6699_v3  ;;  %v4439_v3 = vsel %vm1664_vm2, %v4423_v34, %v4429_v14 }
 0xf45   : > { %v6230_v12 = vpop.eup %6229  ;;  %v4671_v13 = vpack.c.bf16 %v4667_v21, %v4667_v21  ;;  %v4440_v54 = vsel %vm2218_vm3, %v4439_v3, %v4433_v22 }
 0xf46   : > { %v4668_v29 = vmul.f32 %v6230_v12, %v6222_v33  ;;  %v2766_v59 = vpop.permute.xlu1 %2765 }
 0xf47   : > { %5923 = vmatmul.mubr.msk.bf16.vlgmr.msra.gmra.mrb[60].mxu0 %vm1664_vm2, %v4671_v13  ;;  %v2215_v16 = vpop.permute.xlu0 %2214  ;;  %v2773_v49 = vsel %vm2218_vm3, %v2772_v28, %v2766_v59 }
 0xf48   : > { %v2221_v48 = vsel %vm2220_vm4, %v2219_v36, %v2215_v16  ;;  %v4672_v46 = vpack.c.bf16 %v4668_v29, %v4668_v29 }
 0xf49   : > { %v2222_v31 = vadd.f32 %v6240_v17, %v2221_v48 }
 0xf4a   : > { %v2770_v25 = vpop.permute.xlu1 %2769 }
 0xf4b   : > { %2223 = vst.msk [vmem:[#allocation2] sm:$0xff] %vm605_vm0, %v2222_v31  ;;  %v4437_v38 = vpop.permute.xlu0 %4436  ;;  %5929 = vmatmul.mubr.msk.bf16.vlgmr.msra.gmra.mrb[68].mxu1 %vm1664_vm2, %v4672_v46  ;;  %v2774_v15 = vsel %vm2220_vm4, %v2773_v49, %v2770_v25 }
 0xf4c   : > { %v4441_v44 = vsel %vm2220_vm4, %v4440_v54, %v4437_v38  ;;  %v2775_v43 = vadd.f32 %v6241_v11, %v2774_v15 }
 0xf4d   : > { %v4442_v56 = vadd.f32 %v6242_v26, %v4441_v44 }
 0xf4e   : > { %2776 = vst.msk [vmem:[#allocation2 + $0x8] sm:$0xff] %vm605_vm0, %v2775_v43 }
 0xf4f   : > { %4444 = vst.msk [vmem:[#allocation2 + $0x10] sm:$0xff] %vm605_vm0, %v4442_v56 }
 0xf52   : > { %v8020_v34 = vld [vmem:[#allocation2] sm:$0xff] }
 0xf53   : > { %v2781_v1 = vsel %vm605_vm0, %v8020_v34, 0.0 }
 0xf54   : > { %2782 = vadd.xlane.f32.xlu0 %v2781_v1 }
 0xf56   : > { %v8024_v40 = vld [vmem:[#allocation2 + $0x10] sm:$0xff] }
 0xf57   : > { %v5002_v41 = vsel %vm605_vm0, %v8024_v40, 0.0 }
 0xf58   : > { %5003 = vadd.xlane.f32.xlu0 %v5002_v41  ;;  %v6243_v41 = vld [vmem:[#allocation5 + $0x18] sm:$0xff] }
 0xfe1   : > { %v2783_v43 = vpop.xlane.xlu0 %2782 }
0x100d   : > { %v4710_v32 = vpop.f32.mrb[56].mxu0 }
0x100e   : > { %v5912_v27 = vpop.f32.mrb[57].mxu0 }
0x100f   : > { %v4713_v55 = vpop.f32.mrb[58].mxu0  ;;  %v2787_v27 = vmul.f32 0.015625, %v2783_v43 }
0x1010   : > { %v5913_v51 = vpop.f32.mrb[59].mxu0  ;;  %v5004_v55 = vpop.xlane.xlu0 %5003 }
0x1011   : > { %v2789_v51 = vsub.f32 %v8020_v34, %v2787_v27 }
0x1016   : > { %v4753_v37 = vpop.f32.mrb[64].mxu1 }
0x1017   : > { %v5918_v8 = vpop.f32.mrb[65].mxu1 }
0x1018   : > { %v4756_v57 = vpop.f32.mrb[66].mxu1 }
0x1019   : > { %v5919_v52 = vpop.f32.mrb[67].mxu1 }
0x101a   : > { %v4796_v63 = vpop.f32.mrb[60].mxu0 }
0x101b   : > { %v4845_v0 = vcombine.low %v4710_v32, %v4796_v63  ;;  %v4846_v2 = vcombine.high %v4710_v32, %v4796_v63  ;;  %v5924_v61 = vpop.f32.mrb[61].mxu0  ;;  %v2791_v63 = vmul.f32 %v2789_v51, %v2789_v51 }
0x101c   : > { %v4799_v6 = vpop.f32.mrb[62].mxu0 }
0x101d   : > { %v5925_v19 = vpop.f32.mrb[63].mxu0  ;;  %v4853_v45 = vrot.slane %v4845_v0, %v7242_v9  ;;  %v4860_v4 = vrot.slane %v4846_v2, %v7242_v9  ;;  %v2793_v0 = vsel %vm605_vm0, %v2791_v63, 0.0 }
0x101e   : > { %v4839_v62 = vpop.f32.mrb[68].mxu1 }
0x101f   : > { %v4861_v42 = vcombine.low %v4753_v37, %v4839_v62  ;;  %v4862_v33 = vcombine.high %v4753_v37, %v4839_v62  ;;  %v5930_v7 = vpop.f32.mrb[69].mxu1  ;;  %v5008_v37 = vmul.f32 0.015625, %v5004_v55 }
0x1020   : > { %v4842_v23 = vpop.f32.mrb[70].mxu1 }
0x1021   : > { %v4869_v5 = vrot.slane %v4861_v42, %v7242_v9  ;;  %v4876_v47 = vrot.slane %v4862_v33, %v7242_v9  ;;  %v5931_v10 = vpop.f32.mrb[71].mxu1  ;;  %v5010_v57 = vsub.f32 %v8024_v40, %v5008_v37 }
0x1023   : > { %v4877_v50 = vcombine.low %v4853_v45, %v4869_v5  ;;  %v4878_v35 = vcombine.high %v4853_v45, %v4869_v5  ;;  %v4893_v18 = vcombine.low %v4860_v4, %v4876_v47  ;;  %v4894_v20 = vcombine.high %v4860_v4, %v4876_v47 }
0x1024   : > { %v5012_v2 = vmul.f32 %v5010_v57, %v5010_v57 }
0x1025   : > { %v4885_v30 = vrot.slane %v4877_v50, %v7249_v24  ;;  %v4892_v60 = vrot.slane %v4878_v35, %v7249_v24  ;;  %v4901_v58 = vrot.slane %v4893_v18, %v7249_v24  ;;  %v4908_v53 = vrot.slane %v4894_v20, %v7249_v24 }
0x1026   : > { %v5014_v61 = vsel %vm605_vm0, %v5012_v2, 0.0 }
0x1027   : > { %v4913_v14 = vcombine.low %v4885_v30, %v4892_v60  ;;  %v5634_v21 = vcombine.high %v4885_v30, %v4892_v60  ;;  %v4929_v22 = vcombine.low %v4901_v58, %v4908_v53  ;;  %v5635_v12 = vcombine.high %v4901_v58, %v4908_v53  ;;  %v5591_v30 = vld [vmem:[#allocation14] ss:$0 sm:$0xff] }
0x1029   : > { %v4920_v13 = vrot.slane %v4913_v14, %v7242_v9  ;;  %v4928_v39 = vrot.slane %v5634_v21, %v7242_v9  ;;  %v4936_v29 = vrot.slane %v4929_v22, %v7242_v9  ;;  %v4944_v59 = vrot.slane %v5635_v12, %v7242_v9  ;;  %v2778_v9 = vld [vmem:[#allocation2 + $0x8] sm:$0xff]  ;;  %v5592_v14 = vld [vmem:[#allocation16] ss:$0 sm:$0xff] }
0x102a   : > { %v2784_v15 = vsel %vm605_vm0, %v2778_v9, 0.0 }
0x102b   : > { %v4945_v36 = vcombine.low %v4920_v13, %v4928_v39  ;;  %v4961_v16 = vcombine.low %v4936_v29, %v4944_v59  ;;  %v4946_v3 = vcombine.high %v4920_v13, %v4928_v39  ;;  %v4962_v48 = vcombine.high %v4936_v29, %v4944_v59 }
0x102d   : > { %v4953_v46 = vrot.slane %v4945_v36, %v7249_v24  ;;  %v4969_v28 = vrot.slane %v4961_v16, %v7249_v24  ;;  %v4960_v17 = vrot.slane %v4946_v3, %v7249_v24  ;;  %v4976_v31 = vrot.slane %v4962_v48, %v7249_v24 }
0x102f   : > { %v4978_v49 = vcombine.high %v4953_v46, %v4969_v28  ;;  %v4979_v25 = vcombine.low %v4960_v17, %v4976_v31  ;;  %v4980_v38 = vcombine.high %v4960_v17, %v4976_v31  ;;  %v4977_v54 = vcombine.low %v4953_v46, %v4969_v28 }
0x1031   : > { %4982 = vrot.lane.b32.xlu1 %v4978_v49, %s6708_s24 }
0x1035   : > { %4986 = vrot.lane.b32.xlu1 %v4979_v25, %s6709_s13 }
0x1039   : > { %4990 = vrot.lane.b32.xlu1 %v4980_v38, %s6710_s5 }
0x105d   : > { %2785 = vadd.xlane.f32.xlu1 %v2784_v15 }
0x10a3   : > { %v4983_v44 = vpop.permute.xlu1 %4982 }
0x10a4   : > { %v4993_v26 = vsel %vm1664_vm2, %v4977_v54, %v4983_v44 }
0x10a7   : > { %v4987_v11 = vpop.permute.xlu1 %4986 }
0x10a8   : > { %v4994_v24 = vsel %vm2218_vm3, %v4993_v26, %v4987_v11 }
0x10ab   : > { %v4991_v56 = vpop.permute.xlu1 %4990 }
0x10ac   : > { %v4995_v1 = vsel %vm2220_vm4, %v4994_v24, %v4991_v56 }
0x10ad   : > { %v4996_v32 = vadd.f32 %v6243_v41, %v4995_v1 }
0x10af   : > { %4997 = vst.msk [vmem:[#allocation2 + $0x18] sm:$0xff] %vm605_vm0, %v4996_v32 }
0x10b6   : > { %v4999_v8 = vld [vmem:[#allocation2 + $0x18] sm:$0xff] }
0x10b7   : > { %v5005_v52 = vsel %vm605_vm0, %v4999_v8, 0.0 }
0x10b8   : > { %5006 = vadd.xlane.f32.xlu0 %v5005_v52 }
0x10bc   : > { %2794 = vadd.xlane.f32.xlu0 %v2793_v0 }
0x10c0   : > { %5015 = vadd.xlane.f32.xlu0 %v5014_v61 }
0x10ea   : > { %v2786_v6 = vpop.xlane.xlu1 %2785 }
0x10eb   : > { %v2788_v19 = vmul.f32 0.015625, %v2786_v6 }
0x10ed   : > { %v2790_v62 = vsub.f32 %v2778_v9, %v2788_v19 }
0x10ef   : > { %v2792_v42 = vmul.f32 %v2790_v62, %v2790_v62 }
0x10f1   : > { %v2796_v34 = vsel %vm605_vm0, %v2792_v42, 0.0 }
0x10f2   : > { %2797 = vadd.xlane.f32.xlu1 %v2796_v34 }
0x1145   : > { %v5007_v33 = vpop.xlane.xlu0 %5006 }
0x1146   : > { %v5009_v40 = vmul.f32 0.015625, %v5007_v33 }
0x1148   : > { %v5011_v7 = vsub.f32 %v4999_v8, %v5009_v40 }
0x1149   : > { %v2795_v4 = vpop.xlane.xlu0 %2794 }
0x114a   : > { %v5013_v23 = vmul.f32 %v5011_v7, %v5011_v7  ;;  %v2799_v5 = vmul.f32 0.015625, %v2795_v4 }
0x114c   : > { %v5017_v45 = vsel %vm605_vm0, %v5013_v23, 0.0  ;;  %v2801_v47 = vadd.f32 1e-06, %v2799_v5 }
0x114d   : > { %5018 = vadd.xlane.f32.xlu1 %v5017_v45  ;;  %v5016_v39 = vpop.xlane.xlu0 %5015 }
0x114e   : > { %6231 = vrsqrt.f32 %v2801_v47  ;;  %v5020_v29 = vmul.f32 0.015625, %v5016_v39 }
0x1150   : > { %v5022_v59 = vadd.f32 1e-06, %v5020_v29 }
0x1158   : > { %v6232_v18 = vpop.eup %6231 }
0x1159   : > { %v2805_v20 = vmul.f32 %v6232_v18, %v2789_v51 }
0x115b   : > { %v2813_v58 = vmul.f32 %v5591_v30, %v2805_v20 }
0x115d   : > { %v2821_v22 = vadd.f32 %v5592_v14, %v2813_v58 }
0x117f   : > { %v2798_v10 = vpop.xlane.xlu1 %2797 }
0x1180   : > { %v2800_v50 = vmul.f32 0.015625, %v2798_v10 }
0x1182   : > { %v2802_v35 = vadd.f32 1e-06, %v2800_v50 }
0x1184   : > { %6233 = vrsqrt.f32 %v2802_v35 }
0x1185   : > { %6235 = vrsqrt.f32 %v5022_v59 }
0x118e   : > { %v6234_v60 = vpop.eup %6233 }
0x118f   : > { %v2806_v53 = vmul.f32 %v6234_v60, %v2790_v62  ;;  %v6236_v48 = vpop.eup %6235 }
0x1190   : > { %v5026_v46 = vmul.f32 %v6236_v48, %v5010_v57 }
0x1191   : > { %v2814_v21 = vmul.f32 %v5591_v30, %v2806_v53 }
0x1192   : > { %v5034_v17 = vmul.f32 %v5591_v30, %v5026_v46 }
0x1193   : > { %v2822_v12 = vadd.f32 %v5592_v14, %v2814_v21 }
0x1194   : > { %v5042_v25 = vadd.f32 %v5592_v14, %v5034_v17 }
0x1195   : > { %v2823_v13 = vpack.c.bf16 %v2822_v12, %v2821_v22 }
0x1197   : > { %2824 = vst.msk [vmem:[#allocation3] sm:$0xff] %vm605_vm0, %v2823_v13 }
0x11da   : > { %v5019_v36 = vpop.xlane.xlu1 %5018 }
0x11db   : > { %v5021_v16 = vmul.f32 0.015625, %v5019_v36 }
0x11dd   : > { %v5023_v3 = vadd.f32 1e-06, %v5021_v16 }
0x11df   : > { %6237 = vrsqrt.f32 %v5023_v3 }
0x11e9   : > { %v6238_v28 = vpop.eup %6237 }
0x11ea   : > { %v5027_v31 = vmul.f32 %v6238_v28, %v5011_v7 }
0x11ec   : > { %v5035_v49 = vmul.f32 %v5591_v30, %v5027_v31 }
0x11ee   : > { %v5043_v38 = vadd.f32 %v5592_v14, %v5035_v49 }
0x11f0   : > { %v5044_v54 = vpack.c.bf16 %v5043_v38, %v5042_v25 }
0x11f2   : > { %5045 = vst.msk [vmem:[#allocation3 + $0x8] sm:$0xff] %vm605_vm0, %v5044_v54 }
0x11f3 PF: > { %v6244_v9 = vld [vmem:[%s7158_s29] sm:$0xff]   ;;  %v6245_v15 = vld [vmem:[%s7158_s29 + $0x8] sm:$0xff]   ;;  %vm5091_vm5 = vcmask 523264   ;;  %v6246_v44 = vld [vmem:[%s7158_s29 + $0x10] sm:$0xff]   ;;  %s8211_s3 = sld [smem:[#allocation33_spill]] }
0x11f4   : > { %5932 = vmatprep.subr.bf16.mxu0 %v6244_v9  ;;  %v5050_v11 = vld [vmem:[#allocation3] sm:$0xff]  ;;  %v6247_v26 = vld [vmem:[%s7158_s29 + $0x18] sm:$0xff]   ;;  %v5170_v13 = vld [vmem:[#allocation4 + $0x18] sm:$0xff] }
0x11f5   : > { %5933 = vmatpush3.bf16.msra.mxu0 %v6244_v9  ;;  %5940 = vmatprep.mubr.msk.bf16.mxu0 %vm5091_vm5, %v5050_v11  ;;  %v6248_v43 = vld [vmem:[%s7166_s28] sm:$0xff]   ;;  %v6249_v24 = vld [vmem:[%s7166_s28 + $0x8] sm:$0xff]   ;;  %v6250_v1 = vld [vmem:[%s7166_s28 + $0x10] sm:$0xff]  }
0x11f6   : > { %5934 = vmatprep.subr.bf16.mxu0 %v6245_v15  ;;  %5944 = vmatprep.subr.bf16.mxu1 %v6248_v43  ;;  %v6251_v41 = vld [vmem:[%s7166_s28 + $0x18] sm:$0xff]   ;;  %v6252_v32 = vld [vmem:[%s7166_s28 + $0x20] sm:$0xff]   ;;  %v6253_v27 = vld [vmem:[%s7166_s28 + $0x28] sm:$0xff]  }
0x11f7   : > { %5945 = vmatpush3.bf16.msra.mxu1 %v6248_v43  ;;  %v6254_v55 = vld [vmem:[%s7166_s28 + $0x30] sm:$0xff]   ;;  %v6255_v51 = vld [vmem:[%s7166_s28 + $0x38] sm:$0xff]   ;;  %v5638_v37 = vld [vmem:[%s537_s23] ss:$0 sm:$0xff] }
0x11f8   : > { %5946 = vmatprep.subr.bf16.mxu1 %v6249_v24  ;;  %v5169_v21 = vld [vmem:[#allocation4 + $0x10] sm:$0xff]  ;;  %v5167_v22 = vld [vmem:[#allocation4] sm:$0xff]  ;;  %v5168_v59 = vld [vmem:[#allocation4 + $0x8] sm:$0xff] }
0x11f9   : > { %5935 = vmatpush3.bf16.msra.mxu0 %v6245_v15  ;;  %v5051_v56 = vld [vmem:[#allocation3 + $0x8] sm:$0xff]  ;;  %p5653_p13 = scmp.ne.s32.totalorder %s8211_s3, 1 }
0x11fa   : > { %5936 = vmatprep.subr.bf16.mxu0 %v6246_v44  ;;  %v5298_v28 = vld [vmem:[#allocation2] sm:$0xff] (!%p5653_p13)  ;;  %v5654_v31 = vld [vmem:[#allocation22] ss:$0 sm:$0xff] (!%p5653_p13)  ;;  %v5299_v25 = vld [vmem:[#allocation2 + $0x8] sm:$0xff] (!%p5653_p13) }
0x11fb   : > { %5947 = vmatpush3.bf16.msra.mxu1 %v6249_v24  ;;  %v5300_v54 = vld [vmem:[#allocation2 + $0x10] sm:$0xff] (!%p5653_p13) }
0x11fc   : > { %5948 = vmatprep.subr.bf16.mxu1 %v6250_v1 }
0x11fd   : > { %5937 = vmatpush3.bf16.msra.mxu0 %v6246_v44  ;;  %v5301_v44 = vld [vmem:[#allocation2 + $0x18] sm:$0xff] (!%p5653_p13) }
0x11fe   : > { %5938 = vmatprep.subr.bf16.mxu0 %v6247_v26 }
0x11ff   : > { %5949 = vmatpush3.bf16.msra.mxu1 %v6250_v1 }
0x1200   : > { %5950 = vmatprep.subr.bf16.mxu1 %v6251_v41 }
0x1201   : > { %5939 = vmatpush3.bf16.msra.mxu0 %v6247_v26 }
0x1203   : > { %5951 = vmatpush3.bf16.msra.mxu1 %v6251_v41 }
0x1204   : > { %5941 = vmatmul.mubr.msk.bf16.vlgmr.msra.gmra.mrb[0].mxu0 %vm5091_vm5, %v5051_v56  ;;  %5952 = vmatprep.subr.bf16.mxu1 %v6252_v32 }
0x1207   : > { %5953 = vmatpush3.bf16.msra.mxu1 %v6252_v32 }
0x1208   : > { %5954 = vmatprep.subr.bf16.mxu1 %v6253_v27 }
0x120b   : > { %5955 = vmatpush3.bf16.msra.mxu1 %v6253_v27 }
0x120c   : > { %5956 = vmatprep.subr.bf16.mxu1 %v6254_v55 }
0x120f   : > { %5957 = vmatpush3.bf16.msra.mxu1 %v6254_v55 }
0x1210   : > { %5958 = vmatprep.subr.bf16.mxu1 %v6255_v51 }
0x1213   : > { %5959 = vmatpush3.bf16.msra.mxu1 %v6255_v51 }
0x12d7   : > { %v5942_v8 = vpop.f32.mrb[0].mxu0 }
0x12d8   : > { %v5141_v57 = vadd.f32 %v5942_v8, %v5638_v37  ;;  %v5132_v52 = vpop.f32.mrb[1].mxu0 }
0x12d9   : > { %v5133_v63 = vadd.f32 %v5638_v37, %v5132_v52  ;;  %v5943_v0 = vpop.f32.mrb[2].mxu0 }
0x12da   : > { %v5153_v2 = vmul.f32 0.70710677, %v5141_v57  ;;  %v5144_v61 = vadd.f32 %v5943_v0, %v5638_v37  ;;  %v5135_v6 = vpop.f32.mrb[3].mxu0  ;;  %v5149_v5 = vmul.f32 0.5, %v5141_v57 }
0x12db   : > { %v5151_v19 = vmul.f32 0.70710677, %v5133_v63  ;;  %v5136_v62 = vadd.f32 %v5638_v37, %v5135_v6  ;;  %v5147_v50 = vmul.f32 0.5, %v5133_v63 }
0x12dc   : > { %6256 = verf.f32 %v5153_v2  ;;  %v5154_v42 = vmul.f32 0.70710677, %v5144_v61  ;;  %v5150_v47 = vmul.f32 0.5, %v5144_v61 }
0x12dd   : > { %6258 = verf.f32 %v5151_v19  ;;  %v5152_v34 = vmul.f32 0.70710677, %v5136_v62  ;;  %v5148_v35 = vmul.f32 0.5, %v5136_v62 }
0x12de   : > { %6260 = verf.f32 %v5154_v42 }
0x12df   : > { %6262 = verf.f32 %v5152_v34 }
0x12e6   : > { %v6257_v33 = vpop.eup %6256 }
0x12e7   : > { %v6259_v40 = vpop.eup %6258  ;;  %v5161_v7 = vadd.f32 1.0, %v6257_v33 }
0x12e8   : > { %v6261_v23 = vpop.eup %6260  ;;  %v5159_v45 = vadd.f32 1.0, %v6259_v40 }
0x12e9   : > { %v6263_v4 = vpop.eup %6262  ;;  %v5162_v10 = vadd.f32 1.0, %v6261_v23  ;;  %v5165_v20 = vmul.f32 %v5161_v7, %v5149_v5 }
0x12ea   : > { %v5160_v18 = vadd.f32 1.0, %v6263_v4  ;;  %v5163_v60 = vmul.f32 %v5159_v45, %v5147_v50 }
0x12eb   : > { %v5166_v30 = vmul.f32 %v5162_v10, %v5150_v47 }
0x12ec   : > { %v5164_v58 = vmul.f32 %v5160_v18, %v5148_v35 }
0x12ed   : > { %v5172_v53 = vpack.c.bf16 %v5166_v30, %v5165_v20 }
0x12ee   : > { %v5171_v14 = vpack.c.bf16 %v5164_v58, %v5163_v60 }
0x12f0   : > { %5960 = vmatprep.mubr.bf16.mxu1 %v5171_v14 }
0x12f1   : > { %5961 = vmatmul.mubr.bf16.vlgmr.msra.gmra.mrb[0].mxu1 %v5172_v53 }
0x13c4   : > { %v5962_v12 = vpop.f32.mrb[0].mxu1  ;;  %5297 = sbr.rel (%p5653_p13) target bundleno = 5079 (0x13d7), region = 116 }
0x13c5   : > { %v5288_v39 = vadd.f32 %v5962_v12, %v5169_v21  ;;  %v5271_v29 = vpop.f32.mrb[1].mxu1 }
0x13c6   : > { %v5286_v36 = vadd.f32 %v5271_v29, %v5167_v22  ;;  %v5963_v16 = vpop.f32.mrb[2].mxu1 }
0x13c7   : > { %5292 = vst.msk [vmem:[#allocation4 + $0x10] sm:$0xff] %vm5091_vm5, %v5288_v39  ;;  %v5289_v3 = vadd.f32 %v5963_v16, %v5170_v13  ;;  %v5274_v48 = vpop.f32.mrb[3].mxu1 }
0x13c8   : > { %5290 = vst.msk [vmem:[#allocation4] sm:$0xff] %vm5091_vm5, %v5286_v36  ;;  %v5287_v46 = vadd.f32 %v5274_v48, %v5168_v59 }
0x13c9   : > { %5293 = vst.msk [vmem:[#allocation4 + $0x18] sm:$0xff] %vm5091_vm5, %v5289_v3 }
0x13ca   : > { %5291 = vst.msk [vmem:[#allocation4 + $0x8] sm:$0xff] %vm5091_vm5, %v5287_v46 }
0x13ce   : > { %v5304_v15 = vld [vmem:[#allocation4 + $0x10] sm:$0xff] }
0x13cf   : > { %v5302_v17 = vld [vmem:[#allocation4] sm:$0xff]  ;;  %v5308_v26 = vadd.f32 %v5304_v15, %v5300_v54 }
0x13d0   : > { %v5306_v49 = vadd.f32 %v5302_v17, %v5298_v28  ;;  %v5305_v11 = vld [vmem:[#allocation4 + $0x18] sm:$0xff] }
0x13d1   : > { %v5303_v38 = vld [vmem:[#allocation4 + $0x8] sm:$0xff]  ;;  %v5309_v24 = vadd.f32 %v5305_v11, %v5301_v44  ;;  %v5319_v1 = vadd.f32 %v5654_v31, %v5308_v26 }
0x13d2   : > { %v5307_v9 = vadd.f32 %v5303_v38, %v5299_v25  ;;  %v5317_v43 = vadd.f32 %v5654_v31, %v5306_v49 }
0x13d3   : > { %v5320_v41 = vadd.f32 %v5654_v31, %v5309_v24  ;;  %5323 = vst.msk [vmem:[#allocation23 + $0x10] sm:$0xff] %vm5091_vm5, %v5319_v1 }
0x13d4   : > { %v5318_v56 = vadd.f32 %v5654_v31, %v5307_v9  ;;  %5321 = vst.msk [vmem:[#allocation23] sm:$0xff] %vm5091_vm5, %v5317_v43 }
0x13d5   : > { %5324 = vst.msk [vmem:[#allocation23 + $0x18] sm:$0xff] %vm5091_vm5, %v5320_v41 }
0x13d6   : > { %5322 = vst.msk [vmem:[#allocation23 + $0x8] sm:$0xff] %vm5091_vm5, %v5318_v56 }
0x13d7 PF: > { %p6058_p0 = scmp.eq.s32.totalorder %s6805_s25, 1  ;;  %s6711_s11 = smov [#allocation23]  }
0x13d8   : > { %s5335_s12 = sshll.u32 %s6711_s11, 4  ;;  %s5336_s12 = int_to_ptr.vmem [resolvable:$true] %s5335_s12 }
0x13d9   : > { %s6578_s15 = scalar_lea.vmem %s5336_s12, 512  ;;  %p6585_p9 = scmp.lt.s32.totalorder %s5336_s12, %s5336_s12 }
0x13da   : > { %p6579_p10 = scmp.ne.s32.totalorder %s5336_s12, %s6578_s15  ;;  %p6586_p1 = scmp.lt.s32.totalorder %s6578_s15, %s6578_s15 }
0x13dc   : > { %p6580_p2 = pnand %p6579_p10, %p6058_p0  ;;  %p6587_p5 = por %p6586_p1, %p6585_p9 }
0x13de   : > { %p6581_p6 = pneg %p6580_p2 }
0x13e0   : > { %p6588_p7 = pnand %p6587_p5, %p6581_p6 }
0x13e2   : > { %6591 = shalt.err (!%p6588_p7)
}
0x13e3   : > { %s8212_s16 = sld [smem:[#allocation43_spill]] }
0x13e9   : > { %s6592_s10 = scalar_lea.hbm %s8212_s16, 512 }
0x13ea   : > { %p6593_p11 = scmp.ne.s32.totalorder %s8212_s16, %s6592_s10  ;;  %p6598_p3 = scmp.lt.u32.totalorder %s6592_s10, %s8212_s16 }
0x13ec   : > { %p6594_p4 = pnand %p6593_p11, %p6058_p0 }
0x13ee   : > { %p6595_p8 = pneg %p6594_p4 }
0x13f0   : > { %p6600_p12 = pnand %p6598_p3, %p6595_p8 }
0x13f2   : > { %6603 = shalt.err (!%p6600_p12)
}
0x13f3   : > { %s6712_s28 = smov 128   ;;  %s6713_s30 = smov 8  }
0x13f4   : > { %6003 = dma.vmem_to_hbm [thread:$0]  (%p6058_p0), %s5336_s12, 512, %s8212_s16, [#allocation7], %s6712_s28, %s6712_s28, %s6713_s30  }
0x13f5   : > { %6657 = dma.done.wait (%p6058_p0), [#allocation7], 512  }
0x13f6   : > { %6659 = vsyncadd (%p6058_p0), [#allocation7], 4294966784 }
0x13f7 PF: > { %s32_s22 = sadd.s32 1, %s6682_s22   ;;  %s8213_s20 = sld [smem:[#allocation32_spill]] }
0x13f8   : > { %p29_p13 = scmp.ge.s32.totalorder %s32_s22, 4   ;;  %s8214_s19 = sld [smem:[#allocation37_spill]] }
0x13f9   : > { %s8215_s1 = sld [smem:[#allocation35_spill]]  ;;  %s8216_s17 = smov %s6666_s18 }
0x13fa   :  { %31 = sbr.rel (!%p29_p13) target bundleno = 18 (0x12), region = 170 }
0x13fd   : > { %s8217_s18 = smov %s8213_s20  ;;  %s8218_s20 = smov %s6678_s21 }
0x13ff   : > { %s8219_s21 = smov %s8215_s1 }
0x1401   :  { %5351 = vsyncpa [#allocation6], 1 }
0x1402   :  { %5353 = vsyncpa [#allocation6 + $0x1], 1 }
0x1403   :  { %5354 = vsyncpa [#allocation9], 1 }
0x1404   :  { %5355 = vsyncpa [#allocation12], 1 }
0x1405   :  { %5356 = vsyncpa [#allocation15], 1 }
0x1406   :  { %5357 = vsyncpa [#allocation18], 1 }
0x1407   :  { %5359 = vsyncpa [#allocation18 + $0x1], 1 }
0x1408   :  { %5360 = vsyncpa [#allocation21], 1 }
0x1409   :  { %5362 = vsyncpa [#allocation21 + $0x1], 1 }
0x140a   :  { %5363 = vsyncpa [#allocation7], 1 }
0x140b   :  { %5365 = vsyncpa [#allocation7 + $0x1], 1 }

</bundles_post_ra>
